<compile_context>
chip_gen: v7x
topology: tpu7x:2x2x1
jax: 0.10.0
libtpu: 0.0.40
codegen_flags: <defaults>
</compile_context>

<pallas_src>
import jax
import jax.numpy as jnp
from jax.experimental import pallas as pl
from jax.experimental.pallas import tpu as pltpu


# ----------------------------- small math helpers -----------------------------

def silu(x):
    # x * sigmoid(x); overflow-safe for large |x|.
    return x * (1.0 / (1.0 + jnp.exp(-x)))


def mlp_forward(t, mlp_params):
    """SimpleMLP(hidden=64): 1 -> 64 -> 64 -> K*K.  t: [B] -> [B, K*K]."""
    h = t.reshape(-1, 1)
    (w1, b1), (w2, b2), (w3, b3) = mlp_params
    h = silu(h @ w1 + b1)
    h = silu(h @ w2 + b2)
    return h @ w3 + b3


def unfold_circular_nchw(x, K):
    """Reference only: [B,C,H,W] -> [B,C,K*K,H,W] with circular padding."""
    pad = K // 2
    cols = []
    for dh in range(K):
        for dw in range(K):
            cols.append(jnp.roll(x, shift=(pad - dh, pad - dw), axis=(2, 3)))
    return jnp.stack(cols, axis=2)


def unfold_zero_nchw(x, K):
    """Reference only: [B,C,H,W] -> [B,C,K*K,H,W] with zero padding."""
    pad = K // 2
    B, C, H, W = x.shape
    xp = jnp.pad(x, ((0, 0), (0, 0), (pad, pad), (pad, pad)))
    cols = []
    for dh in range(K):
        for dw in range(K):
            cols.append(xp[:, :, dh:dh + H, dw:dw + W])
    return jnp.stack(cols, axis=2)


def _clipped_embedding(emb):
    """nn.Embedding max_norm=1.0 forward semantics: row norm clipped to <= 1."""
    norms = jnp.linalg.norm(emb, axis=1, keepdims=True)
    return emb * jnp.minimum(1.0, 1.0 / jnp.maximum(norms, 1e-12))


def _choose_imgs_per_tile(B, HW, max_pixels=8192, min_steps=2):
    """Largest whole-image multiple that keeps per-step work reasonable while
    leaving some grid depth for pipelining / multi-core."""
    divs = [d for d in range(1, B + 1) if B % d == 0]
    ok = [d for d in divs if d * HW <= max_pixels] or [1]
    pref = [d for d in ok if B // d >= min_steps]
    return max(pref) if pref else max(ok)


# ----------------------------- in-kernel building blocks -----------------------------

def _lane_roll(x, shift):
    """out[:, p] = x[:, (p - shift) mod n]  (jnp.roll semantics, static shift)."""
    n = x.shape[-1]
    s = shift % n
    if s == 0:
        return x
    return jnp.concatenate([x[:, n - s:], x[:, :n - s]], axis=-1)


def _circ_taps(xe, K, col, W):
    """Circular-padded unfold taps of one flattened image, built with lane rolls.

    xe:  [C, H*W] embedding of a single image (pixel p = h*W + w on lanes).
    Returns {(dh, dw): [C, H*W]} for all taps except the center (0, 0):
        tap[(dh, dw)][c, p(h, w)] = xe[c, ((h+dh) mod H) * W + ((w+dw) mod W)]
    Vertical wrap is free (a flat roll by dh*W is already circular mod H*W);
    horizontal wrap needs a second roll + select on the column index.
    """
    pad = K // 2
    taps = {}
    for dw in range(-pad, pad + 1):
        if dw == 0:
            xh = xe
        else:
            prim = _lane_roll(xe, -dw)                       # xe[p + dw]
            if dw > 0:
                corr = _lane_roll(xe, W - dw)                # xe[p + dw - W]
                wrap = col >= (W - dw)
            else:
                corr = _lane_roll(xe, -(W + dw))             # xe[p + dw + W]
                wrap = col < (-dw)
            xh = jnp.where(wrap, corr, prim)
        for dh in range(-pad, pad + 1):
            if dh == 0 and dw == 0:
                continue
            taps[(dh, dw)] = _lane_roll(xh, -dh * W) if dh != 0 else xh
    return taps


# ----------------------------- Pallas kernel -----------------------------

def make_kernel(C, H, W, kernel_sizes, imgs_per_tile):
    HW = H * W
    K0 = kernel_sizes[0]
    layer_ks = list(kernel_sizes[1:])
    L = len(layer_ks)
    uniq_ks = sorted(set([K0] + layer_ks))   # tap sets shared across equal kernel sizes

    def kernel(x_ref, scale_ref, rowcol_ref, cats_ref, embT_ref, w0_ref, lin_ref, *rest):
        layer_refs = [tuple(rest[3 * l: 3 * l + 3]) for l in range(L)]
        out_ref = rest[3 * L]

        # ---- weights / constants, hoisted out of every loop ----
        embT = embT_ref[...]                                  # [C, n_cat]
        lin = lin_ref[...]                                    # [n_cat, C]
        cats = cats_ref[...]                                  # [n_cat, 1] int32
        row = rowcol_ref[0:1, :]                              # [1, HW] int32
        col = rowcol_ref[1:2, :]                              # [1, HW] int32

        pad0 = K0 // 2
        w0_taps, zmask = {}, {}
        for ki in range(K0):
            for kj in range(K0):
                if ki == pad0 and kj == pad0:                 # masked center tap
                    continue
                dh, dw = ki - pad0, kj - pad0
                w0_taps[(dh, dw)] = w0_ref[ki * K0 + kj]      # [C, C]
                ok_h = jnp.logical_and(row + dh >= 0, row + dh <= H - 1)
                ok_w = jnp.logical_and(col + dw >= 0, col + dw <= W - 1)
                zmask[(dh, dw)] = jnp.logical_and(ok_h, ok_w)   # zero-padding mask

        A_taps, b1_taps = [], []
        for l in range(L):
            K = layer_ks[l]
            pad = K // 2
            a_ref, b1_ref, _ = layer_refs[l]
            ad, bd = {}, {}
            for ki in range(K):
                for kj in range(K):
                    if ki == pad and kj == pad:               # k_x center tap is zeroed
                        continue
                    i = ki * K + kj
                    ad[(ki - pad, kj - pad)] = a_ref[i]       # [C, C]
                    bd[(ki - pad, kj - pad)] = b1_ref[i]      # [C, 1]
            A_taps.append(ad)
            b1_taps.append(bd)

        # ---- per-image compute (static unroll over the images in this tile) ----
        for j in range(imgs_per_tile):
            ids = x_ref[j]                                     # [1, HW] int32
            onehot = (cats == ids).astype(jnp.float32)         # [n_cat, HW]
            # embedding lookup: xe[c, p] = emb[x[p], c]
            xe = jnp.dot(embT, onehot, preferred_element_type=jnp.float32)   # [C, HW]

            # circular-unfold taps, built once per distinct kernel size
            taps = {K: _circ_taps(xe, K, col, W) for K in uniq_ks}

            # initial masked conv: ZERO padding; per-image (1 + t) folded in after
            pre = jnp.zeros((C, HW), jnp.float32)
            for (dh, dw), w_tap in w0_taps.items():
                t_in = jnp.where(zmask[(dh, dw)], taps[K0][(dh, dw)], 0.0)
                pre = pre + jnp.dot(w_tap, t_in, preferred_element_type=jnp.float32)
            pre = pre * scale_ref[j]                           # [1, 1] per-image scale

            # StateDependentConv2D layers (circular padding, center tap skipped)
            for l in range(L):
                K = layer_ks[l]
                pad = K // 2
                bias_ref = layer_refs[l][2]
                post = silu(pre)
                nxt = jnp.zeros((C, HW), jnp.float32)
                for (dh, dw), a_tap in A_taps[l].items():
                    i = (dh + pad) * K + (dw + pad)
                    ap = jnp.dot(a_tap, post, preferred_element_type=jnp.float32)
                    kx = silu(ap + b1_taps[l][(dh, dw)]) + bias_ref[j, i]   # + [C, 1]
                    nxt = nxt + kx * taps[K][(dh, dw)]
                pre = nxt

            proj = jnp.dot(lin, pre, preferred_element_type=jnp.float32)    # [n_cat, HW]
            offset = jnp.sum(proj * onehot, axis=0, keepdims=True)          # gather(dim=1, x)
            out_ref[j] = proj - offset

    return kernel


# ----------------------------- wrapper / glue -----------------------------

def conv_potts_rate_matrix_pallas(x, t, params, imgs_per_tile=None):
    """x: int32 [B, H, W] in [0, n_cat); t: f32 [B]  ->  f32 [B, n_cat, H, W]."""
    B, H, W = x.shape
    n_cat = params["n_cat"]
    C = params["num_channels"]
    ks = list(params["kernel_sizes"])
    K0 = ks[0]
    KK0 = K0 * K0
    HW = H * W
    L = len(ks) - 1

    if imgs_per_tile is None:
        imgs_per_tile = _choose_imgs_per_tile(B, HW)
    assert B % imgs_per_tile == 0
    grid = B // imgs_per_tile

    f32 = jnp.float32
    # TODO(synk): embedding_type='numerical_embedding' variant not implemented
    # (module default 'grid_embedding' only).
    emb_eff = _clipped_embedding(params["emb"]).astype(f32)           # [n_cat, C]
    embT = emb_eff.T                                                   # [C, n_cat]
    w0_taps = jnp.transpose(params["w0"].astype(f32), (2, 3, 0, 1)).reshape(KK0, C, C)
    lin = params["linear"].astype(f32)                                 # [n_cat, C]
    scale = (1.0 + t.astype(f32)).reshape(B, 1, 1)                     # per-image (1 + t)
    x_ids = x.astype(jnp.int32).reshape(B, 1, HW)                      # only per-pixel stream
    idx = jnp.arange(HW, dtype=jnp.int32)
    rowcol = jnp.stack([idx // W, idx % W]).astype(jnp.int32)          # [2, HW] constants
    cats = jnp.arange(n_cat, dtype=jnp.int32).reshape(n_cat, 1)

    inputs = [x_ids, scale, rowcol, cats, embT, w0_taps, lin]
    in_specs = [
        pl.BlockSpec((imgs_per_tile, 1, HW), lambda g: (g, 0, 0)),
        pl.BlockSpec((imgs_per_tile, 1, 1), lambda g: (g, 0, 0)),
        pl.BlockSpec((2, HW), lambda g: (0, 0)),
        pl.BlockSpec((n_cat, 1), lambda g: (0, 0)),
        pl.BlockSpec((C, n_cat), lambda g: (0, 0)),
        pl.BlockSpec((KK0, C, C), lambda g: (0, 0, 0)),
        pl.BlockSpec((n_cat, C), lambda g: (0, 0)),
    ]
    for l in range(L):
        K = ks[l + 1]
        KK = K * K
        lp = params["layers"][l]
        A_taps = jnp.transpose(lp["A"].astype(f32), (1, 0, 2))         # [KK, C, C]
        b1r = lp["b1"].astype(f32).T.reshape(KK, C, 1)                 # [KK, C, 1]
        temb = mlp_forward(t.astype(f32), lp["mlp"])                   # [B, KK]  (glue, tiny)
        bias = (lp["b2"].astype(f32).T[None, :, :] + temb[:, :, None]).reshape(B, KK, C, 1)
        inputs += [A_taps, b1r, bias]
        in_specs += [
            pl.BlockSpec((KK, C, C), lambda g: (0, 0, 0)),
            pl.BlockSpec((KK, C, 1), lambda g: (0, 0, 0)),
            pl.BlockSpec((imgs_per_tile, KK, C, 1), lambda g: (g, 0, 0, 0)),
        ]

    out = pl.pallas_call(
        make_kernel(C, H, W, ks, imgs_per_tile),
        out_shape=jax.ShapeDtypeStruct((B, n_cat, HW), jnp.float32),   # final layout
        grid_spec=pltpu.PrefetchScalarGridSpec(
            num_scalar_prefetch=0,
            grid=(grid,),
            in_specs=in_specs,
            out_specs=pl.BlockSpec((imgs_per_tile, n_cat, HW), lambda g: (g, 0, 0)),
        ),
        compiler_params=pltpu.CompilerParams(dimension_semantics=("parallel",)),
    )(*inputs)

    return out.reshape(B, n_cat, H, W)     # free reshape; no transpose needed


# ----------------------------- parameters -----------------------------

def init_params(key, n_cat, kernel_sizes, num_channels=4, hidden_dim=64):
    C = num_channels
    K0 = kernel_sizes[0]
    n_layers = len(kernel_sizes) - 1
    ki = iter(jax.random.split(key, 3 + 4 * max(n_layers, 1)))
    params = {"n_cat": n_cat, "num_channels": C, "kernel_sizes": list(kernel_sizes)}

    # GridEmbedding: N(0, 1/sqrt(C)); max_norm applied at lookup time
    params["emb"] = jax.random.normal(next(ki), (n_cat, C)) / jnp.sqrt(float(C))
    # initial conv: PyTorch Conv2d default U(+-1/sqrt(fan_in)), fan_in = C*K0*K0
    bound0 = 1.0 / (C * K0 * K0) ** 0.5
    params["w0"] = jax.random.uniform(next(ki), (C, C, K0, K0),
                                      minval=-bound0, maxval=bound0)
    params["linear"] = 0.02 * jax.random.normal(next(ki), (n_cat, C)) / jnp.sqrt(float(C))

    def lin_init(k, fin, fout):
        kw, kb = jax.random.split(k)
        b = 1.0 / fin ** 0.5
        return (jax.random.uniform(kw, (fin, fout), minval=-b, maxval=b),
                jax.random.uniform(kb, (fout,), minval=-b, maxval=b))

    layers = []
    for l in range(n_layers):
        K = kernel_sizes[l + 1]
        KK = K * K
        A = 0.002 * jax.random.uniform(next(ki), (C, KK, C)) / jnp.sqrt(float(KK))
        b1 = 0.002 * jax.random.uniform(next(ki), (C, KK))
        b2 = 0.002 * jax.random.uniform(next(ki), (C, KK))
        k1, k2, k3 = jax.random.split(next(ki), 3)
        mlp = [lin_init(k1, 1, hidden_dim),
               lin_init(k2, hidden_dim, hidden_dim),
               lin_init(k3, hidden_dim, KK)]
        layers.append({"A": A, "b1": b1, "b2": b2, "mlp": mlp})
    params["layers"] = layers
    return params


# ----------------------------- pure-JAX reference -----------------------------

def reference_forward(x, t, params):
    B, H, W = x.shape
    n_cat = params["n_cat"]
    C = params["num_channels"]
    ks = params["kernel_sizes"]
    K0 = ks[0]

    emb_eff = _clipped_embedding(params["emb"])
    x_emb = jnp.transpose(emb_eff[x], (0, 3, 1, 2))                   # [B, C, H, W]
    x_t = (1.0 + t)[:, None, None, None] * x_emb

    w0m = params["w0"].at[:, :, K0 // 2, K0 // 2].set(0.0)
    xu0 = unfold_zero_nchw(x_t, K0)                                   # zero padding
    pre = jnp.einsum("bcihw,oci->bohw", xu0, w0m.reshape(C, C, K0 * K0))

    for l in range(len(ks) - 1):
        K = ks[l + 1]
        KK = K * K
        mid = KK // 2
        lp = params["layers"][l]
        post = silu(pre)
        xu = unfold_circular_nchw(x_emb, K)                           # [B,C,KK,H,W]
        ap = jnp.einsum("bchw,lic->blihw", post, lp["A"])
        ab = silu(ap + lp["b1"][None, :, :, None, None])
        temb = mlp_forward(t, lp["mlp"])
        kx = ab + lp["b2"][None, :, :, None, None] + temb[:, None, :, None, None]
        kx = kx.at[:, :, mid].set(0.0)
        pre = jnp.sum(kx * xu, axis=2)

    proj = jnp.einsum("kc,bchw->bkhw", params["linear"], pre)
    offset = jnp.take_along_axis(proj, x[:, None, :, :], axis=1)
    return proj - offset


# ----------------------------- main -----------------------------

if __name__ == "__main__":
    key = jax.random.PRNGKey(0)
    kp, kx_, kt = jax.random.split(key, 3)

    n_cat, C = 3, 4
    kernel_sizes = [3, 3, 3]          # initial masked conv + 2 StateDependentConv2D
    B, H, W = 4, 16, 16               # -> 2-image tiles, 2 grid steps

    params = init_params(kp, n_cat, kernel_sizes, num_channels=C)
    x = jax.random.randint(kx_, (B, H, W), 0, n_cat, dtype=jnp.int32)
    t = jax.random.uniform(kt, (B,), dtype=jnp.float32)

    out = conv_potts_rate_matrix_pallas(x, t, params)
    out = jax.block_until_ready(out)

    ref = reference_forward(x, t, params)
    assert out.shape == (B, n_cat, H, W)
    err = float(jnp.max(jnp.abs(out - ref)))
    assert jnp.allclose(out, ref, atol=3e-3, rtol=3e-3), f"mismatch: max abs err = {err}"
    print("KERNEL_OK")
</pallas_src>

<mosaic_0001>
module attributes {stable_mosaic.version = 11 : i64} {
  func.func @kernel(%arg0: i32, %arg1: memref<2x1x256xi32, #tpu.memory_space<vmem>>, %arg2: memref<2x1x1xf32, #tpu.memory_space<vmem>>, %arg3: memref<2x256xi32, #tpu.memory_space<vmem>>, %arg4: memref<3x1xi32, #tpu.memory_space<vmem>>, %arg5: memref<4x3xf32, #tpu.memory_space<vmem>>, %arg6: memref<9x4x4xf32, #tpu.memory_space<vmem>>, %arg7: memref<3x4xf32, #tpu.memory_space<vmem>>, %arg8: memref<9x4x4xf32, #tpu.memory_space<vmem>>, %arg9: memref<9x4x1xf32, #tpu.memory_space<vmem>>, %arg10: memref<2x9x4x1xf32, #tpu.memory_space<vmem>>, %arg11: memref<9x4x4xf32, #tpu.memory_space<vmem>>, %arg12: memref<9x4x1xf32, #tpu.memory_space<vmem>>, %arg13: memref<2x9x4x1xf32, #tpu.memory_space<vmem>>, %arg14: memref<2x3x256xf32, #tpu.memory_space<vmem>>) attributes {dimension_semantics = [#tpu.dimension_semantics<parallel>], iteration_bounds = array<i64: 2>, scalar_prefetch = 0 : i64, scratch_operands = 0 : i64, tpu.core_type = #tpu.core_type<tc>, window_params = [{transform_indices = @transform_0, window_bounds = array<i64: 2, 1, 256>}, {transform_indices = @transform_1, window_bounds = array<i64: 2, 1, 1>}, {pipeline_mode = #tpu.pipeline_mode<synchronous>, transform_indices = @transform_2, window_bounds = array<i64: 2, 256>}, {pipeline_mode = #tpu.pipeline_mode<synchronous>, transform_indices = @transform_3, window_bounds = array<i64: 3, 1>}, {pipeline_mode = #tpu.pipeline_mode<synchronous>, transform_indices = @transform_4, window_bounds = array<i64: 4, 3>}, {pipeline_mode = #tpu.pipeline_mode<synchronous>, transform_indices = @transform_5, window_bounds = array<i64: 9, 4, 4>}, {pipeline_mode = #tpu.pipeline_mode<synchronous>, transform_indices = @transform_6, window_bounds = array<i64: 3, 4>}, {pipeline_mode = #tpu.pipeline_mode<synchronous>, transform_indices = @transform_7, window_bounds = array<i64: 9, 4, 4>}, {pipeline_mode = #tpu.pipeline_mode<synchronous>, transform_indices = @transform_8, window_bounds = array<i64: 9, 4, 1>}, {transform_indices = @transform_9, window_bounds = array<i64: 2, 9, 4, 1>}, {pipeline_mode = #tpu.pipeline_mode<synchronous>, transform_indices = @transform_10, window_bounds = array<i64: 9, 4, 4>}, {pipeline_mode = #tpu.pipeline_mode<synchronous>, transform_indices = @transform_11, window_bounds = array<i64: 9, 4, 1>}, {transform_indices = @transform_12, window_bounds = array<i64: 2, 9, 4, 1>}, {transform_indices = @transform_13, window_bounds = array<i64: 2, 3, 256>}]} {
    %c0 = arith.constant 0 : index
    %c0_0 = arith.constant 0 : index
    %0 = vector.load %arg5[%c0, %c0_0] : memref<4x3xf32, #tpu.memory_space<vmem>>, vector<4x3xf32>
    %c0_1 = arith.constant 0 : index
    %c0_2 = arith.constant 0 : index
    %1 = vector.load %arg7[%c0_1, %c0_2] : memref<3x4xf32, #tpu.memory_space<vmem>>, vector<3x4xf32>
    %c0_3 = arith.constant 0 : index
    %c0_4 = arith.constant 0 : index
    %2 = vector.load %arg4[%c0_3, %c0_4] : memref<3x1xi32, #tpu.memory_space<vmem>>, vector<3x1xi32>
    %c0_5 = arith.constant 0 : index
    %c0_6 = arith.constant 0 : index
    %3 = vector.load %arg3[%c0_5, %c0_6] : memref<2x256xi32, #tpu.memory_space<vmem>>, vector<1x256xi32>
    %c1 = arith.constant 1 : index
    %c0_7 = arith.constant 0 : index
    %4 = vector.load %arg3[%c1, %c0_7] : memref<2x256xi32, #tpu.memory_space<vmem>>, vector<1x256xi32>
    %c0_8 = arith.constant 0 : index
    %c0_9 = arith.constant 0 : index
    %c0_10 = arith.constant 0 : index
    %5 = vector.load %arg6[%c0_8, %c0_9, %c0_10] : memref<9x4x4xf32, #tpu.memory_space<vmem>>, vector<1x4x4xf32>
    %6 = vector.shape_cast %5 : vector<1x4x4xf32> to vector<4x4xf32>
    %c-1_i32 = arith.constant -1 : i32
    %7 = vector.broadcast %c-1_i32 : i32 to vector<1x256xi32>
    %8 = arith.addi %3, %7 : vector<1x256xi32>
    %c0_i32 = arith.constant 0 : i32
    %9 = vector.broadcast %c0_i32 : i32 to vector<1x256xi32>
    %10 = arith.cmpi sge, %8, %9 : vector<1x256xi32>
    %c-1_i32_11 = arith.constant -1 : i32
    %11 = vector.broadcast %c-1_i32_11 : i32 to vector<1x256xi32>
    %12 = arith.addi %3, %11 : vector<1x256xi32>
    %c15_i32 = arith.constant 15 : i32
    %13 = vector.broadcast %c15_i32 : i32 to vector<1x256xi32>
    %14 = arith.cmpi sle, %12, %13 : vector<1x256xi32>
    %15 = arith.andi %10, %14 : vector<1x256xi1>
    %c-1_i32_12 = arith.constant -1 : i32
    %16 = vector.broadcast %c-1_i32_12 : i32 to vector<1x256xi32>
    %17 = arith.addi %4, %16 : vector<1x256xi32>
    %c0_i32_13 = arith.constant 0 : i32
    %18 = vector.broadcast %c0_i32_13 : i32 to vector<1x256xi32>
    %19 = arith.cmpi sge, %17, %18 : vector<1x256xi32>
    %c-1_i32_14 = arith.constant -1 : i32
    %20 = vector.broadcast %c-1_i32_14 : i32 to vector<1x256xi32>
    %21 = arith.addi %4, %20 : vector<1x256xi32>
    %c15_i32_15 = arith.constant 15 : i32
    %22 = vector.broadcast %c15_i32_15 : i32 to vector<1x256xi32>
    %23 = arith.cmpi sle, %21, %22 : vector<1x256xi32>
    %24 = arith.andi %19, %23 : vector<1x256xi1>
    %25 = arith.andi %15, %24 : vector<1x256xi1>
    %c1_16 = arith.constant 1 : index
    %c0_17 = arith.constant 0 : index
    %c0_18 = arith.constant 0 : index
    %26 = vector.load %arg6[%c1_16, %c0_17, %c0_18] : memref<9x4x4xf32, #tpu.memory_space<vmem>>, vector<1x4x4xf32>
    %27 = vector.shape_cast %26 : vector<1x4x4xf32> to vector<4x4xf32>
    %c-1_i32_19 = arith.constant -1 : i32
    %28 = vector.broadcast %c-1_i32_19 : i32 to vector<1x256xi32>
    %29 = arith.addi %3, %28 : vector<1x256xi32>
    %c0_i32_20 = arith.constant 0 : i32
    %30 = vector.broadcast %c0_i32_20 : i32 to vector<1x256xi32>
    %31 = arith.cmpi sge, %29, %30 : vector<1x256xi32>
    %c-1_i32_21 = arith.constant -1 : i32
    %32 = vector.broadcast %c-1_i32_21 : i32 to vector<1x256xi32>
    %33 = arith.addi %3, %32 : vector<1x256xi32>
    %c15_i32_22 = arith.constant 15 : i32
    %34 = vector.broadcast %c15_i32_22 : i32 to vector<1x256xi32>
    %35 = arith.cmpi sle, %33, %34 : vector<1x256xi32>
    %36 = arith.andi %31, %35 : vector<1x256xi1>
    %c0_i32_23 = arith.constant 0 : i32
    %37 = vector.broadcast %c0_i32_23 : i32 to vector<1x256xi32>
    %38 = arith.addi %4, %37 : vector<1x256xi32>
    %c0_i32_24 = arith.constant 0 : i32
    %39 = vector.broadcast %c0_i32_24 : i32 to vector<1x256xi32>
    %40 = arith.cmpi sge, %38, %39 : vector<1x256xi32>
    %c0_i32_25 = arith.constant 0 : i32
    %41 = vector.broadcast %c0_i32_25 : i32 to vector<1x256xi32>
    %42 = arith.addi %4, %41 : vector<1x256xi32>
    %c15_i32_26 = arith.constant 15 : i32
    %43 = vector.broadcast %c15_i32_26 : i32 to vector<1x256xi32>
    %44 = arith.cmpi sle, %42, %43 : vector<1x256xi32>
    %45 = arith.andi %40, %44 : vector<1x256xi1>
    %46 = arith.andi %36, %45 : vector<1x256xi1>
    %c2 = arith.constant 2 : index
    %c0_27 = arith.constant 0 : index
    %c0_28 = arith.constant 0 : index
    %47 = vector.load %arg6[%c2, %c0_27, %c0_28] : memref<9x4x4xf32, #tpu.memory_space<vmem>>, vector<1x4x4xf32>
    %48 = vector.shape_cast %47 : vector<1x4x4xf32> to vector<4x4xf32>
    %c-1_i32_29 = arith.constant -1 : i32
    %49 = vector.broadcast %c-1_i32_29 : i32 to vector<1x256xi32>
    %50 = arith.addi %3, %49 : vector<1x256xi32>
    %c0_i32_30 = arith.constant 0 : i32
    %51 = vector.broadcast %c0_i32_30 : i32 to vector<1x256xi32>
    %52 = arith.cmpi sge, %50, %51 : vector<1x256xi32>
    %c-1_i32_31 = arith.constant -1 : i32
    %53 = vector.broadcast %c-1_i32_31 : i32 to vector<1x256xi32>
    %54 = arith.addi %3, %53 : vector<1x256xi32>
    %c15_i32_32 = arith.constant 15 : i32
    %55 = vector.broadcast %c15_i32_32 : i32 to vector<1x256xi32>
    %56 = arith.cmpi sle, %54, %55 : vector<1x256xi32>
    %57 = arith.andi %52, %56 : vector<1x256xi1>
    %c1_i32 = arith.constant 1 : i32
    %58 = vector.broadcast %c1_i32 : i32 to vector<1x256xi32>
    %59 = arith.addi %4, %58 : vector<1x256xi32>
    %c0_i32_33 = arith.constant 0 : i32
    %60 = vector.broadcast %c0_i32_33 : i32 to vector<1x256xi32>
    %61 = arith.cmpi sge, %59, %60 : vector<1x256xi32>
    %c1_i32_34 = arith.constant 1 : i32
    %62 = vector.broadcast %c1_i32_34 : i32 to vector<1x256xi32>
    %63 = arith.addi %4, %62 : vector<1x256xi32>
    %c15_i32_35 = arith.constant 15 : i32
    %64 = vector.broadcast %c15_i32_35 : i32 to vector<1x256xi32>
    %65 = arith.cmpi sle, %63, %64 : vector<1x256xi32>
    %66 = arith.andi %61, %65 : vector<1x256xi1>
    %67 = arith.andi %57, %66 : vector<1x256xi1>
    %c3 = arith.constant 3 : index
    %c0_36 = arith.constant 0 : index
    %c0_37 = arith.constant 0 : index
    %68 = vector.load %arg6[%c3, %c0_36, %c0_37] : memref<9x4x4xf32, #tpu.memory_space<vmem>>, vector<1x4x4xf32>
    %69 = vector.shape_cast %68 : vector<1x4x4xf32> to vector<4x4xf32>
    %c0_i32_38 = arith.constant 0 : i32
    %70 = vector.broadcast %c0_i32_38 : i32 to vector<1x256xi32>
    %71 = arith.addi %3, %70 : vector<1x256xi32>
    %c0_i32_39 = arith.constant 0 : i32
    %72 = vector.broadcast %c0_i32_39 : i32 to vector<1x256xi32>
    %73 = arith.cmpi sge, %71, %72 : vector<1x256xi32>
    %c0_i32_40 = arith.constant 0 : i32
    %74 = vector.broadcast %c0_i32_40 : i32 to vector<1x256xi32>
    %75 = arith.addi %3, %74 : vector<1x256xi32>
    %c15_i32_41 = arith.constant 15 : i32
    %76 = vector.broadcast %c15_i32_41 : i32 to vector<1x256xi32>
    %77 = arith.cmpi sle, %75, %76 : vector<1x256xi32>
    %78 = arith.andi %73, %77 : vector<1x256xi1>
    %c-1_i32_42 = arith.constant -1 : i32
    %79 = vector.broadcast %c-1_i32_42 : i32 to vector<1x256xi32>
    %80 = arith.addi %4, %79 : vector<1x256xi32>
    %c0_i32_43 = arith.constant 0 : i32
    %81 = vector.broadcast %c0_i32_43 : i32 to vector<1x256xi32>
    %82 = arith.cmpi sge, %80, %81 : vector<1x256xi32>
    %c-1_i32_44 = arith.constant -1 : i32
    %83 = vector.broadcast %c-1_i32_44 : i32 to vector<1x256xi32>
    %84 = arith.addi %4, %83 : vector<1x256xi32>
    %c15_i32_45 = arith.constant 15 : i32
    %85 = vector.broadcast %c15_i32_45 : i32 to vector<1x256xi32>
    %86 = arith.cmpi sle, %84, %85 : vector<1x256xi32>
    %87 = arith.andi %82, %86 : vector<1x256xi1>
    %88 = arith.andi %78, %87 : vector<1x256xi1>
    %c5 = arith.constant 5 : index
    %c0_46 = arith.constant 0 : index
    %c0_47 = arith.constant 0 : index
    %89 = vector.load %arg6[%c5, %c0_46, %c0_47] : memref<9x4x4xf32, #tpu.memory_space<vmem>>, vector<1x4x4xf32>
    %90 = vector.shape_cast %89 : vector<1x4x4xf32> to vector<4x4xf32>
    %c0_i32_48 = arith.constant 0 : i32
    %91 = vector.broadcast %c0_i32_48 : i32 to vector<1x256xi32>
    %92 = arith.addi %3, %91 : vector<1x256xi32>
    %c0_i32_49 = arith.constant 0 : i32
    %93 = vector.broadcast %c0_i32_49 : i32 to vector<1x256xi32>
    %94 = arith.cmpi sge, %92, %93 : vector<1x256xi32>
    %c0_i32_50 = arith.constant 0 : i32
    %95 = vector.broadcast %c0_i32_50 : i32 to vector<1x256xi32>
    %96 = arith.addi %3, %95 : vector<1x256xi32>
    %c15_i32_51 = arith.constant 15 : i32
    %97 = vector.broadcast %c15_i32_51 : i32 to vector<1x256xi32>
    %98 = arith.cmpi sle, %96, %97 : vector<1x256xi32>
    %99 = arith.andi %94, %98 : vector<1x256xi1>
    %c1_i32_52 = arith.constant 1 : i32
    %100 = vector.broadcast %c1_i32_52 : i32 to vector<1x256xi32>
    %101 = arith.addi %4, %100 : vector<1x256xi32>
    %c0_i32_53 = arith.constant 0 : i32
    %102 = vector.broadcast %c0_i32_53 : i32 to vector<1x256xi32>
    %103 = arith.cmpi sge, %101, %102 : vector<1x256xi32>
    %c1_i32_54 = arith.constant 1 : i32
    %104 = vector.broadcast %c1_i32_54 : i32 to vector<1x256xi32>
    %105 = arith.addi %4, %104 : vector<1x256xi32>
    %c15_i32_55 = arith.constant 15 : i32
    %106 = vector.broadcast %c15_i32_55 : i32 to vector<1x256xi32>
    %107 = arith.cmpi sle, %105, %106 : vector<1x256xi32>
    %108 = arith.andi %103, %107 : vector<1x256xi1>
    %109 = arith.andi %99, %108 : vector<1x256xi1>
    %c6 = arith.constant 6 : index
    %c0_56 = arith.constant 0 : index
    %c0_57 = arith.constant 0 : index
    %110 = vector.load %arg6[%c6, %c0_56, %c0_57] : memref<9x4x4xf32, #tpu.memory_space<vmem>>, vector<1x4x4xf32>
    %111 = vector.shape_cast %110 : vector<1x4x4xf32> to vector<4x4xf32>
    %c1_i32_58 = arith.constant 1 : i32
    %112 = vector.broadcast %c1_i32_58 : i32 to vector<1x256xi32>
    %113 = arith.addi %3, %112 : vector<1x256xi32>
    %c0_i32_59 = arith.constant 0 : i32
    %114 = vector.broadcast %c0_i32_59 : i32 to vector<1x256xi32>
    %115 = arith.cmpi sge, %113, %114 : vector<1x256xi32>
    %c1_i32_60 = arith.constant 1 : i32
    %116 = vector.broadcast %c1_i32_60 : i32 to vector<1x256xi32>
    %117 = arith.addi %3, %116 : vector<1x256xi32>
    %c15_i32_61 = arith.constant 15 : i32
    %118 = vector.broadcast %c15_i32_61 : i32 to vector<1x256xi32>
    %119 = arith.cmpi sle, %117, %118 : vector<1x256xi32>
    %120 = arith.andi %115, %119 : vector<1x256xi1>
    %c-1_i32_62 = arith.constant -1 : i32
    %121 = vector.broadcast %c-1_i32_62 : i32 to vector<1x256xi32>
    %122 = arith.addi %4, %121 : vector<1x256xi32>
    %c0_i32_63 = arith.constant 0 : i32
    %123 = vector.broadcast %c0_i32_63 : i32 to vector<1x256xi32>
    %124 = arith.cmpi sge, %122, %123 : vector<1x256xi32>
    %c-1_i32_64 = arith.constant -1 : i32
    %125 = vector.broadcast %c-1_i32_64 : i32 to vector<1x256xi32>
    %126 = arith.addi %4, %125 : vector<1x256xi32>
    %c15_i32_65 = arith.constant 15 : i32
    %127 = vector.broadcast %c15_i32_65 : i32 to vector<1x256xi32>
    %128 = arith.cmpi sle, %126, %127 : vector<1x256xi32>
    %129 = arith.andi %124, %128 : vector<1x256xi1>
    %130 = arith.andi %120, %129 : vector<1x256xi1>
    %c7 = arith.constant 7 : index
    %c0_66 = arith.constant 0 : index
    %c0_67 = arith.constant 0 : index
    %131 = vector.load %arg6[%c7, %c0_66, %c0_67] : memref<9x4x4xf32, #tpu.memory_space<vmem>>, vector<1x4x4xf32>
    %132 = vector.shape_cast %131 : vector<1x4x4xf32> to vector<4x4xf32>
    %c1_i32_68 = arith.constant 1 : i32
    %133 = vector.broadcast %c1_i32_68 : i32 to vector<1x256xi32>
    %134 = arith.addi %3, %133 : vector<1x256xi32>
    %c0_i32_69 = arith.constant 0 : i32
    %135 = vector.broadcast %c0_i32_69 : i32 to vector<1x256xi32>
    %136 = arith.cmpi sge, %134, %135 : vector<1x256xi32>
    %c1_i32_70 = arith.constant 1 : i32
    %137 = vector.broadcast %c1_i32_70 : i32 to vector<1x256xi32>
    %138 = arith.addi %3, %137 : vector<1x256xi32>
    %c15_i32_71 = arith.constant 15 : i32
    %139 = vector.broadcast %c15_i32_71 : i32 to vector<1x256xi32>
    %140 = arith.cmpi sle, %138, %139 : vector<1x256xi32>
    %141 = arith.andi %136, %140 : vector<1x256xi1>
    %c0_i32_72 = arith.constant 0 : i32
    %142 = vector.broadcast %c0_i32_72 : i32 to vector<1x256xi32>
    %143 = arith.addi %4, %142 : vector<1x256xi32>
    %c0_i32_73 = arith.constant 0 : i32
    %144 = vector.broadcast %c0_i32_73 : i32 to vector<1x256xi32>
    %145 = arith.cmpi sge, %143, %144 : vector<1x256xi32>
    %c0_i32_74 = arith.constant 0 : i32
    %146 = vector.broadcast %c0_i32_74 : i32 to vector<1x256xi32>
    %147 = arith.addi %4, %146 : vector<1x256xi32>
    %c15_i32_75 = arith.constant 15 : i32
    %148 = vector.broadcast %c15_i32_75 : i32 to vector<1x256xi32>
    %149 = arith.cmpi sle, %147, %148 : vector<1x256xi32>
    %150 = arith.andi %145, %149 : vector<1x256xi1>
    %151 = arith.andi %141, %150 : vector<1x256xi1>
    %c8 = arith.constant 8 : index
    %c0_76 = arith.constant 0 : index
    %c0_77 = arith.constant 0 : index
    %152 = vector.load %arg6[%c8, %c0_76, %c0_77] : memref<9x4x4xf32, #tpu.memory_space<vmem>>, vector<1x4x4xf32>
    %153 = vector.shape_cast %152 : vector<1x4x4xf32> to vector<4x4xf32>
    %c1_i32_78 = arith.constant 1 : i32
    %154 = vector.broadcast %c1_i32_78 : i32 to vector<1x256xi32>
    %155 = arith.addi %3, %154 : vector<1x256xi32>
    %c0_i32_79 = arith.constant 0 : i32
    %156 = vector.broadcast %c0_i32_79 : i32 to vector<1x256xi32>
    %157 = arith.cmpi sge, %155, %156 : vector<1x256xi32>
    %c1_i32_80 = arith.constant 1 : i32
    %158 = vector.broadcast %c1_i32_80 : i32 to vector<1x256xi32>
    %159 = arith.addi %3, %158 : vector<1x256xi32>
    %c15_i32_81 = arith.constant 15 : i32
    %160 = vector.broadcast %c15_i32_81 : i32 to vector<1x256xi32>
    %161 = arith.cmpi sle, %159, %160 : vector<1x256xi32>
    %162 = arith.andi %157, %161 : vector<1x256xi1>
    %c1_i32_82 = arith.constant 1 : i32
    %163 = vector.broadcast %c1_i32_82 : i32 to vector<1x256xi32>
    %164 = arith.addi %4, %163 : vector<1x256xi32>
    %c0_i32_83 = arith.constant 0 : i32
    %165 = vector.broadcast %c0_i32_83 : i32 to vector<1x256xi32>
    %166 = arith.cmpi sge, %164, %165 : vector<1x256xi32>
    %c1_i32_84 = arith.constant 1 : i32
    %167 = vector.broadcast %c1_i32_84 : i32 to vector<1x256xi32>
    %168 = arith.addi %4, %167 : vector<1x256xi32>
    %c15_i32_85 = arith.constant 15 : i32
    %169 = vector.broadcast %c15_i32_85 : i32 to vector<1x256xi32>
    %170 = arith.cmpi sle, %168, %169 : vector<1x256xi32>
    %171 = arith.andi %166, %170 : vector<1x256xi1>
    %172 = arith.andi %162, %171 : vector<1x256xi1>
    %c0_86 = arith.constant 0 : index
    %c0_87 = arith.constant 0 : index
    %c0_88 = arith.constant 0 : index
    %173 = vector.load %arg8[%c0_86, %c0_87, %c0_88] : memref<9x4x4xf32, #tpu.memory_space<vmem>>, vector<1x4x4xf32>
    %174 = vector.shape_cast %173 : vector<1x4x4xf32> to vector<4x4xf32>
    %c0_89 = arith.constant 0 : index
    %c0_90 = arith.constant 0 : index
    %c0_91 = arith.constant 0 : index
    %175 = vector.load %arg9[%c0_89, %c0_90, %c0_91] : memref<9x4x1xf32, #tpu.memory_space<vmem>>, vector<1x4x1xf32>
    %176 = vector.shape_cast %175 : vector<1x4x1xf32> to vector<4x1xf32>
    %c1_92 = arith.constant 1 : index
    %c0_93 = arith.constant 0 : index
    %c0_94 = arith.constant 0 : index
    %177 = vector.load %arg8[%c1_92, %c0_93, %c0_94] : memref<9x4x4xf32, #tpu.memory_space<vmem>>, vector<1x4x4xf32>
    %178 = vector.shape_cast %177 : vector<1x4x4xf32> to vector<4x4xf32>
    %c1_95 = arith.constant 1 : index
    %c0_96 = arith.constant 0 : index
    %c0_97 = arith.constant 0 : index
    %179 = vector.load %arg9[%c1_95, %c0_96, %c0_97] : memref<9x4x1xf32, #tpu.memory_space<vmem>>, vector<1x4x1xf32>
    %180 = vector.shape_cast %179 : vector<1x4x1xf32> to vector<4x1xf32>
    %c2_98 = arith.constant 2 : index
    %c0_99 = arith.constant 0 : index
    %c0_100 = arith.constant 0 : index
    %181 = vector.load %arg8[%c2_98, %c0_99, %c0_100] : memref<9x4x4xf32, #tpu.memory_space<vmem>>, vector<1x4x4xf32>
    %182 = vector.shape_cast %181 : vector<1x4x4xf32> to vector<4x4xf32>
    %c2_101 = arith.constant 2 : index
    %c0_102 = arith.constant 0 : index
    %c0_103 = arith.constant 0 : index
    %183 = vector.load %arg9[%c2_101, %c0_102, %c0_103] : memref<9x4x1xf32, #tpu.memory_space<vmem>>, vector<1x4x1xf32>
    %184 = vector.shape_cast %183 : vector<1x4x1xf32> to vector<4x1xf32>
    %c3_104 = arith.constant 3 : index
    %c0_105 = arith.constant 0 : index
    %c0_106 = arith.constant 0 : index
    %185 = vector.load %arg8[%c3_104, %c0_105, %c0_106] : memref<9x4x4xf32, #tpu.memory_space<vmem>>, vector<1x4x4xf32>
    %186 = vector.shape_cast %185 : vector<1x4x4xf32> to vector<4x4xf32>
    %c3_107 = arith.constant 3 : index
    %c0_108 = arith.constant 0 : index
    %c0_109 = arith.constant 0 : index
    %187 = vector.load %arg9[%c3_107, %c0_108, %c0_109] : memref<9x4x1xf32, #tpu.memory_space<vmem>>, vector<1x4x1xf32>
    %188 = vector.shape_cast %187 : vector<1x4x1xf32> to vector<4x1xf32>
    %c5_110 = arith.constant 5 : index
    %c0_111 = arith.constant 0 : index
    %c0_112 = arith.constant 0 : index
    %189 = vector.load %arg8[%c5_110, %c0_111, %c0_112] : memref<9x4x4xf32, #tpu.memory_space<vmem>>, vector<1x4x4xf32>
    %190 = vector.shape_cast %189 : vector<1x4x4xf32> to vector<4x4xf32>
    %c5_113 = arith.constant 5 : index
    %c0_114 = arith.constant 0 : index
    %c0_115 = arith.constant 0 : index
    %191 = vector.load %arg9[%c5_113, %c0_114, %c0_115] : memref<9x4x1xf32, #tpu.memory_space<vmem>>, vector<1x4x1xf32>
    %192 = vector.shape_cast %191 : vector<1x4x1xf32> to vector<4x1xf32>
    %c6_116 = arith.constant 6 : index
    %c0_117 = arith.constant 0 : index
    %c0_118 = arith.constant 0 : index
    %193 = vector.load %arg8[%c6_116, %c0_117, %c0_118] : memref<9x4x4xf32, #tpu.memory_space<vmem>>, vector<1x4x4xf32>
    %194 = vector.shape_cast %193 : vector<1x4x4xf32> to vector<4x4xf32>
    %c6_119 = arith.constant 6 : index
    %c0_120 = arith.constant 0 : index
    %c0_121 = arith.constant 0 : index
    %195 = vector.load %arg9[%c6_119, %c0_120, %c0_121] : memref<9x4x1xf32, #tpu.memory_space<vmem>>, vector<1x4x1xf32>
    %196 = vector.shape_cast %195 : vector<1x4x1xf32> to vector<4x1xf32>
    %c7_122 = arith.constant 7 : index
    %c0_123 = arith.constant 0 : index
    %c0_124 = arith.constant 0 : index
    %197 = vector.load %arg8[%c7_122, %c0_123, %c0_124] : memref<9x4x4xf32, #tpu.memory_space<vmem>>, vector<1x4x4xf32>
    %198 = vector.shape_cast %197 : vector<1x4x4xf32> to vector<4x4xf32>
    %c7_125 = arith.constant 7 : index
    %c0_126 = arith.constant 0 : index
    %c0_127 = arith.constant 0 : index
    %199 = vector.load %arg9[%c7_125, %c0_126, %c0_127] : memref<9x4x1xf32, #tpu.memory_space<vmem>>, vector<1x4x1xf32>
    %200 = vector.shape_cast %199 : vector<1x4x1xf32> to vector<4x1xf32>
    %c8_128 = arith.constant 8 : index
    %c0_129 = arith.constant 0 : index
    %c0_130 = arith.constant 0 : index
    %201 = vector.load %arg8[%c8_128, %c0_129, %c0_130] : memref<9x4x4xf32, #tpu.memory_space<vmem>>, vector<1x4x4xf32>
    %202 = vector.shape_cast %201 : vector<1x4x4xf32> to vector<4x4xf32>
    %c8_131 = arith.constant 8 : index
    %c0_132 = arith.constant 0 : index
    %c0_133 = arith.constant 0 : index
    %203 = vector.load %arg9[%c8_131, %c0_132, %c0_133] : memref<9x4x1xf32, #tpu.memory_space<vmem>>, vector<1x4x1xf32>
    %204 = vector.shape_cast %203 : vector<1x4x1xf32> to vector<4x1xf32>
    %c0_134 = arith.constant 0 : index
    %c0_135 = arith.constant 0 : index
    %c0_136 = arith.constant 0 : index
    %205 = vector.load %arg11[%c0_134, %c0_135, %c0_136] : memref<9x4x4xf32, #tpu.memory_space<vmem>>, vector<1x4x4xf32>
    %206 = vector.shape_cast %205 : vector<1x4x4xf32> to vector<4x4xf32>
    %c0_137 = arith.constant 0 : index
    %c0_138 = arith.constant 0 : index
    %c0_139 = arith.constant 0 : index
    %207 = vector.load %arg12[%c0_137, %c0_138, %c0_139] : memref<9x4x1xf32, #tpu.memory_space<vmem>>, vector<1x4x1xf32>
    %208 = vector.shape_cast %207 : vector<1x4x1xf32> to vector<4x1xf32>
    %c1_140 = arith.constant 1 : index
    %c0_141 = arith.constant 0 : index
    %c0_142 = arith.constant 0 : index
    %209 = vector.load %arg11[%c1_140, %c0_141, %c0_142] : memref<9x4x4xf32, #tpu.memory_space<vmem>>, vector<1x4x4xf32>
    %210 = vector.shape_cast %209 : vector<1x4x4xf32> to vector<4x4xf32>
    %c1_143 = arith.constant 1 : index
    %c0_144 = arith.constant 0 : index
    %c0_145 = arith.constant 0 : index
    %211 = vector.load %arg12[%c1_143, %c0_144, %c0_145] : memref<9x4x1xf32, #tpu.memory_space<vmem>>, vector<1x4x1xf32>
    %212 = vector.shape_cast %211 : vector<1x4x1xf32> to vector<4x1xf32>
    %c2_146 = arith.constant 2 : index
    %c0_147 = arith.constant 0 : index
    %c0_148 = arith.constant 0 : index
    %213 = vector.load %arg11[%c2_146, %c0_147, %c0_148] : memref<9x4x4xf32, #tpu.memory_space<vmem>>, vector<1x4x4xf32>
    %214 = vector.shape_cast %213 : vector<1x4x4xf32> to vector<4x4xf32>
    %c2_149 = arith.constant 2 : index
    %c0_150 = arith.constant 0 : index
    %c0_151 = arith.constant 0 : index
    %215 = vector.load %arg12[%c2_149, %c0_150, %c0_151] : memref<9x4x1xf32, #tpu.memory_space<vmem>>, vector<1x4x1xf32>
    %216 = vector.shape_cast %215 : vector<1x4x1xf32> to vector<4x1xf32>
    %c3_152 = arith.constant 3 : index
    %c0_153 = arith.constant 0 : index
    %c0_154 = arith.constant 0 : index
    %217 = vector.load %arg11[%c3_152, %c0_153, %c0_154] : memref<9x4x4xf32, #tpu.memory_space<vmem>>, vector<1x4x4xf32>
    %218 = vector.shape_cast %217 : vector<1x4x4xf32> to vector<4x4xf32>
    %c3_155 = arith.constant 3 : index
    %c0_156 = arith.constant 0 : index
    %c0_157 = arith.constant 0 : index
    %219 = vector.load %arg12[%c3_155, %c0_156, %c0_157] : memref<9x4x1xf32, #tpu.memory_space<vmem>>, vector<1x4x1xf32>
    %220 = vector.shape_cast %219 : vector<1x4x1xf32> to vector<4x1xf32>
    %c5_158 = arith.constant 5 : index
    %c0_159 = arith.constant 0 : index
    %c0_160 = arith.constant 0 : index
    %221 = vector.load %arg11[%c5_158, %c0_159, %c0_160] : memref<9x4x4xf32, #tpu.memory_space<vmem>>, vector<1x4x4xf32>
    %222 = vector.shape_cast %221 : vector<1x4x4xf32> to vector<4x4xf32>
    %c5_161 = arith.constant 5 : index
    %c0_162 = arith.constant 0 : index
    %c0_163 = arith.constant 0 : index
    %223 = vector.load %arg12[%c5_161, %c0_162, %c0_163] : memref<9x4x1xf32, #tpu.memory_space<vmem>>, vector<1x4x1xf32>
    %224 = vector.shape_cast %223 : vector<1x4x1xf32> to vector<4x1xf32>
    %c6_164 = arith.constant 6 : index
    %c0_165 = arith.constant 0 : index
    %c0_166 = arith.constant 0 : index
    %225 = vector.load %arg11[%c6_164, %c0_165, %c0_166] : memref<9x4x4xf32, #tpu.memory_space<vmem>>, vector<1x4x4xf32>
    %226 = vector.shape_cast %225 : vector<1x4x4xf32> to vector<4x4xf32>
    %c6_167 = arith.constant 6 : index
    %c0_168 = arith.constant 0 : index
    %c0_169 = arith.constant 0 : index
    %227 = vector.load %arg12[%c6_167, %c0_168, %c0_169] : memref<9x4x1xf32, #tpu.memory_space<vmem>>, vector<1x4x1xf32>
    %228 = vector.shape_cast %227 : vector<1x4x1xf32> to vector<4x1xf32>
    %c7_170 = arith.constant 7 : index
    %c0_171 = arith.constant 0 : index
    %c0_172 = arith.constant 0 : index
    %229 = vector.load %arg11[%c7_170, %c0_171, %c0_172] : memref<9x4x4xf32, #tpu.memory_space<vmem>>, vector<1x4x4xf32>
    %230 = vector.shape_cast %229 : vector<1x4x4xf32> to vector<4x4xf32>
    %c7_173 = arith.constant 7 : index
    %c0_174 = arith.constant 0 : index
    %c0_175 = arith.constant 0 : index
    %231 = vector.load %arg12[%c7_173, %c0_174, %c0_175] : memref<9x4x1xf32, #tpu.memory_space<vmem>>, vector<1x4x1xf32>
    %232 = vector.shape_cast %231 : vector<1x4x1xf32> to vector<4x1xf32>
    %c8_176 = arith.constant 8 : index
    %c0_177 = arith.constant 0 : index
    %c0_178 = arith.constant 0 : index
    %233 = vector.load %arg11[%c8_176, %c0_177, %c0_178] : memref<9x4x4xf32, #tpu.memory_space<vmem>>, vector<1x4x4xf32>
    %234 = vector.shape_cast %233 : vector<1x4x4xf32> to vector<4x4xf32>
    %c8_179 = arith.constant 8 : index
    %c0_180 = arith.constant 0 : index
    %c0_181 = arith.constant 0 : index
    %235 = vector.load %arg12[%c8_179, %c0_180, %c0_181] : memref<9x4x1xf32, #tpu.memory_space<vmem>>, vector<1x4x1xf32>
    %236 = vector.shape_cast %235 : vector<1x4x1xf32> to vector<4x1xf32>
    %c0_182 = arith.constant 0 : index
    %c0_183 = arith.constant 0 : index
    %c0_184 = arith.constant 0 : index
    %237 = vector.load %arg1[%c0_182, %c0_183, %c0_184] : memref<2x1x256xi32, #tpu.memory_space<vmem>>, vector<1x1x256xi32>
    %238 = vector.shape_cast %237 : vector<1x1x256xi32> to vector<1x256xi32>
    %239 = vector.broadcast %2 : vector<3x1xi32> to vector<3x256xi32>
    %240 = vector.broadcast %238 : vector<1x256xi32> to vector<3x256xi32>
    %241 = arith.cmpi eq, %239, %240 : vector<3x256xi32>
    %242 = arith.extui %241 : vector<3x256xi1> to vector<3x256xi32>
    %243 = arith.sitofp %242 : vector<3x256xi32> to vector<3x256xf32>
    %cst = arith.constant dense<0.000000e+00> : vector<4x256xf32>
    %244 = tpu.matmul %0, %243, %cst {dimension_numbers = #tpu.dot_dimension_numbers<[1], [0], [0], [1], [0, 0, 1, 1], [], []>} : vector<4x3xf32>, vector<3x256xf32>, vector<4x256xf32> -> vector<4x256xf32>
    %245 = vector.extract_strided_slice %244 {offsets = [0, 255], sizes = [4, 1], strides = [1, 1]} : vector<4x256xf32> to vector<4x1xf32>
    %246 = vector.extract_strided_slice %244 {offsets = [0, 0], sizes = [4, 255], strides = [1, 1]} : vector<4x256xf32> to vector<4x255xf32>
    %247 = tpu.concatenate %245, %246 in 1 : vector<4x1xf32>, vector<4x255xf32> -> vector<4x256xf32>
    %248 = vector.extract_strided_slice %244 {offsets = [0, 15], sizes = [4, 241], strides = [1, 1]} : vector<4x256xf32> to vector<4x241xf32>
    %249 = vector.extract_strided_slice %244 {offsets = [0, 0], sizes = [4, 15], strides = [1, 1]} : vector<4x256xf32> to vector<4x15xf32>
    %250 = tpu.concatenate %248, %249 in 1 : vector<4x241xf32>, vector<4x15xf32> -> vector<4x256xf32>
    %c1_i32_185 = arith.constant 1 : i32
    %251 = vector.broadcast %c1_i32_185 : i32 to vector<1x256xi32>
    %252 = arith.cmpi slt, %4, %251 : vector<1x256xi32>
    %253 = vector.shape_cast %252 : vector<1x256xi1> to vector<1x256xi1>
    %254 = vector.broadcast %253 : vector<1x256xi1> to vector<4x256xi1>
    %255 = arith.select %254, %250, %247 : vector<4x256xi1>, vector<4x256xf32>
    %256 = vector.extract_strided_slice %255 {offsets = [0, 240], sizes = [4, 16], strides = [1, 1]} : vector<4x256xf32> to vector<4x16xf32>
    %257 = vector.extract_strided_slice %255 {offsets = [0, 0], sizes = [4, 240], strides = [1, 1]} : vector<4x256xf32> to vector<4x240xf32>
    %258 = tpu.concatenate %256, %257 in 1 : vector<4x16xf32>, vector<4x240xf32> -> vector<4x256xf32>
    %259 = vector.extract_strided_slice %255 {offsets = [0, 16], sizes = [4, 240], strides = [1, 1]} : vector<4x256xf32> to vector<4x240xf32>
    %260 = vector.extract_strided_slice %255 {offsets = [0, 0], sizes = [4, 16], strides = [1, 1]} : vector<4x256xf32> to vector<4x16xf32>
    %261 = tpu.concatenate %259, %260 in 1 : vector<4x240xf32>, vector<4x16xf32> -> vector<4x256xf32>
    %262 = vector.extract_strided_slice %244 {offsets = [0, 240], sizes = [4, 16], strides = [1, 1]} : vector<4x256xf32> to vector<4x16xf32>
    %263 = vector.extract_strided_slice %244 {offsets = [0, 0], sizes = [4, 240], strides = [1, 1]} : vector<4x256xf32> to vector<4x240xf32>
    %264 = tpu.concatenate %262, %263 in 1 : vector<4x16xf32>, vector<4x240xf32> -> vector<4x256xf32>
    %265 = vector.extract_strided_slice %244 {offsets = [0, 16], sizes = [4, 240], strides = [1, 1]} : vector<4x256xf32> to vector<4x240xf32>
    %266 = vector.extract_strided_slice %244 {offsets = [0, 0], sizes = [4, 16], strides = [1, 1]} : vector<4x256xf32> to vector<4x16xf32>
    %267 = tpu.concatenate %265, %266 in 1 : vector<4x240xf32>, vector<4x16xf32> -> vector<4x256xf32>
    %268 = vector.extract_strided_slice %244 {offsets = [0, 1], sizes = [4, 255], strides = [1, 1]} : vector<4x256xf32> to vector<4x255xf32>
    %269 = vector.extract_strided_slice %244 {offsets = [0, 0], sizes = [4, 1], strides = [1, 1]} : vector<4x256xf32> to vector<4x1xf32>
    %270 = tpu.concatenate %268, %269 in 1 : vector<4x255xf32>, vector<4x1xf32> -> vector<4x256xf32>
    %271 = vector.extract_strided_slice %244 {offsets = [0, 241], sizes = [4, 15], strides = [1, 1]} : vector<4x256xf32> to vector<4x15xf32>
    %272 = vector.extract_strided_slice %244 {offsets = [0, 0], sizes = [4, 241], strides = [1, 1]} : vector<4x256xf32> to vector<4x241xf32>
    %273 = tpu.concatenate %271, %272 in 1 : vector<4x15xf32>, vector<4x241xf32> -> vector<4x256xf32>
    %c15_i32_186 = arith.constant 15 : i32
    %274 = vector.broadcast %c15_i32_186 : i32 to vector<1x256xi32>
    %275 = arith.cmpi sge, %4, %274 : vector<1x256xi32>
    %276 = vector.shape_cast %275 : vector<1x256xi1> to vector<1x256xi1>
    %277 = vector.broadcast %276 : vector<1x256xi1> to vector<4x256xi1>
    %278 = arith.select %277, %273, %270 : vector<4x256xi1>, vector<4x256xf32>
    %279 = vector.extract_strided_slice %278 {offsets = [0, 240], sizes = [4, 16], strides = [1, 1]} : vector<4x256xf32> to vector<4x16xf32>
    %280 = vector.extract_strided_slice %278 {offsets = [0, 0], sizes = [4, 240], strides = [1, 1]} : vector<4x256xf32> to vector<4x240xf32>
    %281 = tpu.concatenate %279, %280 in 1 : vector<4x16xf32>, vector<4x240xf32> -> vector<4x256xf32>
    %282 = vector.extract_strided_slice %278 {offsets = [0, 16], sizes = [4, 240], strides = [1, 1]} : vector<4x256xf32> to vector<4x240xf32>
    %283 = vector.extract_strided_slice %278 {offsets = [0, 0], sizes = [4, 16], strides = [1, 1]} : vector<4x256xf32> to vector<4x16xf32>
    %284 = tpu.concatenate %282, %283 in 1 : vector<4x240xf32>, vector<4x16xf32> -> vector<4x256xf32>
    %cst_187 = arith.constant 0.000000e+00 : f32
    %285 = vector.broadcast %cst_187 : f32 to vector<4x256xf32>
    %cst_188 = arith.constant 0.000000e+00 : f32
    %286 = vector.shape_cast %25 : vector<1x256xi1> to vector<1x256xi1>
    %287 = vector.broadcast %286 : vector<1x256xi1> to vector<4x256xi1>
    %288 = vector.broadcast %cst_188 : f32 to vector<4x256xf32>
    %289 = arith.select %287, %258, %288 : vector<4x256xi1>, vector<4x256xf32>
    %cst_189 = arith.constant dense<0.000000e+00> : vector<4x256xf32>
    %290 = tpu.matmul %6, %289, %cst_189 {dimension_numbers = #tpu.dot_dimension_numbers<[1], [0], [0], [1], [0, 0, 1, 1], [], []>} : vector<4x4xf32>, vector<4x256xf32>, vector<4x256xf32> -> vector<4x256xf32>
    %291 = arith.addf %285, %290 : vector<4x256xf32>
    %cst_190 = arith.constant 0.000000e+00 : f32
    %292 = vector.shape_cast %46 : vector<1x256xi1> to vector<1x256xi1>
    %293 = vector.broadcast %292 : vector<1x256xi1> to vector<4x256xi1>
    %294 = vector.broadcast %cst_190 : f32 to vector<4x256xf32>
    %295 = arith.select %293, %264, %294 : vector<4x256xi1>, vector<4x256xf32>
    %cst_191 = arith.constant dense<0.000000e+00> : vector<4x256xf32>
    %296 = tpu.matmul %27, %295, %cst_191 {dimension_numbers = #tpu.dot_dimension_numbers<[1], [0], [0], [1], [0, 0, 1, 1], [], []>} : vector<4x4xf32>, vector<4x256xf32>, vector<4x256xf32> -> vector<4x256xf32>
    %297 = arith.addf %291, %296 : vector<4x256xf32>
    %cst_192 = arith.constant 0.000000e+00 : f32
    %298 = vector.shape_cast %67 : vector<1x256xi1> to vector<1x256xi1>
    %299 = vector.broadcast %298 : vector<1x256xi1> to vector<4x256xi1>
    %300 = vector.broadcast %cst_192 : f32 to vector<4x256xf32>
    %301 = arith.select %299, %281, %300 : vector<4x256xi1>, vector<4x256xf32>
    %cst_193 = arith.constant dense<0.000000e+00> : vector<4x256xf32>
    %302 = tpu.matmul %48, %301, %cst_193 {dimension_numbers = #tpu.dot_dimension_numbers<[1], [0], [0], [1], [0, 0, 1, 1], [], []>} : vector<4x4xf32>, vector<4x256xf32>, vector<4x256xf32> -> vector<4x256xf32>
    %303 = arith.addf %297, %302 : vector<4x256xf32>
    %cst_194 = arith.constant 0.000000e+00 : f32
    %304 = vector.shape_cast %88 : vector<1x256xi1> to vector<1x256xi1>
    %305 = vector.broadcast %304 : vector<1x256xi1> to vector<4x256xi1>
    %306 = vector.broadcast %cst_194 : f32 to vector<4x256xf32>
    %307 = arith.select %305, %255, %306 : vector<4x256xi1>, vector<4x256xf32>
    %cst_195 = arith.constant dense<0.000000e+00> : vector<4x256xf32>
    %308 = tpu.matmul %69, %307, %cst_195 {dimension_numbers = #tpu.dot_dimension_numbers<[1], [0], [0], [1], [0, 0, 1, 1], [], []>} : vector<4x4xf32>, vector<4x256xf32>, vector<4x256xf32> -> vector<4x256xf32>
    %309 = arith.addf %303, %308 : vector<4x256xf32>
    %cst_196 = arith.constant 0.000000e+00 : f32
    %310 = vector.shape_cast %109 : vector<1x256xi1> to vector<1x256xi1>
    %311 = vector.broadcast %310 : vector<1x256xi1> to vector<4x256xi1>
    %312 = vector.broadcast %cst_196 : f32 to vector<4x256xf32>
    %313 = arith.select %311, %278, %312 : vector<4x256xi1>, vector<4x256xf32>
    %cst_197 = arith.constant dense<0.000000e+00> : vector<4x256xf32>
    %314 = tpu.matmul %90, %313, %cst_197 {dimension_numbers = #tpu.dot_dimension_numbers<[1], [0], [0], [1], [0, 0, 1, 1], [], []>} : vector<4x4xf32>, vector<4x256xf32>, vector<4x256xf32> -> vector<4x256xf32>
    %315 = arith.addf %309, %314 : vector<4x256xf32>
    %cst_198 = arith.constant 0.000000e+00 : f32
    %316 = vector.shape_cast %130 : vector<1x256xi1> to vector<1x256xi1>
    %317 = vector.broadcast %316 : vector<1x256xi1> to vector<4x256xi1>
    %318 = vector.broadcast %cst_198 : f32 to vector<4x256xf32>
    %319 = arith.select %317, %261, %318 : vector<4x256xi1>, vector<4x256xf32>
    %cst_199 = arith.constant dense<0.000000e+00> : vector<4x256xf32>
    %320 = tpu.matmul %111, %319, %cst_199 {dimension_numbers = #tpu.dot_dimension_numbers<[1], [0], [0], [1], [0, 0, 1, 1], [], []>} : vector<4x4xf32>, vector<4x256xf32>, vector<4x256xf32> -> vector<4x256xf32>
    %321 = arith.addf %315, %320 : vector<4x256xf32>
    %cst_200 = arith.constant 0.000000e+00 : f32
    %322 = vector.shape_cast %151 : vector<1x256xi1> to vector<1x256xi1>
    %323 = vector.broadcast %322 : vector<1x256xi1> to vector<4x256xi1>
    %324 = vector.broadcast %cst_200 : f32 to vector<4x256xf32>
    %325 = arith.select %323, %267, %324 : vector<4x256xi1>, vector<4x256xf32>
    %cst_201 = arith.constant dense<0.000000e+00> : vector<4x256xf32>
    %326 = tpu.matmul %132, %325, %cst_201 {dimension_numbers = #tpu.dot_dimension_numbers<[1], [0], [0], [1], [0, 0, 1, 1], [], []>} : vector<4x4xf32>, vector<4x256xf32>, vector<4x256xf32> -> vector<4x256xf32>
    %327 = arith.addf %321, %326 : vector<4x256xf32>
    %cst_202 = arith.constant 0.000000e+00 : f32
    %328 = vector.shape_cast %172 : vector<1x256xi1> to vector<1x256xi1>
    %329 = vector.broadcast %328 : vector<1x256xi1> to vector<4x256xi1>
    %330 = vector.broadcast %cst_202 : f32 to vector<4x256xf32>
    %331 = arith.select %329, %284, %330 : vector<4x256xi1>, vector<4x256xf32>
    %cst_203 = arith.constant dense<0.000000e+00> : vector<4x256xf32>
    %332 = tpu.matmul %153, %331, %cst_203 {dimension_numbers = #tpu.dot_dimension_numbers<[1], [0], [0], [1], [0, 0, 1, 1], [], []>} : vector<4x4xf32>, vector<4x256xf32>, vector<4x256xf32> -> vector<4x256xf32>
    %333 = arith.addf %327, %332 : vector<4x256xf32>
    %c0_204 = arith.constant 0 : index
    %c0_205 = arith.constant 0 : index
    %c0_206 = arith.constant 0 : index
    %334 = vector.load %arg2[%c0_204, %c0_205, %c0_206] : memref<2x1x1xf32, #tpu.memory_space<vmem>>, vector<1x1x1xf32>
    %335 = vector.shape_cast %334 : vector<1x1x1xf32> to vector<1x1xf32>
    %336 = vector.broadcast %335 : vector<1x1xf32> to vector<4x256xf32>
    %337 = arith.mulf %333, %336 : vector<4x256xf32>
    %cst_207 = arith.constant 0.000000e+00 : f32
    %338 = vector.broadcast %cst_207 : f32 to vector<4x256xf32>
    %339 = arith.subf %338, %337 : vector<4x256xf32>
    %340 = math.exp %339 : vector<4x256xf32>
    %cst_208 = arith.constant 1.000000e+00 : f32
    %341 = vector.broadcast %cst_208 : f32 to vector<4x256xf32>
    %342 = arith.addf %341, %340 : vector<4x256xf32>
    %cst_209 = arith.constant 1.000000e+00 : f32
    %343 = vector.broadcast %cst_209 : f32 to vector<4x256xf32>
    %344 = arith.divf %343, %342 : vector<4x256xf32>
    %345 = arith.mulf %337, %344 : vector<4x256xf32>
    %cst_210 = arith.constant 0.000000e+00 : f32
    %346 = vector.broadcast %cst_210 : f32 to vector<4x256xf32>
    %cst_211 = arith.constant dense<0.000000e+00> : vector<4x256xf32>
    %347 = tpu.matmul %174, %345, %cst_211 {dimension_numbers = #tpu.dot_dimension_numbers<[1], [0], [0], [1], [0, 0, 1, 1], [], []>} : vector<4x4xf32>, vector<4x256xf32>, vector<4x256xf32> -> vector<4x256xf32>
    %348 = vector.broadcast %176 : vector<4x1xf32> to vector<4x256xf32>
    %349 = arith.addf %347, %348 : vector<4x256xf32>
    %cst_212 = arith.constant 0.000000e+00 : f32
    %350 = vector.broadcast %cst_212 : f32 to vector<4x256xf32>
    %351 = arith.subf %350, %349 : vector<4x256xf32>
    %352 = math.exp %351 : vector<4x256xf32>
    %cst_213 = arith.constant 1.000000e+00 : f32
    %353 = vector.broadcast %cst_213 : f32 to vector<4x256xf32>
    %354 = arith.addf %353, %352 : vector<4x256xf32>
    %cst_214 = arith.constant 1.000000e+00 : f32
    %355 = vector.broadcast %cst_214 : f32 to vector<4x256xf32>
    %356 = arith.divf %355, %354 : vector<4x256xf32>
    %357 = arith.mulf %349, %356 : vector<4x256xf32>
    %c0_215 = arith.constant 0 : index
    %c0_216 = arith.constant 0 : index
    %c0_217 = arith.constant 0 : index
    %c0_218 = arith.constant 0 : index
    %358 = vector.load %arg10[%c0_215, %c0_216, %c0_217, %c0_218] : memref<2x9x4x1xf32, #tpu.memory_space<vmem>>, vector<1x1x4x1xf32>
    %359 = vector.shape_cast %358 : vector<1x1x4x1xf32> to vector<4x1xf32>
    %360 = vector.broadcast %359 : vector<4x1xf32> to vector<4x256xf32>
    %361 = arith.addf %357, %360 : vector<4x256xf32>
    %362 = arith.mulf %361, %258 : vector<4x256xf32>
    %363 = arith.addf %346, %362 : vector<4x256xf32>
    %cst_219 = arith.constant dense<0.000000e+00> : vector<4x256xf32>
    %364 = tpu.matmul %178, %345, %cst_219 {dimension_numbers = #tpu.dot_dimension_numbers<[1], [0], [0], [1], [0, 0, 1, 1], [], []>} : vector<4x4xf32>, vector<4x256xf32>, vector<4x256xf32> -> vector<4x256xf32>
    %365 = vector.broadcast %180 : vector<4x1xf32> to vector<4x256xf32>
    %366 = arith.addf %364, %365 : vector<4x256xf32>
    %cst_220 = arith.constant 0.000000e+00 : f32
    %367 = vector.broadcast %cst_220 : f32 to vector<4x256xf32>
    %368 = arith.subf %367, %366 : vector<4x256xf32>
    %369 = math.exp %368 : vector<4x256xf32>
    %cst_221 = arith.constant 1.000000e+00 : f32
    %370 = vector.broadcast %cst_221 : f32 to vector<4x256xf32>
    %371 = arith.addf %370, %369 : vector<4x256xf32>
    %cst_222 = arith.constant 1.000000e+00 : f32
    %372 = vector.broadcast %cst_222 : f32 to vector<4x256xf32>
    %373 = arith.divf %372, %371 : vector<4x256xf32>
    %374 = arith.mulf %366, %373 : vector<4x256xf32>
    %c0_223 = arith.constant 0 : index
    %c1_224 = arith.constant 1 : index
    %c0_225 = arith.constant 0 : index
    %c0_226 = arith.constant 0 : index
    %375 = vector.load %arg10[%c0_223, %c1_224, %c0_225, %c0_226] : memref<2x9x4x1xf32, #tpu.memory_space<vmem>>, vector<1x1x4x1xf32>
    %376 = vector.shape_cast %375 : vector<1x1x4x1xf32> to vector<4x1xf32>
    %377 = vector.broadcast %376 : vector<4x1xf32> to vector<4x256xf32>
    %378 = arith.addf %374, %377 : vector<4x256xf32>
    %379 = arith.mulf %378, %264 : vector<4x256xf32>
    %380 = arith.addf %363, %379 : vector<4x256xf32>
    %cst_227 = arith.constant dense<0.000000e+00> : vector<4x256xf32>
    %381 = tpu.matmul %182, %345, %cst_227 {dimension_numbers = #tpu.dot_dimension_numbers<[1], [0], [0], [1], [0, 0, 1, 1], [], []>} : vector<4x4xf32>, vector<4x256xf32>, vector<4x256xf32> -> vector<4x256xf32>
    %382 = vector.broadcast %184 : vector<4x1xf32> to vector<4x256xf32>
    %383 = arith.addf %381, %382 : vector<4x256xf32>
    %cst_228 = arith.constant 0.000000e+00 : f32
    %384 = vector.broadcast %cst_228 : f32 to vector<4x256xf32>
    %385 = arith.subf %384, %383 : vector<4x256xf32>
    %386 = math.exp %385 : vector<4x256xf32>
    %cst_229 = arith.constant 1.000000e+00 : f32
    %387 = vector.broadcast %cst_229 : f32 to vector<4x256xf32>
    %388 = arith.addf %387, %386 : vector<4x256xf32>
    %cst_230 = arith.constant 1.000000e+00 : f32
    %389 = vector.broadcast %cst_230 : f32 to vector<4x256xf32>
    %390 = arith.divf %389, %388 : vector<4x256xf32>
    %391 = arith.mulf %383, %390 : vector<4x256xf32>
    %c0_231 = arith.constant 0 : index
    %c2_232 = arith.constant 2 : index
    %c0_233 = arith.constant 0 : index
    %c0_234 = arith.constant 0 : index
    %392 = vector.load %arg10[%c0_231, %c2_232, %c0_233, %c0_234] : memref<2x9x4x1xf32, #tpu.memory_space<vmem>>, vector<1x1x4x1xf32>
    %393 = vector.shape_cast %392 : vector<1x1x4x1xf32> to vector<4x1xf32>
    %394 = vector.broadcast %393 : vector<4x1xf32> to vector<4x256xf32>
    %395 = arith.addf %391, %394 : vector<4x256xf32>
    %396 = arith.mulf %395, %281 : vector<4x256xf32>
    %397 = arith.addf %380, %396 : vector<4x256xf32>
    %cst_235 = arith.constant dense<0.000000e+00> : vector<4x256xf32>
    %398 = tpu.matmul %186, %345, %cst_235 {dimension_numbers = #tpu.dot_dimension_numbers<[1], [0], [0], [1], [0, 0, 1, 1], [], []>} : vector<4x4xf32>, vector<4x256xf32>, vector<4x256xf32> -> vector<4x256xf32>
    %399 = vector.broadcast %188 : vector<4x1xf32> to vector<4x256xf32>
    %400 = arith.addf %398, %399 : vector<4x256xf32>
    %cst_236 = arith.constant 0.000000e+00 : f32
    %401 = vector.broadcast %cst_236 : f32 to vector<4x256xf32>
    %402 = arith.subf %401, %400 : vector<4x256xf32>
    %403 = math.exp %402 : vector<4x256xf32>
    %cst_237 = arith.constant 1.000000e+00 : f32
    %404 = vector.broadcast %cst_237 : f32 to vector<4x256xf32>
    %405 = arith.addf %404, %403 : vector<4x256xf32>
    %cst_238 = arith.constant 1.000000e+00 : f32
    %406 = vector.broadcast %cst_238 : f32 to vector<4x256xf32>
    %407 = arith.divf %406, %405 : vector<4x256xf32>
    %408 = arith.mulf %400, %407 : vector<4x256xf32>
    %c0_239 = arith.constant 0 : index
    %c3_240 = arith.constant 3 : index
    %c0_241 = arith.constant 0 : index
    %c0_242 = arith.constant 0 : index
    %409 = vector.load %arg10[%c0_239, %c3_240, %c0_241, %c0_242] : memref<2x9x4x1xf32, #tpu.memory_space<vmem>>, vector<1x1x4x1xf32>
    %410 = vector.shape_cast %409 : vector<1x1x4x1xf32> to vector<4x1xf32>
    %411 = vector.broadcast %410 : vector<4x1xf32> to vector<4x256xf32>
    %412 = arith.addf %408, %411 : vector<4x256xf32>
    %413 = arith.mulf %412, %255 : vector<4x256xf32>
    %414 = arith.addf %397, %413 : vector<4x256xf32>
    %cst_243 = arith.constant dense<0.000000e+00> : vector<4x256xf32>
    %415 = tpu.matmul %190, %345, %cst_243 {dimension_numbers = #tpu.dot_dimension_numbers<[1], [0], [0], [1], [0, 0, 1, 1], [], []>} : vector<4x4xf32>, vector<4x256xf32>, vector<4x256xf32> -> vector<4x256xf32>
    %416 = vector.broadcast %192 : vector<4x1xf32> to vector<4x256xf32>
    %417 = arith.addf %415, %416 : vector<4x256xf32>
    %cst_244 = arith.constant 0.000000e+00 : f32
    %418 = vector.broadcast %cst_244 : f32 to vector<4x256xf32>
    %419 = arith.subf %418, %417 : vector<4x256xf32>
    %420 = math.exp %419 : vector<4x256xf32>
    %cst_245 = arith.constant 1.000000e+00 : f32
    %421 = vector.broadcast %cst_245 : f32 to vector<4x256xf32>
    %422 = arith.addf %421, %420 : vector<4x256xf32>
    %cst_246 = arith.constant 1.000000e+00 : f32
    %423 = vector.broadcast %cst_246 : f32 to vector<4x256xf32>
    %424 = arith.divf %423, %422 : vector<4x256xf32>
    %425 = arith.mulf %417, %424 : vector<4x256xf32>
    %c0_247 = arith.constant 0 : index
    %c5_248 = arith.constant 5 : index
    %c0_249 = arith.constant 0 : index
    %c0_250 = arith.constant 0 : index
    %426 = vector.load %arg10[%c0_247, %c5_248, %c0_249, %c0_250] : memref<2x9x4x1xf32, #tpu.memory_space<vmem>>, vector<1x1x4x1xf32>
    %427 = vector.shape_cast %426 : vector<1x1x4x1xf32> to vector<4x1xf32>
    %428 = vector.broadcast %427 : vector<4x1xf32> to vector<4x256xf32>
    %429 = arith.addf %425, %428 : vector<4x256xf32>
    %430 = arith.mulf %429, %278 : vector<4x256xf32>
    %431 = arith.addf %414, %430 : vector<4x256xf32>
    %cst_251 = arith.constant dense<0.000000e+00> : vector<4x256xf32>
    %432 = tpu.matmul %194, %345, %cst_251 {dimension_numbers = #tpu.dot_dimension_numbers<[1], [0], [0], [1], [0, 0, 1, 1], [], []>} : vector<4x4xf32>, vector<4x256xf32>, vector<4x256xf32> -> vector<4x256xf32>
    %433 = vector.broadcast %196 : vector<4x1xf32> to vector<4x256xf32>
    %434 = arith.addf %432, %433 : vector<4x256xf32>
    %cst_252 = arith.constant 0.000000e+00 : f32
    %435 = vector.broadcast %cst_252 : f32 to vector<4x256xf32>
    %436 = arith.subf %435, %434 : vector<4x256xf32>
    %437 = math.exp %436 : vector<4x256xf32>
    %cst_253 = arith.constant 1.000000e+00 : f32
    %438 = vector.broadcast %cst_253 : f32 to vector<4x256xf32>
    %439 = arith.addf %438, %437 : vector<4x256xf32>
    %cst_254 = arith.constant 1.000000e+00 : f32
    %440 = vector.broadcast %cst_254 : f32 to vector<4x256xf32>
    %441 = arith.divf %440, %439 : vector<4x256xf32>
    %442 = arith.mulf %434, %441 : vector<4x256xf32>
    %c0_255 = arith.constant 0 : index
    %c6_256 = arith.constant 6 : index
    %c0_257 = arith.constant 0 : index
    %c0_258 = arith.constant 0 : index
    %443 = vector.load %arg10[%c0_255, %c6_256, %c0_257, %c0_258] : memref<2x9x4x1xf32, #tpu.memory_space<vmem>>, vector<1x1x4x1xf32>
    %444 = vector.shape_cast %443 : vector<1x1x4x1xf32> to vector<4x1xf32>
    %445 = vector.broadcast %444 : vector<4x1xf32> to vector<4x256xf32>
    %446 = arith.addf %442, %445 : vector<4x256xf32>
    %447 = arith.mulf %446, %261 : vector<4x256xf32>
    %448 = arith.addf %431, %447 : vector<4x256xf32>
    %cst_259 = arith.constant dense<0.000000e+00> : vector<4x256xf32>
    %449 = tpu.matmul %198, %345, %cst_259 {dimension_numbers = #tpu.dot_dimension_numbers<[1], [0], [0], [1], [0, 0, 1, 1], [], []>} : vector<4x4xf32>, vector<4x256xf32>, vector<4x256xf32> -> vector<4x256xf32>
    %450 = vector.broadcast %200 : vector<4x1xf32> to vector<4x256xf32>
    %451 = arith.addf %449, %450 : vector<4x256xf32>
    %cst_260 = arith.constant 0.000000e+00 : f32
    %452 = vector.broadcast %cst_260 : f32 to vector<4x256xf32>
    %453 = arith.subf %452, %451 : vector<4x256xf32>
    %454 = math.exp %453 : vector<4x256xf32>
    %cst_261 = arith.constant 1.000000e+00 : f32
    %455 = vector.broadcast %cst_261 : f32 to vector<4x256xf32>
    %456 = arith.addf %455, %454 : vector<4x256xf32>
    %cst_262 = arith.constant 1.000000e+00 : f32
    %457 = vector.broadcast %cst_262 : f32 to vector<4x256xf32>
    %458 = arith.divf %457, %456 : vector<4x256xf32>
    %459 = arith.mulf %451, %458 : vector<4x256xf32>
    %c0_263 = arith.constant 0 : index
    %c7_264 = arith.constant 7 : index
    %c0_265 = arith.constant 0 : index
    %c0_266 = arith.constant 0 : index
    %460 = vector.load %arg10[%c0_263, %c7_264, %c0_265, %c0_266] : memref<2x9x4x1xf32, #tpu.memory_space<vmem>>, vector<1x1x4x1xf32>
    %461 = vector.shape_cast %460 : vector<1x1x4x1xf32> to vector<4x1xf32>
    %462 = vector.broadcast %461 : vector<4x1xf32> to vector<4x256xf32>
    %463 = arith.addf %459, %462 : vector<4x256xf32>
    %464 = arith.mulf %463, %267 : vector<4x256xf32>
    %465 = arith.addf %448, %464 : vector<4x256xf32>
    %cst_267 = arith.constant dense<0.000000e+00> : vector<4x256xf32>
    %466 = tpu.matmul %202, %345, %cst_267 {dimension_numbers = #tpu.dot_dimension_numbers<[1], [0], [0], [1], [0, 0, 1, 1], [], []>} : vector<4x4xf32>, vector<4x256xf32>, vector<4x256xf32> -> vector<4x256xf32>
    %467 = vector.broadcast %204 : vector<4x1xf32> to vector<4x256xf32>
    %468 = arith.addf %466, %467 : vector<4x256xf32>
    %cst_268 = arith.constant 0.000000e+00 : f32
    %469 = vector.broadcast %cst_268 : f32 to vector<4x256xf32>
    %470 = arith.subf %469, %468 : vector<4x256xf32>
    %471 = math.exp %470 : vector<4x256xf32>
    %cst_269 = arith.constant 1.000000e+00 : f32
    %472 = vector.broadcast %cst_269 : f32 to vector<4x256xf32>
    %473 = arith.addf %472, %471 : vector<4x256xf32>
    %cst_270 = arith.constant 1.000000e+00 : f32
    %474 = vector.broadcast %cst_270 : f32 to vector<4x256xf32>
    %475 = arith.divf %474, %473 : vector<4x256xf32>
    %476 = arith.mulf %468, %475 : vector<4x256xf32>
    %c0_271 = arith.constant 0 : index
    %c8_272 = arith.constant 8 : index
    %c0_273 = arith.constant 0 : index
    %c0_274 = arith.constant 0 : index
    %477 = vector.load %arg10[%c0_271, %c8_272, %c0_273, %c0_274] : memref<2x9x4x1xf32, #tpu.memory_space<vmem>>, vector<1x1x4x1xf32>
    %478 = vector.shape_cast %477 : vector<1x1x4x1xf32> to vector<4x1xf32>
    %479 = vector.broadcast %478 : vector<4x1xf32> to vector<4x256xf32>
    %480 = arith.addf %476, %479 : vector<4x256xf32>
    %481 = arith.mulf %480, %284 : vector<4x256xf32>
    %482 = arith.addf %465, %481 : vector<4x256xf32>
    %cst_275 = arith.constant 0.000000e+00 : f32
    %483 = vector.broadcast %cst_275 : f32 to vector<4x256xf32>
    %484 = arith.subf %483, %482 : vector<4x256xf32>
    %485 = math.exp %484 : vector<4x256xf32>
    %cst_276 = arith.constant 1.000000e+00 : f32
    %486 = vector.broadcast %cst_276 : f32 to vector<4x256xf32>
    %487 = arith.addf %486, %485 : vector<4x256xf32>
    %cst_277 = arith.constant 1.000000e+00 : f32
    %488 = vector.broadcast %cst_277 : f32 to vector<4x256xf32>
    %489 = arith.divf %488, %487 : vector<4x256xf32>
    %490 = arith.mulf %482, %489 : vector<4x256xf32>
    %cst_278 = arith.constant 0.000000e+00 : f32
    %491 = vector.broadcast %cst_278 : f32 to vector<4x256xf32>
    %cst_279 = arith.constant dense<0.000000e+00> : vector<4x256xf32>
    %492 = tpu.matmul %206, %490, %cst_279 {dimension_numbers = #tpu.dot_dimension_numbers<[1], [0], [0], [1], [0, 0, 1, 1], [], []>} : vector<4x4xf32>, vector<4x256xf32>, vector<4x256xf32> -> vector<4x256xf32>
    %493 = vector.broadcast %208 : vector<4x1xf32> to vector<4x256xf32>
    %494 = arith.addf %492, %493 : vector<4x256xf32>
    %cst_280 = arith.constant 0.000000e+00 : f32
    %495 = vector.broadcast %cst_280 : f32 to vector<4x256xf32>
    %496 = arith.subf %495, %494 : vector<4x256xf32>
    %497 = math.exp %496 : vector<4x256xf32>
    %cst_281 = arith.constant 1.000000e+00 : f32
    %498 = vector.broadcast %cst_281 : f32 to vector<4x256xf32>
    %499 = arith.addf %498, %497 : vector<4x256xf32>
    %cst_282 = arith.constant 1.000000e+00 : f32
    %500 = vector.broadcast %cst_282 : f32 to vector<4x256xf32>
    %501 = arith.divf %500, %499 : vector<4x256xf32>
    %502 = arith.mulf %494, %501 : vector<4x256xf32>
    %c0_283 = arith.constant 0 : index
    %c0_284 = arith.constant 0 : index
    %c0_285 = arith.constant 0 : index
    %c0_286 = arith.constant 0 : index
    %503 = vector.load %arg13[%c0_283, %c0_284, %c0_285, %c0_286] : memref<2x9x4x1xf32, #tpu.memory_space<vmem>>, vector<1x1x4x1xf32>
    %504 = vector.shape_cast %503 : vector<1x1x4x1xf32> to vector<4x1xf32>
    %505 = vector.broadcast %504 : vector<4x1xf32> to vector<4x256xf32>
    %506 = arith.addf %502, %505 : vector<4x256xf32>
    %507 = arith.mulf %506, %258 : vector<4x256xf32>
    %508 = arith.addf %491, %507 : vector<4x256xf32>
    %cst_287 = arith.constant dense<0.000000e+00> : vector<4x256xf32>
    %509 = tpu.matmul %210, %490, %cst_287 {dimension_numbers = #tpu.dot_dimension_numbers<[1], [0], [0], [1], [0, 0, 1, 1], [], []>} : vector<4x4xf32>, vector<4x256xf32>, vector<4x256xf32> -> vector<4x256xf32>
    %510 = vector.broadcast %212 : vector<4x1xf32> to vector<4x256xf32>
    %511 = arith.addf %509, %510 : vector<4x256xf32>
    %cst_288 = arith.constant 0.000000e+00 : f32
    %512 = vector.broadcast %cst_288 : f32 to vector<4x256xf32>
    %513 = arith.subf %512, %511 : vector<4x256xf32>
    %514 = math.exp %513 : vector<4x256xf32>
    %cst_289 = arith.constant 1.000000e+00 : f32
    %515 = vector.broadcast %cst_289 : f32 to vector<4x256xf32>
    %516 = arith.addf %515, %514 : vector<4x256xf32>
    %cst_290 = arith.constant 1.000000e+00 : f32
    %517 = vector.broadcast %cst_290 : f32 to vector<4x256xf32>
    %518 = arith.divf %517, %516 : vector<4x256xf32>
    %519 = arith.mulf %511, %518 : vector<4x256xf32>
    %c0_291 = arith.constant 0 : index
    %c1_292 = arith.constant 1 : index
    %c0_293 = arith.constant 0 : index
    %c0_294 = arith.constant 0 : index
    %520 = vector.load %arg13[%c0_291, %c1_292, %c0_293, %c0_294] : memref<2x9x4x1xf32, #tpu.memory_space<vmem>>, vector<1x1x4x1xf32>
    %521 = vector.shape_cast %520 : vector<1x1x4x1xf32> to vector<4x1xf32>
    %522 = vector.broadcast %521 : vector<4x1xf32> to vector<4x256xf32>
    %523 = arith.addf %519, %522 : vector<4x256xf32>
    %524 = arith.mulf %523, %264 : vector<4x256xf32>
    %525 = arith.addf %508, %524 : vector<4x256xf32>
    %cst_295 = arith.constant dense<0.000000e+00> : vector<4x256xf32>
    %526 = tpu.matmul %214, %490, %cst_295 {dimension_numbers = #tpu.dot_dimension_numbers<[1], [0], [0], [1], [0, 0, 1, 1], [], []>} : vector<4x4xf32>, vector<4x256xf32>, vector<4x256xf32> -> vector<4x256xf32>
    %527 = vector.broadcast %216 : vector<4x1xf32> to vector<4x256xf32>
    %528 = arith.addf %526, %527 : vector<4x256xf32>
    %cst_296 = arith.constant 0.000000e+00 : f32
    %529 = vector.broadcast %cst_296 : f32 to vector<4x256xf32>
    %530 = arith.subf %529, %528 : vector<4x256xf32>
    %531 = math.exp %530 : vector<4x256xf32>
    %cst_297 = arith.constant 1.000000e+00 : f32
    %532 = vector.broadcast %cst_297 : f32 to vector<4x256xf32>
    %533 = arith.addf %532, %531 : vector<4x256xf32>
    %cst_298 = arith.constant 1.000000e+00 : f32
    %534 = vector.broadcast %cst_298 : f32 to vector<4x256xf32>
    %535 = arith.divf %534, %533 : vector<4x256xf32>
    %536 = arith.mulf %528, %535 : vector<4x256xf32>
    %c0_299 = arith.constant 0 : index
    %c2_300 = arith.constant 2 : index
    %c0_301 = arith.constant 0 : index
    %c0_302 = arith.constant 0 : index
    %537 = vector.load %arg13[%c0_299, %c2_300, %c0_301, %c0_302] : memref<2x9x4x1xf32, #tpu.memory_space<vmem>>, vector<1x1x4x1xf32>
    %538 = vector.shape_cast %537 : vector<1x1x4x1xf32> to vector<4x1xf32>
    %539 = vector.broadcast %538 : vector<4x1xf32> to vector<4x256xf32>
    %540 = arith.addf %536, %539 : vector<4x256xf32>
    %541 = arith.mulf %540, %281 : vector<4x256xf32>
    %542 = arith.addf %525, %541 : vector<4x256xf32>
    %cst_303 = arith.constant dense<0.000000e+00> : vector<4x256xf32>
    %543 = tpu.matmul %218, %490, %cst_303 {dimension_numbers = #tpu.dot_dimension_numbers<[1], [0], [0], [1], [0, 0, 1, 1], [], []>} : vector<4x4xf32>, vector<4x256xf32>, vector<4x256xf32> -> vector<4x256xf32>
    %544 = vector.broadcast %220 : vector<4x1xf32> to vector<4x256xf32>
    %545 = arith.addf %543, %544 : vector<4x256xf32>
    %cst_304 = arith.constant 0.000000e+00 : f32
    %546 = vector.broadcast %cst_304 : f32 to vector<4x256xf32>
    %547 = arith.subf %546, %545 : vector<4x256xf32>
    %548 = math.exp %547 : vector<4x256xf32>
    %cst_305 = arith.constant 1.000000e+00 : f32
    %549 = vector.broadcast %cst_305 : f32 to vector<4x256xf32>
    %550 = arith.addf %549, %548 : vector<4x256xf32>
    %cst_306 = arith.constant 1.000000e+00 : f32
    %551 = vector.broadcast %cst_306 : f32 to vector<4x256xf32>
    %552 = arith.divf %551, %550 : vector<4x256xf32>
    %553 = arith.mulf %545, %552 : vector<4x256xf32>
    %c0_307 = arith.constant 0 : index
    %c3_308 = arith.constant 3 : index
    %c0_309 = arith.constant 0 : index
    %c0_310 = arith.constant 0 : index
    %554 = vector.load %arg13[%c0_307, %c3_308, %c0_309, %c0_310] : memref<2x9x4x1xf32, #tpu.memory_space<vmem>>, vector<1x1x4x1xf32>
    %555 = vector.shape_cast %554 : vector<1x1x4x1xf32> to vector<4x1xf32>
    %556 = vector.broadcast %555 : vector<4x1xf32> to vector<4x256xf32>
    %557 = arith.addf %553, %556 : vector<4x256xf32>
    %558 = arith.mulf %557, %255 : vector<4x256xf32>
    %559 = arith.addf %542, %558 : vector<4x256xf32>
    %cst_311 = arith.constant dense<0.000000e+00> : vector<4x256xf32>
    %560 = tpu.matmul %222, %490, %cst_311 {dimension_numbers = #tpu.dot_dimension_numbers<[1], [0], [0], [1], [0, 0, 1, 1], [], []>} : vector<4x4xf32>, vector<4x256xf32>, vector<4x256xf32> -> vector<4x256xf32>
    %561 = vector.broadcast %224 : vector<4x1xf32> to vector<4x256xf32>
    %562 = arith.addf %560, %561 : vector<4x256xf32>
    %cst_312 = arith.constant 0.000000e+00 : f32
    %563 = vector.broadcast %cst_312 : f32 to vector<4x256xf32>
    %564 = arith.subf %563, %562 : vector<4x256xf32>
    %565 = math.exp %564 : vector<4x256xf32>
    %cst_313 = arith.constant 1.000000e+00 : f32
    %566 = vector.broadcast %cst_313 : f32 to vector<4x256xf32>
    %567 = arith.addf %566, %565 : vector<4x256xf32>
    %cst_314 = arith.constant 1.000000e+00 : f32
    %568 = vector.broadcast %cst_314 : f32 to vector<4x256xf32>
    %569 = arith.divf %568, %567 : vector<4x256xf32>
    %570 = arith.mulf %562, %569 : vector<4x256xf32>
    %c0_315 = arith.constant 0 : index
    %c5_316 = arith.constant 5 : index
    %c0_317 = arith.constant 0 : index
    %c0_318 = arith.constant 0 : index
    %571 = vector.load %arg13[%c0_315, %c5_316, %c0_317, %c0_318] : memref<2x9x4x1xf32, #tpu.memory_space<vmem>>, vector<1x1x4x1xf32>
    %572 = vector.shape_cast %571 : vector<1x1x4x1xf32> to vector<4x1xf32>
    %573 = vector.broadcast %572 : vector<4x1xf32> to vector<4x256xf32>
    %574 = arith.addf %570, %573 : vector<4x256xf32>
    %575 = arith.mulf %574, %278 : vector<4x256xf32>
    %576 = arith.addf %559, %575 : vector<4x256xf32>
    %cst_319 = arith.constant dense<0.000000e+00> : vector<4x256xf32>
    %577 = tpu.matmul %226, %490, %cst_319 {dimension_numbers = #tpu.dot_dimension_numbers<[1], [0], [0], [1], [0, 0, 1, 1], [], []>} : vector<4x4xf32>, vector<4x256xf32>, vector<4x256xf32> -> vector<4x256xf32>
    %578 = vector.broadcast %228 : vector<4x1xf32> to vector<4x256xf32>
    %579 = arith.addf %577, %578 : vector<4x256xf32>
    %cst_320 = arith.constant 0.000000e+00 : f32
    %580 = vector.broadcast %cst_320 : f32 to vector<4x256xf32>
    %581 = arith.subf %580, %579 : vector<4x256xf32>
    %582 = math.exp %581 : vector<4x256xf32>
    %cst_321 = arith.constant 1.000000e+00 : f32
    %583 = vector.broadcast %cst_321 : f32 to vector<4x256xf32>
    %584 = arith.addf %583, %582 : vector<4x256xf32>
    %cst_322 = arith.constant 1.000000e+00 : f32
    %585 = vector.broadcast %cst_322 : f32 to vector<4x256xf32>
    %586 = arith.divf %585, %584 : vector<4x256xf32>
    %587 = arith.mulf %579, %586 : vector<4x256xf32>
    %c0_323 = arith.constant 0 : index
    %c6_324 = arith.constant 6 : index
    %c0_325 = arith.constant 0 : index
    %c0_326 = arith.constant 0 : index
    %588 = vector.load %arg13[%c0_323, %c6_324, %c0_325, %c0_326] : memref<2x9x4x1xf32, #tpu.memory_space<vmem>>, vector<1x1x4x1xf32>
    %589 = vector.shape_cast %588 : vector<1x1x4x1xf32> to vector<4x1xf32>
    %590 = vector.broadcast %589 : vector<4x1xf32> to vector<4x256xf32>
    %591 = arith.addf %587, %590 : vector<4x256xf32>
    %592 = arith.mulf %591, %261 : vector<4x256xf32>
    %593 = arith.addf %576, %592 : vector<4x256xf32>
    %cst_327 = arith.constant dense<0.000000e+00> : vector<4x256xf32>
    %594 = tpu.matmul %230, %490, %cst_327 {dimension_numbers = #tpu.dot_dimension_numbers<[1], [0], [0], [1], [0, 0, 1, 1], [], []>} : vector<4x4xf32>, vector<4x256xf32>, vector<4x256xf32> -> vector<4x256xf32>
    %595 = vector.broadcast %232 : vector<4x1xf32> to vector<4x256xf32>
    %596 = arith.addf %594, %595 : vector<4x256xf32>
    %cst_328 = arith.constant 0.000000e+00 : f32
    %597 = vector.broadcast %cst_328 : f32 to vector<4x256xf32>
    %598 = arith.subf %597, %596 : vector<4x256xf32>
    %599 = math.exp %598 : vector<4x256xf32>
    %cst_329 = arith.constant 1.000000e+00 : f32
    %600 = vector.broadcast %cst_329 : f32 to vector<4x256xf32>
    %601 = arith.addf %600, %599 : vector<4x256xf32>
    %cst_330 = arith.constant 1.000000e+00 : f32
    %602 = vector.broadcast %cst_330 : f32 to vector<4x256xf32>
    %603 = arith.divf %602, %601 : vector<4x256xf32>
    %604 = arith.mulf %596, %603 : vector<4x256xf32>
    %c0_331 = arith.constant 0 : index
    %c7_332 = arith.constant 7 : index
    %c0_333 = arith.constant 0 : index
    %c0_334 = arith.constant 0 : index
    %605 = vector.load %arg13[%c0_331, %c7_332, %c0_333, %c0_334] : memref<2x9x4x1xf32, #tpu.memory_space<vmem>>, vector<1x1x4x1xf32>
    %606 = vector.shape_cast %605 : vector<1x1x4x1xf32> to vector<4x1xf32>
    %607 = vector.broadcast %606 : vector<4x1xf32> to vector<4x256xf32>
    %608 = arith.addf %604, %607 : vector<4x256xf32>
    %609 = arith.mulf %608, %267 : vector<4x256xf32>
    %610 = arith.addf %593, %609 : vector<4x256xf32>
    %cst_335 = arith.constant dense<0.000000e+00> : vector<4x256xf32>
    %611 = tpu.matmul %234, %490, %cst_335 {dimension_numbers = #tpu.dot_dimension_numbers<[1], [0], [0], [1], [0, 0, 1, 1], [], []>} : vector<4x4xf32>, vector<4x256xf32>, vector<4x256xf32> -> vector<4x256xf32>
    %612 = vector.broadcast %236 : vector<4x1xf32> to vector<4x256xf32>
    %613 = arith.addf %611, %612 : vector<4x256xf32>
    %cst_336 = arith.constant 0.000000e+00 : f32
    %614 = vector.broadcast %cst_336 : f32 to vector<4x256xf32>
    %615 = arith.subf %614, %613 : vector<4x256xf32>
    %616 = math.exp %615 : vector<4x256xf32>
    %cst_337 = arith.constant 1.000000e+00 : f32
    %617 = vector.broadcast %cst_337 : f32 to vector<4x256xf32>
    %618 = arith.addf %617, %616 : vector<4x256xf32>
    %cst_338 = arith.constant 1.000000e+00 : f32
    %619 = vector.broadcast %cst_338 : f32 to vector<4x256xf32>
    %620 = arith.divf %619, %618 : vector<4x256xf32>
    %621 = arith.mulf %613, %620 : vector<4x256xf32>
    %c0_339 = arith.constant 0 : index
    %c8_340 = arith.constant 8 : index
    %c0_341 = arith.constant 0 : index
    %c0_342 = arith.constant 0 : index
    %622 = vector.load %arg13[%c0_339, %c8_340, %c0_341, %c0_342] : memref<2x9x4x1xf32, #tpu.memory_space<vmem>>, vector<1x1x4x1xf32>
    %623 = vector.shape_cast %622 : vector<1x1x4x1xf32> to vector<4x1xf32>
    %624 = vector.broadcast %623 : vector<4x1xf32> to vector<4x256xf32>
    %625 = arith.addf %621, %624 : vector<4x256xf32>
    %626 = arith.mulf %625, %284 : vector<4x256xf32>
    %627 = arith.addf %610, %626 : vector<4x256xf32>
    %cst_343 = arith.constant dense<0.000000e+00> : vector<3x256xf32>
    %628 = tpu.matmul %1, %627, %cst_343 {dimension_numbers = #tpu.dot_dimension_numbers<[1], [0], [0], [1], [0, 0, 1, 1], [], []>} : vector<3x4xf32>, vector<4x256xf32>, vector<3x256xf32> -> vector<3x256xf32>
    %629 = arith.mulf %628, %243 : vector<3x256xf32>
    %cst_344 = arith.constant dense<0.000000e+00> : vector<256xf32>
    %630 = vector.multi_reduction <add>, %629, %cst_344 [0] : vector<3x256xf32> to vector<256xf32>
    %631 = vector.shape_cast %630 : vector<256xf32> to vector<1x256xf32>
    %632 = vector.broadcast %631 : vector<1x256xf32> to vector<3x256xf32>
    %633 = arith.subf %628, %632 : vector<3x256xf32>
    %c0_345 = arith.constant 0 : index
    %c0_346 = arith.constant 0 : index
    %c0_347 = arith.constant 0 : index
    %634 = vector.load %arg14[%c0_345, %c0_346, %c0_347] : memref<2x3x256xf32, #tpu.memory_space<vmem>>, vector<1x3x256xf32>
    %635 = vector.shape_cast %634 : vector<1x3x256xf32> to vector<3x256xf32>
    %636 = vector.shape_cast %633 : vector<3x256xf32> to vector<1x3x256xf32>
    tpu.vector_store %arg14[%c0_345, %c0_346, %c0_347], %636 {strides = array<i32>} : memref<2x3x256xf32, #tpu.memory_space<vmem>>, vector<1x3x256xf32>,
    %c1_348 = arith.constant 1 : index
    %c0_349 = arith.constant 0 : index
    %c0_350 = arith.constant 0 : index
    %637 = vector.load %arg1[%c1_348, %c0_349, %c0_350] : memref<2x1x256xi32, #tpu.memory_space<vmem>>, vector<1x1x256xi32>
    %638 = vector.shape_cast %637 : vector<1x1x256xi32> to vector<1x256xi32>
    %639 = vector.broadcast %2 : vector<3x1xi32> to vector<3x256xi32>
    %640 = vector.broadcast %638 : vector<1x256xi32> to vector<3x256xi32>
    %641 = arith.cmpi eq, %639, %640 : vector<3x256xi32>
    %642 = arith.extui %641 : vector<3x256xi1> to vector<3x256xi32>
    %643 = arith.sitofp %642 : vector<3x256xi32> to vector<3x256xf32>
    %cst_351 = arith.constant dense<0.000000e+00> : vector<4x256xf32>
    %644 = tpu.matmul %0, %643, %cst_351 {dimension_numbers = #tpu.dot_dimension_numbers<[1], [0], [0], [1], [0, 0, 1, 1], [], []>} : vector<4x3xf32>, vector<3x256xf32>, vector<4x256xf32> -> vector<4x256xf32>
    %645 = vector.extract_strided_slice %644 {offsets = [0, 255], sizes = [4, 1], strides = [1, 1]} : vector<4x256xf32> to vector<4x1xf32>
    %646 = vector.extract_strided_slice %644 {offsets = [0, 0], sizes = [4, 255], strides = [1, 1]} : vector<4x256xf32> to vector<4x255xf32>
    %647 = tpu.concatenate %645, %646 in 1 : vector<4x1xf32>, vector<4x255xf32> -> vector<4x256xf32>
    %648 = vector.extract_strided_slice %644 {offsets = [0, 15], sizes = [4, 241], strides = [1, 1]} : vector<4x256xf32> to vector<4x241xf32>
    %649 = vector.extract_strided_slice %644 {offsets = [0, 0], sizes = [4, 15], strides = [1, 1]} : vector<4x256xf32> to vector<4x15xf32>
    %650 = tpu.concatenate %648, %649 in 1 : vector<4x241xf32>, vector<4x15xf32> -> vector<4x256xf32>
    %c1_i32_352 = arith.constant 1 : i32
    %651 = vector.broadcast %c1_i32_352 : i32 to vector<1x256xi32>
    %652 = arith.cmpi slt, %4, %651 : vector<1x256xi32>
    %653 = vector.shape_cast %652 : vector<1x256xi1> to vector<1x256xi1>
    %654 = vector.broadcast %653 : vector<1x256xi1> to vector<4x256xi1>
    %655 = arith.select %654, %650, %647 : vector<4x256xi1>, vector<4x256xf32>
    %656 = vector.extract_strided_slice %655 {offsets = [0, 240], sizes = [4, 16], strides = [1, 1]} : vector<4x256xf32> to vector<4x16xf32>
    %657 = vector.extract_strided_slice %655 {offsets = [0, 0], sizes = [4, 240], strides = [1, 1]} : vector<4x256xf32> to vector<4x240xf32>
    %658 = tpu.concatenate %656, %657 in 1 : vector<4x16xf32>, vector<4x240xf32> -> vector<4x256xf32>
    %659 = vector.extract_strided_slice %655 {offsets = [0, 16], sizes = [4, 240], strides = [1, 1]} : vector<4x256xf32> to vector<4x240xf32>
    %660 = vector.extract_strided_slice %655 {offsets = [0, 0], sizes = [4, 16], strides = [1, 1]} : vector<4x256xf32> to vector<4x16xf32>
    %661 = tpu.concatenate %659, %660 in 1 : vector<4x240xf32>, vector<4x16xf32> -> vector<4x256xf32>
    %662 = vector.extract_strided_slice %644 {offsets = [0, 240], sizes = [4, 16], strides = [1, 1]} : vector<4x256xf32> to vector<4x16xf32>
    %663 = vector.extract_strided_slice %644 {offsets = [0, 0], sizes = [4, 240], strides = [1, 1]} : vector<4x256xf32> to vector<4x240xf32>
    %664 = tpu.concatenate %662, %663 in 1 : vector<4x16xf32>, vector<4x240xf32> -> vector<4x256xf32>
    %665 = vector.extract_strided_slice %644 {offsets = [0, 16], sizes = [4, 240], strides = [1, 1]} : vector<4x256xf32> to vector<4x240xf32>
    %666 = vector.extract_strided_slice %644 {offsets = [0, 0], sizes = [4, 16], strides = [1, 1]} : vector<4x256xf32> to vector<4x16xf32>
    %667 = tpu.concatenate %665, %666 in 1 : vector<4x240xf32>, vector<4x16xf32> -> vector<4x256xf32>
    %668 = vector.extract_strided_slice %644 {offsets = [0, 1], sizes = [4, 255], strides = [1, 1]} : vector<4x256xf32> to vector<4x255xf32>
    %669 = vector.extract_strided_slice %644 {offsets = [0, 0], sizes = [4, 1], strides = [1, 1]} : vector<4x256xf32> to vector<4x1xf32>
    %670 = tpu.concatenate %668, %669 in 1 : vector<4x255xf32>, vector<4x1xf32> -> vector<4x256xf32>
    %671 = vector.extract_strided_slice %644 {offsets = [0, 241], sizes = [4, 15], strides = [1, 1]} : vector<4x256xf32> to vector<4x15xf32>
    %672 = vector.extract_strided_slice %644 {offsets = [0, 0], sizes = [4, 241], strides = [1, 1]} : vector<4x256xf32> to vector<4x241xf32>
    %673 = tpu.concatenate %671, %672 in 1 : vector<4x15xf32>, vector<4x241xf32> -> vector<4x256xf32>
    %c15_i32_353 = arith.constant 15 : i32
    %674 = vector.broadcast %c15_i32_353 : i32 to vector<1x256xi32>
    %675 = arith.cmpi sge, %4, %674 : vector<1x256xi32>
    %676 = vector.shape_cast %675 : vector<1x256xi1> to vector<1x256xi1>
    %677 = vector.broadcast %676 : vector<1x256xi1> to vector<4x256xi1>
    %678 = arith.select %677, %673, %670 : vector<4x256xi1>, vector<4x256xf32>
    %679 = vector.extract_strided_slice %678 {offsets = [0, 240], sizes = [4, 16], strides = [1, 1]} : vector<4x256xf32> to vector<4x16xf32>
    %680 = vector.extract_strided_slice %678 {offsets = [0, 0], sizes = [4, 240], strides = [1, 1]} : vector<4x256xf32> to vector<4x240xf32>
    %681 = tpu.concatenate %679, %680 in 1 : vector<4x16xf32>, vector<4x240xf32> -> vector<4x256xf32>
    %682 = vector.extract_strided_slice %678 {offsets = [0, 16], sizes = [4, 240], strides = [1, 1]} : vector<4x256xf32> to vector<4x240xf32>
    %683 = vector.extract_strided_slice %678 {offsets = [0, 0], sizes = [4, 16], strides = [1, 1]} : vector<4x256xf32> to vector<4x16xf32>
    %684 = tpu.concatenate %682, %683 in 1 : vector<4x240xf32>, vector<4x16xf32> -> vector<4x256xf32>
    %cst_354 = arith.constant 0.000000e+00 : f32
    %685 = vector.broadcast %cst_354 : f32 to vector<4x256xf32>
    %cst_355 = arith.constant 0.000000e+00 : f32
    %686 = vector.shape_cast %25 : vector<1x256xi1> to vector<1x256xi1>
    %687 = vector.broadcast %686 : vector<1x256xi1> to vector<4x256xi1>
    %688 = vector.broadcast %cst_355 : f32 to vector<4x256xf32>
    %689 = arith.select %687, %658, %688 : vector<4x256xi1>, vector<4x256xf32>
    %cst_356 = arith.constant dense<0.000000e+00> : vector<4x256xf32>
    %690 = tpu.matmul %6, %689, %cst_356 {dimension_numbers = #tpu.dot_dimension_numbers<[1], [0], [0], [1], [0, 0, 1, 1], [], []>} : vector<4x4xf32>, vector<4x256xf32>, vector<4x256xf32> -> vector<4x256xf32>
    %691 = arith.addf %685, %690 : vector<4x256xf32>
    %cst_357 = arith.constant 0.000000e+00 : f32
    %692 = vector.shape_cast %46 : vector<1x256xi1> to vector<1x256xi1>
    %693 = vector.broadcast %692 : vector<1x256xi1> to vector<4x256xi1>
    %694 = vector.broadcast %cst_357 : f32 to vector<4x256xf32>
    %695 = arith.select %693, %664, %694 : vector<4x256xi1>, vector<4x256xf32>
    %cst_358 = arith.constant dense<0.000000e+00> : vector<4x256xf32>
    %696 = tpu.matmul %27, %695, %cst_358 {dimension_numbers = #tpu.dot_dimension_numbers<[1], [0], [0], [1], [0, 0, 1, 1], [], []>} : vector<4x4xf32>, vector<4x256xf32>, vector<4x256xf32> -> vector<4x256xf32>
    %697 = arith.addf %691, %696 : vector<4x256xf32>
    %cst_359 = arith.constant 0.000000e+00 : f32
    %698 = vector.shape_cast %67 : vector<1x256xi1> to vector<1x256xi1>
    %699 = vector.broadcast %698 : vector<1x256xi1> to vector<4x256xi1>
    %700 = vector.broadcast %cst_359 : f32 to vector<4x256xf32>
    %701 = arith.select %699, %681, %700 : vector<4x256xi1>, vector<4x256xf32>
    %cst_360 = arith.constant dense<0.000000e+00> : vector<4x256xf32>
    %702 = tpu.matmul %48, %701, %cst_360 {dimension_numbers = #tpu.dot_dimension_numbers<[1], [0], [0], [1], [0, 0, 1, 1], [], []>} : vector<4x4xf32>, vector<4x256xf32>, vector<4x256xf32> -> vector<4x256xf32>
    %703 = arith.addf %697, %702 : vector<4x256xf32>
    %cst_361 = arith.constant 0.000000e+00 : f32
    %704 = vector.shape_cast %88 : vector<1x256xi1> to vector<1x256xi1>
    %705 = vector.broadcast %704 : vector<1x256xi1> to vector<4x256xi1>
    %706 = vector.broadcast %cst_361 : f32 to vector<4x256xf32>
    %707 = arith.select %705, %655, %706 : vector<4x256xi1>, vector<4x256xf32>
    %cst_362 = arith.constant dense<0.000000e+00> : vector<4x256xf32>
    %708 = tpu.matmul %69, %707, %cst_362 {dimension_numbers = #tpu.dot_dimension_numbers<[1], [0], [0], [1], [0, 0, 1, 1], [], []>} : vector<4x4xf32>, vector<4x256xf32>, vector<4x256xf32> -> vector<4x256xf32>
    %709 = arith.addf %703, %708 : vector<4x256xf32>
    %cst_363 = arith.constant 0.000000e+00 : f32
    %710 = vector.shape_cast %109 : vector<1x256xi1> to vector<1x256xi1>
    %711 = vector.broadcast %710 : vector<1x256xi1> to vector<4x256xi1>
    %712 = vector.broadcast %cst_363 : f32 to vector<4x256xf32>
    %713 = arith.select %711, %678, %712 : vector<4x256xi1>, vector<4x256xf32>
    %cst_364 = arith.constant dense<0.000000e+00> : vector<4x256xf32>
    %714 = tpu.matmul %90, %713, %cst_364 {dimension_numbers = #tpu.dot_dimension_numbers<[1], [0], [0], [1], [0, 0, 1, 1], [], []>} : vector<4x4xf32>, vector<4x256xf32>, vector<4x256xf32> -> vector<4x256xf32>
    %715 = arith.addf %709, %714 : vector<4x256xf32>
    %cst_365 = arith.constant 0.000000e+00 : f32
    %716 = vector.shape_cast %130 : vector<1x256xi1> to vector<1x256xi1>
    %717 = vector.broadcast %716 : vector<1x256xi1> to vector<4x256xi1>
    %718 = vector.broadcast %cst_365 : f32 to vector<4x256xf32>
    %719 = arith.select %717, %661, %718 : vector<4x256xi1>, vector<4x256xf32>
    %cst_366 = arith.constant dense<0.000000e+00> : vector<4x256xf32>
    %720 = tpu.matmul %111, %719, %cst_366 {dimension_numbers = #tpu.dot_dimension_numbers<[1], [0], [0], [1], [0, 0, 1, 1], [], []>} : vector<4x4xf32>, vector<4x256xf32>, vector<4x256xf32> -> vector<4x256xf32>
    %721 = arith.addf %715, %720 : vector<4x256xf32>
    %cst_367 = arith.constant 0.000000e+00 : f32
    %722 = vector.shape_cast %151 : vector<1x256xi1> to vector<1x256xi1>
    %723 = vector.broadcast %722 : vector<1x256xi1> to vector<4x256xi1>
    %724 = vector.broadcast %cst_367 : f32 to vector<4x256xf32>
    %725 = arith.select %723, %667, %724 : vector<4x256xi1>, vector<4x256xf32>
    %cst_368 = arith.constant dense<0.000000e+00> : vector<4x256xf32>
    %726 = tpu.matmul %132, %725, %cst_368 {dimension_numbers = #tpu.dot_dimension_numbers<[1], [0], [0], [1], [0, 0, 1, 1], [], []>} : vector<4x4xf32>, vector<4x256xf32>, vector<4x256xf32> -> vector<4x256xf32>
    %727 = arith.addf %721, %726 : vector<4x256xf32>
    %cst_369 = arith.constant 0.000000e+00 : f32
    %728 = vector.shape_cast %172 : vector<1x256xi1> to vector<1x256xi1>
    %729 = vector.broadcast %728 : vector<1x256xi1> to vector<4x256xi1>
    %730 = vector.broadcast %cst_369 : f32 to vector<4x256xf32>
    %731 = arith.select %729, %684, %730 : vector<4x256xi1>, vector<4x256xf32>
    %cst_370 = arith.constant dense<0.000000e+00> : vector<4x256xf32>
    %732 = tpu.matmul %153, %731, %cst_370 {dimension_numbers = #tpu.dot_dimension_numbers<[1], [0], [0], [1], [0, 0, 1, 1], [], []>} : vector<4x4xf32>, vector<4x256xf32>, vector<4x256xf32> -> vector<4x256xf32>
    %733 = arith.addf %727, %732 : vector<4x256xf32>
    %c1_371 = arith.constant 1 : index
    %c0_372 = arith.constant 0 : index
    %c0_373 = arith.constant 0 : index
    %734 = vector.load %arg2[%c1_371, %c0_372, %c0_373] : memref<2x1x1xf32, #tpu.memory_space<vmem>>, vector<1x1x1xf32>
    %735 = vector.shape_cast %734 : vector<1x1x1xf32> to vector<1x1xf32>
    %736 = vector.broadcast %735 : vector<1x1xf32> to vector<4x256xf32>
    %737 = arith.mulf %733, %736 : vector<4x256xf32>
    %cst_374 = arith.constant 0.000000e+00 : f32
    %738 = vector.broadcast %cst_374 : f32 to vector<4x256xf32>
    %739 = arith.subf %738, %737 : vector<4x256xf32>
    %740 = math.exp %739 : vector<4x256xf32>
    %cst_375 = arith.constant 1.000000e+00 : f32
    %741 = vector.broadcast %cst_375 : f32 to vector<4x256xf32>
    %742 = arith.addf %741, %740 : vector<4x256xf32>
    %cst_376 = arith.constant 1.000000e+00 : f32
    %743 = vector.broadcast %cst_376 : f32 to vector<4x256xf32>
    %744 = arith.divf %743, %742 : vector<4x256xf32>
    %745 = arith.mulf %737, %744 : vector<4x256xf32>
    %cst_377 = arith.constant 0.000000e+00 : f32
    %746 = vector.broadcast %cst_377 : f32 to vector<4x256xf32>
    %cst_378 = arith.constant dense<0.000000e+00> : vector<4x256xf32>
    %747 = tpu.matmul %174, %745, %cst_378 {dimension_numbers = #tpu.dot_dimension_numbers<[1], [0], [0], [1], [0, 0, 1, 1], [], []>} : vector<4x4xf32>, vector<4x256xf32>, vector<4x256xf32> -> vector<4x256xf32>
    %748 = vector.broadcast %176 : vector<4x1xf32> to vector<4x256xf32>
    %749 = arith.addf %747, %748 : vector<4x256xf32>
    %cst_379 = arith.constant 0.000000e+00 : f32
    %750 = vector.broadcast %cst_379 : f32 to vector<4x256xf32>
    %751 = arith.subf %750, %749 : vector<4x256xf32>
    %752 = math.exp %751 : vector<4x256xf32>
    %cst_380 = arith.constant 1.000000e+00 : f32
    %753 = vector.broadcast %cst_380 : f32 to vector<4x256xf32>
    %754 = arith.addf %753, %752 : vector<4x256xf32>
    %cst_381 = arith.constant 1.000000e+00 : f32
    %755 = vector.broadcast %cst_381 : f32 to vector<4x256xf32>
    %756 = arith.divf %755, %754 : vector<4x256xf32>
    %757 = arith.mulf %749, %756 : vector<4x256xf32>
    %c1_382 = arith.constant 1 : index
    %c0_383 = arith.constant 0 : index
    %c0_384 = arith.constant 0 : index
    %c0_385 = arith.constant 0 : index
    %758 = vector.load %arg10[%c1_382, %c0_383, %c0_384, %c0_385] : memref<2x9x4x1xf32, #tpu.memory_space<vmem>>, vector<1x1x4x1xf32>
    %759 = vector.shape_cast %758 : vector<1x1x4x1xf32> to vector<4x1xf32>
    %760 = vector.broadcast %759 : vector<4x1xf32> to vector<4x256xf32>
    %761 = arith.addf %757, %760 : vector<4x256xf32>
    %762 = arith.mulf %761, %658 : vector<4x256xf32>
    %763 = arith.addf %746, %762 : vector<4x256xf32>
    %cst_386 = arith.constant dense<0.000000e+00> : vector<4x256xf32>
    %764 = tpu.matmul %178, %745, %cst_386 {dimension_numbers = #tpu.dot_dimension_numbers<[1], [0], [0], [1], [0, 0, 1, 1], [], []>} : vector<4x4xf32>, vector<4x256xf32>, vector<4x256xf32> -> vector<4x256xf32>
    %765 = vector.broadcast %180 : vector<4x1xf32> to vector<4x256xf32>
    %766 = arith.addf %764, %765 : vector<4x256xf32>
    %cst_387 = arith.constant 0.000000e+00 : f32
    %767 = vector.broadcast %cst_387 : f32 to vector<4x256xf32>
    %768 = arith.subf %767, %766 : vector<4x256xf32>
    %769 = math.exp %768 : vector<4x256xf32>
    %cst_388 = arith.constant 1.000000e+00 : f32
    %770 = vector.broadcast %cst_388 : f32 to vector<4x256xf32>
    %771 = arith.addf %770, %769 : vector<4x256xf32>
    %cst_389 = arith.constant 1.000000e+00 : f32
    %772 = vector.broadcast %cst_389 : f32 to vector<4x256xf32>
    %773 = arith.divf %772, %771 : vector<4x256xf32>
    %774 = arith.mulf %766, %773 : vector<4x256xf32>
    %c1_390 = arith.constant 1 : index
    %c1_391 = arith.constant 1 : index
    %c0_392 = arith.constant 0 : index
    %c0_393 = arith.constant 0 : index
    %775 = vector.load %arg10[%c1_390, %c1_391, %c0_392, %c0_393] : memref<2x9x4x1xf32, #tpu.memory_space<vmem>>, vector<1x1x4x1xf32>
    %776 = vector.shape_cast %775 : vector<1x1x4x1xf32> to vector<4x1xf32>
    %777 = vector.broadcast %776 : vector<4x1xf32> to vector<4x256xf32>
    %778 = arith.addf %774, %777 : vector<4x256xf32>
    %779 = arith.mulf %778, %664 : vector<4x256xf32>
    %780 = arith.addf %763, %779 : vector<4x256xf32>
    %cst_394 = arith.constant dense<0.000000e+00> : vector<4x256xf32>
    %781 = tpu.matmul %182, %745, %cst_394 {dimension_numbers = #tpu.dot_dimension_numbers<[1], [0], [0], [1], [0, 0, 1, 1], [], []>} : vector<4x4xf32>, vector<4x256xf32>, vector<4x256xf32> -> vector<4x256xf32>
    %782 = vector.broadcast %184 : vector<4x1xf32> to vector<4x256xf32>
    %783 = arith.addf %781, %782 : vector<4x256xf32>
    %cst_395 = arith.constant 0.000000e+00 : f32
    %784 = vector.broadcast %cst_395 : f32 to vector<4x256xf32>
    %785 = arith.subf %784, %783 : vector<4x256xf32>
    %786 = math.exp %785 : vector<4x256xf32>
    %cst_396 = arith.constant 1.000000e+00 : f32
    %787 = vector.broadcast %cst_396 : f32 to vector<4x256xf32>
    %788 = arith.addf %787, %786 : vector<4x256xf32>
    %cst_397 = arith.constant 1.000000e+00 : f32
    %789 = vector.broadcast %cst_397 : f32 to vector<4x256xf32>
    %790 = arith.divf %789, %788 : vector<4x256xf32>
    %791 = arith.mulf %783, %790 : vector<4x256xf32>
    %c1_398 = arith.constant 1 : index
    %c2_399 = arith.constant 2 : index
    %c0_400 = arith.constant 0 : index
    %c0_401 = arith.constant 0 : index
    %792 = vector.load %arg10[%c1_398, %c2_399, %c0_400, %c0_401] : memref<2x9x4x1xf32, #tpu.memory_space<vmem>>, vector<1x1x4x1xf32>
    %793 = vector.shape_cast %792 : vector<1x1x4x1xf32> to vector<4x1xf32>
    %794 = vector.broadcast %793 : vector<4x1xf32> to vector<4x256xf32>
    %795 = arith.addf %791, %794 : vector<4x256xf32>
    %796 = arith.mulf %795, %681 : vector<4x256xf32>
    %797 = arith.addf %780, %796 : vector<4x256xf32>
    %cst_402 = arith.constant dense<0.000000e+00> : vector<4x256xf32>
    %798 = tpu.matmul %186, %745, %cst_402 {dimension_numbers = #tpu.dot_dimension_numbers<[1], [0], [0], [1], [0, 0, 1, 1], [], []>} : vector<4x4xf32>, vector<4x256xf32>, vector<4x256xf32> -> vector<4x256xf32>
    %799 = vector.broadcast %188 : vector<4x1xf32> to vector<4x256xf32>
    %800 = arith.addf %798, %799 : vector<4x256xf32>
    %cst_403 = arith.constant 0.000000e+00 : f32
    %801 = vector.broadcast %cst_403 : f32 to vector<4x256xf32>
    %802 = arith.subf %801, %800 : vector<4x256xf32>
    %803 = math.exp %802 : vector<4x256xf32>
    %cst_404 = arith.constant 1.000000e+00 : f32
    %804 = vector.broadcast %cst_404 : f32 to vector<4x256xf32>
    %805 = arith.addf %804, %803 : vector<4x256xf32>
    %cst_405 = arith.constant 1.000000e+00 : f32
    %806 = vector.broadcast %cst_405 : f32 to vector<4x256xf32>
    %807 = arith.divf %806, %805 : vector<4x256xf32>
    %808 = arith.mulf %800, %807 : vector<4x256xf32>
    %c1_406 = arith.constant 1 : index
    %c3_407 = arith.constant 3 : index
    %c0_408 = arith.constant 0 : index
    %c0_409 = arith.constant 0 : index
    %809 = vector.load %arg10[%c1_406, %c3_407, %c0_408, %c0_409] : memref<2x9x4x1xf32, #tpu.memory_space<vmem>>, vector<1x1x4x1xf32>
    %810 = vector.shape_cast %809 : vector<1x1x4x1xf32> to vector<4x1xf32>
    %811 = vector.broadcast %810 : vector<4x1xf32> to vector<4x256xf32>
    %812 = arith.addf %808, %811 : vector<4x256xf32>
    %813 = arith.mulf %812, %655 : vector<4x256xf32>
    %814 = arith.addf %797, %813 : vector<4x256xf32>
    %cst_410 = arith.constant dense<0.000000e+00> : vector<4x256xf32>
    %815 = tpu.matmul %190, %745, %cst_410 {dimension_numbers = #tpu.dot_dimension_numbers<[1], [0], [0], [1], [0, 0, 1, 1], [], []>} : vector<4x4xf32>, vector<4x256xf32>, vector<4x256xf32> -> vector<4x256xf32>
    %816 = vector.broadcast %192 : vector<4x1xf32> to vector<4x256xf32>
    %817 = arith.addf %815, %816 : vector<4x256xf32>
    %cst_411 = arith.constant 0.000000e+00 : f32
    %818 = vector.broadcast %cst_411 : f32 to vector<4x256xf32>
    %819 = arith.subf %818, %817 : vector<4x256xf32>
    %820 = math.exp %819 : vector<4x256xf32>
    %cst_412 = arith.constant 1.000000e+00 : f32
    %821 = vector.broadcast %cst_412 : f32 to vector<4x256xf32>
    %822 = arith.addf %821, %820 : vector<4x256xf32>
    %cst_413 = arith.constant 1.000000e+00 : f32
    %823 = vector.broadcast %cst_413 : f32 to vector<4x256xf32>
    %824 = arith.divf %823, %822 : vector<4x256xf32>
    %825 = arith.mulf %817, %824 : vector<4x256xf32>
    %c1_414 = arith.constant 1 : index
    %c5_415 = arith.constant 5 : index
    %c0_416 = arith.constant 0 : index
    %c0_417 = arith.constant 0 : index
    %826 = vector.load %arg10[%c1_414, %c5_415, %c0_416, %c0_417] : memref<2x9x4x1xf32, #tpu.memory_space<vmem>>, vector<1x1x4x1xf32>
    %827 = vector.shape_cast %826 : vector<1x1x4x1xf32> to vector<4x1xf32>
    %828 = vector.broadcast %827 : vector<4x1xf32> to vector<4x256xf32>
    %829 = arith.addf %825, %828 : vector<4x256xf32>
    %830 = arith.mulf %829, %678 : vector<4x256xf32>
    %831 = arith.addf %814, %830 : vector<4x256xf32>
    %cst_418 = arith.constant dense<0.000000e+00> : vector<4x256xf32>
    %832 = tpu.matmul %194, %745, %cst_418 {dimension_numbers = #tpu.dot_dimension_numbers<[1], [0], [0], [1], [0, 0, 1, 1], [], []>} : vector<4x4xf32>, vector<4x256xf32>, vector<4x256xf32> -> vector<4x256xf32>
    %833 = vector.broadcast %196 : vector<4x1xf32> to vector<4x256xf32>
    %834 = arith.addf %832, %833 : vector<4x256xf32>
    %cst_419 = arith.constant 0.000000e+00 : f32
    %835 = vector.broadcast %cst_419 : f32 to vector<4x256xf32>
    %836 = arith.subf %835, %834 : vector<4x256xf32>
    %837 = math.exp %836 : vector<4x256xf32>
    %cst_420 = arith.constant 1.000000e+00 : f32
    %838 = vector.broadcast %cst_420 : f32 to vector<4x256xf32>
    %839 = arith.addf %838, %837 : vector<4x256xf32>
    %cst_421 = arith.constant 1.000000e+00 : f32
    %840 = vector.broadcast %cst_421 : f32 to vector<4x256xf32>
    %841 = arith.divf %840, %839 : vector<4x256xf32>
    %842 = arith.mulf %834, %841 : vector<4x256xf32>
    %c1_422 = arith.constant 1 : index
    %c6_423 = arith.constant 6 : index
    %c0_424 = arith.constant 0 : index
    %c0_425 = arith.constant 0 : index
    %843 = vector.load %arg10[%c1_422, %c6_423, %c0_424, %c0_425] : memref<2x9x4x1xf32, #tpu.memory_space<vmem>>, vector<1x1x4x1xf32>
    %844 = vector.shape_cast %843 : vector<1x1x4x1xf32> to vector<4x1xf32>
    %845 = vector.broadcast %844 : vector<4x1xf32> to vector<4x256xf32>
    %846 = arith.addf %842, %845 : vector<4x256xf32>
    %847 = arith.mulf %846, %661 : vector<4x256xf32>
    %848 = arith.addf %831, %847 : vector<4x256xf32>
    %cst_426 = arith.constant dense<0.000000e+00> : vector<4x256xf32>
    %849 = tpu.matmul %198, %745, %cst_426 {dimension_numbers = #tpu.dot_dimension_numbers<[1], [0], [0], [1], [0, 0, 1, 1], [], []>} : vector<4x4xf32>, vector<4x256xf32>, vector<4x256xf32> -> vector<4x256xf32>
    %850 = vector.broadcast %200 : vector<4x1xf32> to vector<4x256xf32>
    %851 = arith.addf %849, %850 : vector<4x256xf32>
    %cst_427 = arith.constant 0.000000e+00 : f32
    %852 = vector.broadcast %cst_427 : f32 to vector<4x256xf32>
    %853 = arith.subf %852, %851 : vector<4x256xf32>
    %854 = math.exp %853 : vector<4x256xf32>
    %cst_428 = arith.constant 1.000000e+00 : f32
    %855 = vector.broadcast %cst_428 : f32 to vector<4x256xf32>
    %856 = arith.addf %855, %854 : vector<4x256xf32>
    %cst_429 = arith.constant 1.000000e+00 : f32
    %857 = vector.broadcast %cst_429 : f32 to vector<4x256xf32>
    %858 = arith.divf %857, %856 : vector<4x256xf32>
    %859 = arith.mulf %851, %858 : vector<4x256xf32>
    %c1_430 = arith.constant 1 : index
    %c7_431 = arith.constant 7 : index
    %c0_432 = arith.constant 0 : index
    %c0_433 = arith.constant 0 : index
    %860 = vector.load %arg10[%c1_430, %c7_431, %c0_432, %c0_433] : memref<2x9x4x1xf32, #tpu.memory_space<vmem>>, vector<1x1x4x1xf32>
    %861 = vector.shape_cast %860 : vector<1x1x4x1xf32> to vector<4x1xf32>
    %862 = vector.broadcast %861 : vector<4x1xf32> to vector<4x256xf32>
    %863 = arith.addf %859, %862 : vector<4x256xf32>
    %864 = arith.mulf %863, %667 : vector<4x256xf32>
    %865 = arith.addf %848, %864 : vector<4x256xf32>
    %cst_434 = arith.constant dense<0.000000e+00> : vector<4x256xf32>
    %866 = tpu.matmul %202, %745, %cst_434 {dimension_numbers = #tpu.dot_dimension_numbers<[1], [0], [0], [1], [0, 0, 1, 1], [], []>} : vector<4x4xf32>, vector<4x256xf32>, vector<4x256xf32> -> vector<4x256xf32>
    %867 = vector.broadcast %204 : vector<4x1xf32> to vector<4x256xf32>
    %868 = arith.addf %866, %867 : vector<4x256xf32>
    %cst_435 = arith.constant 0.000000e+00 : f32
    %869 = vector.broadcast %cst_435 : f32 to vector<4x256xf32>
    %870 = arith.subf %869, %868 : vector<4x256xf32>
    %871 = math.exp %870 : vector<4x256xf32>
    %cst_436 = arith.constant 1.000000e+00 : f32
    %872 = vector.broadcast %cst_436 : f32 to vector<4x256xf32>
    %873 = arith.addf %872, %871 : vector<4x256xf32>
    %cst_437 = arith.constant 1.000000e+00 : f32
    %874 = vector.broadcast %cst_437 : f32 to vector<4x256xf32>
    %875 = arith.divf %874, %873 : vector<4x256xf32>
    %876 = arith.mulf %868, %875 : vector<4x256xf32>
    %c1_438 = arith.constant 1 : index
    %c8_439 = arith.constant 8 : index
    %c0_440 = arith.constant 0 : index
    %c0_441 = arith.constant 0 : index
    %877 = vector.load %arg10[%c1_438, %c8_439, %c0_440, %c0_441] : memref<2x9x4x1xf32, #tpu.memory_space<vmem>>, vector<1x1x4x1xf32>
    %878 = vector.shape_cast %877 : vector<1x1x4x1xf32> to vector<4x1xf32>
    %879 = vector.broadcast %878 : vector<4x1xf32> to vector<4x256xf32>
    %880 = arith.addf %876, %879 : vector<4x256xf32>
    %881 = arith.mulf %880, %684 : vector<4x256xf32>
    %882 = arith.addf %865, %881 : vector<4x256xf32>
    %cst_442 = arith.constant 0.000000e+00 : f32
    %883 = vector.broadcast %cst_442 : f32 to vector<4x256xf32>
    %884 = arith.subf %883, %882 : vector<4x256xf32>
    %885 = math.exp %884 : vector<4x256xf32>
    %cst_443 = arith.constant 1.000000e+00 : f32
    %886 = vector.broadcast %cst_443 : f32 to vector<4x256xf32>
    %887 = arith.addf %886, %885 : vector<4x256xf32>
    %cst_444 = arith.constant 1.000000e+00 : f32
    %888 = vector.broadcast %cst_444 : f32 to vector<4x256xf32>
    %889 = arith.divf %888, %887 : vector<4x256xf32>
    %890 = arith.mulf %882, %889 : vector<4x256xf32>
    %cst_445 = arith.constant 0.000000e+00 : f32
    %891 = vector.broadcast %cst_445 : f32 to vector<4x256xf32>
    %cst_446 = arith.constant dense<0.000000e+00> : vector<4x256xf32>
    %892 = tpu.matmul %206, %890, %cst_446 {dimension_numbers = #tpu.dot_dimension_numbers<[1], [0], [0], [1], [0, 0, 1, 1], [], []>} : vector<4x4xf32>, vector<4x256xf32>, vector<4x256xf32> -> vector<4x256xf32>
    %893 = vector.broadcast %208 : vector<4x1xf32> to vector<4x256xf32>
    %894 = arith.addf %892, %893 : vector<4x256xf32>
    %cst_447 = arith.constant 0.000000e+00 : f32
    %895 = vector.broadcast %cst_447 : f32 to vector<4x256xf32>
    %896 = arith.subf %895, %894 : vector<4x256xf32>
    %897 = math.exp %896 : vector<4x256xf32>
    %cst_448 = arith.constant 1.000000e+00 : f32
    %898 = vector.broadcast %cst_448 : f32 to vector<4x256xf32>
    %899 = arith.addf %898, %897 : vector<4x256xf32>
    %cst_449 = arith.constant 1.000000e+00 : f32
    %900 = vector.broadcast %cst_449 : f32 to vector<4x256xf32>
    %901 = arith.divf %900, %899 : vector<4x256xf32>
    %902 = arith.mulf %894, %901 : vector<4x256xf32>
    %c1_450 = arith.constant 1 : index
    %c0_451 = arith.constant 0 : index
    %c0_452 = arith.constant 0 : index
    %c0_453 = arith.constant 0 : index
    %903 = vector.load %arg13[%c1_450, %c0_451, %c0_452, %c0_453] : memref<2x9x4x1xf32, #tpu.memory_space<vmem>>, vector<1x1x4x1xf32>
    %904 = vector.shape_cast %903 : vector<1x1x4x1xf32> to vector<4x1xf32>
    %905 = vector.broadcast %904 : vector<4x1xf32> to vector<4x256xf32>
    %906 = arith.addf %902, %905 : vector<4x256xf32>
    %907 = arith.mulf %906, %658 : vector<4x256xf32>
    %908 = arith.addf %891, %907 : vector<4x256xf32>
    %cst_454 = arith.constant dense<0.000000e+00> : vector<4x256xf32>
    %909 = tpu.matmul %210, %890, %cst_454 {dimension_numbers = #tpu.dot_dimension_numbers<[1], [0], [0], [1], [0, 0, 1, 1], [], []>} : vector<4x4xf32>, vector<4x256xf32>, vector<4x256xf32> -> vector<4x256xf32>
    %910 = vector.broadcast %212 : vector<4x1xf32> to vector<4x256xf32>
    %911 = arith.addf %909, %910 : vector<4x256xf32>
    %cst_455 = arith.constant 0.000000e+00 : f32
    %912 = vector.broadcast %cst_455 : f32 to vector<4x256xf32>
    %913 = arith.subf %912, %911 : vector<4x256xf32>
    %914 = math.exp %913 : vector<4x256xf32>
    %cst_456 = arith.constant 1.000000e+00 : f32
    %915 = vector.broadcast %cst_456 : f32 to vector<4x256xf32>
    %916 = arith.addf %915, %914 : vector<4x256xf32>
    %cst_457 = arith.constant 1.000000e+00 : f32
    %917 = vector.broadcast %cst_457 : f32 to vector<4x256xf32>
    %918 = arith.divf %917, %916 : vector<4x256xf32>
    %919 = arith.mulf %911, %918 : vector<4x256xf32>
    %c1_458 = arith.constant 1 : index
    %c1_459 = arith.constant 1 : index
    %c0_460 = arith.constant 0 : index
    %c0_461 = arith.constant 0 : index
    %920 = vector.load %arg13[%c1_458, %c1_459, %c0_460, %c0_461] : memref<2x9x4x1xf32, #tpu.memory_space<vmem>>, vector<1x1x4x1xf32>
    %921 = vector.shape_cast %920 : vector<1x1x4x1xf32> to vector<4x1xf32>
    %922 = vector.broadcast %921 : vector<4x1xf32> to vector<4x256xf32>
    %923 = arith.addf %919, %922 : vector<4x256xf32>
    %924 = arith.mulf %923, %664 : vector<4x256xf32>
    %925 = arith.addf %908, %924 : vector<4x256xf32>
    %cst_462 = arith.constant dense<0.000000e+00> : vector<4x256xf32>
    %926 = tpu.matmul %214, %890, %cst_462 {dimension_numbers = #tpu.dot_dimension_numbers<[1], [0], [0], [1], [0, 0, 1, 1], [], []>} : vector<4x4xf32>, vector<4x256xf32>, vector<4x256xf32> -> vector<4x256xf32>
    %927 = vector.broadcast %216 : vector<4x1xf32> to vector<4x256xf32>
    %928 = arith.addf %926, %927 : vector<4x256xf32>
    %cst_463 = arith.constant 0.000000e+00 : f32
    %929 = vector.broadcast %cst_463 : f32 to vector<4x256xf32>
    %930 = arith.subf %929, %928 : vector<4x256xf32>
    %931 = math.exp %930 : vector<4x256xf32>
    %cst_464 = arith.constant 1.000000e+00 : f32
    %932 = vector.broadcast %cst_464 : f32 to vector<4x256xf32>
    %933 = arith.addf %932, %931 : vector<4x256xf32>
    %cst_465 = arith.constant 1.000000e+00 : f32
    %934 = vector.broadcast %cst_465 : f32 to vector<4x256xf32>
    %935 = arith.divf %934, %933 : vector<4x256xf32>
    %936 = arith.mulf %928, %935 : vector<4x256xf32>
    %c1_466 = arith.constant 1 : index
    %c2_467 = arith.constant 2 : index
    %c0_468 = arith.constant 0 : index
    %c0_469 = arith.constant 0 : index
    %937 = vector.load %arg13[%c1_466, %c2_467, %c0_468, %c0_469] : memref<2x9x4x1xf32, #tpu.memory_space<vmem>>, vector<1x1x4x1xf32>
    %938 = vector.shape_cast %937 : vector<1x1x4x1xf32> to vector<4x1xf32>
    %939 = vector.broadcast %938 : vector<4x1xf32> to vector<4x256xf32>
    %940 = arith.addf %936, %939 : vector<4x256xf32>
    %941 = arith.mulf %940, %681 : vector<4x256xf32>
    %942 = arith.addf %925, %941 : vector<4x256xf32>
    %cst_470 = arith.constant dense<0.000000e+00> : vector<4x256xf32>
    %943 = tpu.matmul %218, %890, %cst_470 {dimension_numbers = #tpu.dot_dimension_numbers<[1], [0], [0], [1], [0, 0, 1, 1], [], []>} : vector<4x4xf32>, vector<4x256xf32>, vector<4x256xf32> -> vector<4x256xf32>
    %944 = vector.broadcast %220 : vector<4x1xf32> to vector<4x256xf32>
    %945 = arith.addf %943, %944 : vector<4x256xf32>
    %cst_471 = arith.constant 0.000000e+00 : f32
    %946 = vector.broadcast %cst_471 : f32 to vector<4x256xf32>
    %947 = arith.subf %946, %945 : vector<4x256xf32>
    %948 = math.exp %947 : vector<4x256xf32>
    %cst_472 = arith.constant 1.000000e+00 : f32
    %949 = vector.broadcast %cst_472 : f32 to vector<4x256xf32>
    %950 = arith.addf %949, %948 : vector<4x256xf32>
    %cst_473 = arith.constant 1.000000e+00 : f32
    %951 = vector.broadcast %cst_473 : f32 to vector<4x256xf32>
    %952 = arith.divf %951, %950 : vector<4x256xf32>
    %953 = arith.mulf %945, %952 : vector<4x256xf32>
    %c1_474 = arith.constant 1 : index
    %c3_475 = arith.constant 3 : index
    %c0_476 = arith.constant 0 : index
    %c0_477 = arith.constant 0 : index
    %954 = vector.load %arg13[%c1_474, %c3_475, %c0_476, %c0_477] : memref<2x9x4x1xf32, #tpu.memory_space<vmem>>, vector<1x1x4x1xf32>
    %955 = vector.shape_cast %954 : vector<1x1x4x1xf32> to vector<4x1xf32>
    %956 = vector.broadcast %955 : vector<4x1xf32> to vector<4x256xf32>
    %957 = arith.addf %953, %956 : vector<4x256xf32>
    %958 = arith.mulf %957, %655 : vector<4x256xf32>
    %959 = arith.addf %942, %958 : vector<4x256xf32>
    %cst_478 = arith.constant dense<0.000000e+00> : vector<4x256xf32>
    %960 = tpu.matmul %222, %890, %cst_478 {dimension_numbers = #tpu.dot_dimension_numbers<[1], [0], [0], [1], [0, 0, 1, 1], [], []>} : vector<4x4xf32>, vector<4x256xf32>, vector<4x256xf32> -> vector<4x256xf32>
    %961 = vector.broadcast %224 : vector<4x1xf32> to vector<4x256xf32>
    %962 = arith.addf %960, %961 : vector<4x256xf32>
    %cst_479 = arith.constant 0.000000e+00 : f32
    %963 = vector.broadcast %cst_479 : f32 to vector<4x256xf32>
    %964 = arith.subf %963, %962 : vector<4x256xf32>
    %965 = math.exp %964 : vector<4x256xf32>
    %cst_480 = arith.constant 1.000000e+00 : f32
    %966 = vector.broadcast %cst_480 : f32 to vector<4x256xf32>
    %967 = arith.addf %966, %965 : vector<4x256xf32>
    %cst_481 = arith.constant 1.000000e+00 : f32
    %968 = vector.broadcast %cst_481 : f32 to vector<4x256xf32>
    %969 = arith.divf %968, %967 : vector<4x256xf32>
    %970 = arith.mulf %962, %969 : vector<4x256xf32>
    %c1_482 = arith.constant 1 : index
    %c5_483 = arith.constant 5 : index
    %c0_484 = arith.constant 0 : index
    %c0_485 = arith.constant 0 : index
    %971 = vector.load %arg13[%c1_482, %c5_483, %c0_484, %c0_485] : memref<2x9x4x1xf32, #tpu.memory_space<vmem>>, vector<1x1x4x1xf32>
    %972 = vector.shape_cast %971 : vector<1x1x4x1xf32> to vector<4x1xf32>
    %973 = vector.broadcast %972 : vector<4x1xf32> to vector<4x256xf32>
    %974 = arith.addf %970, %973 : vector<4x256xf32>
    %975 = arith.mulf %974, %678 : vector<4x256xf32>
    %976 = arith.addf %959, %975 : vector<4x256xf32>
    %cst_486 = arith.constant dense<0.000000e+00> : vector<4x256xf32>
    %977 = tpu.matmul %226, %890, %cst_486 {dimension_numbers = #tpu.dot_dimension_numbers<[1], [0], [0], [1], [0, 0, 1, 1], [], []>} : vector<4x4xf32>, vector<4x256xf32>, vector<4x256xf32> -> vector<4x256xf32>
    %978 = vector.broadcast %228 : vector<4x1xf32> to vector<4x256xf32>
    %979 = arith.addf %977, %978 : vector<4x256xf32>
    %cst_487 = arith.constant 0.000000e+00 : f32
    %980 = vector.broadcast %cst_487 : f32 to vector<4x256xf32>
    %981 = arith.subf %980, %979 : vector<4x256xf32>
    %982 = math.exp %981 : vector<4x256xf32>
    %cst_488 = arith.constant 1.000000e+00 : f32
    %983 = vector.broadcast %cst_488 : f32 to vector<4x256xf32>
    %984 = arith.addf %983, %982 : vector<4x256xf32>
    %cst_489 = arith.constant 1.000000e+00 : f32
    %985 = vector.broadcast %cst_489 : f32 to vector<4x256xf32>
    %986 = arith.divf %985, %984 : vector<4x256xf32>
    %987 = arith.mulf %979, %986 : vector<4x256xf32>
    %c1_490 = arith.constant 1 : index
    %c6_491 = arith.constant 6 : index
    %c0_492 = arith.constant 0 : index
    %c0_493 = arith.constant 0 : index
    %988 = vector.load %arg13[%c1_490, %c6_491, %c0_492, %c0_493] : memref<2x9x4x1xf32, #tpu.memory_space<vmem>>, vector<1x1x4x1xf32>
    %989 = vector.shape_cast %988 : vector<1x1x4x1xf32> to vector<4x1xf32>
    %990 = vector.broadcast %989 : vector<4x1xf32> to vector<4x256xf32>
    %991 = arith.addf %987, %990 : vector<4x256xf32>
    %992 = arith.mulf %991, %661 : vector<4x256xf32>
    %993 = arith.addf %976, %992 : vector<4x256xf32>
    %cst_494 = arith.constant dense<0.000000e+00> : vector<4x256xf32>
    %994 = tpu.matmul %230, %890, %cst_494 {dimension_numbers = #tpu.dot_dimension_numbers<[1], [0], [0], [1], [0, 0, 1, 1], [], []>} : vector<4x4xf32>, vector<4x256xf32>, vector<4x256xf32> -> vector<4x256xf32>
    %995 = vector.broadcast %232 : vector<4x1xf32> to vector<4x256xf32>
    %996 = arith.addf %994, %995 : vector<4x256xf32>
    %cst_495 = arith.constant 0.000000e+00 : f32
    %997 = vector.broadcast %cst_495 : f32 to vector<4x256xf32>
    %998 = arith.subf %997, %996 : vector<4x256xf32>
    %999 = math.exp %998 : vector<4x256xf32>
    %cst_496 = arith.constant 1.000000e+00 : f32
    %1000 = vector.broadcast %cst_496 : f32 to vector<4x256xf32>
    %1001 = arith.addf %1000, %999 : vector<4x256xf32>
    %cst_497 = arith.constant 1.000000e+00 : f32
    %1002 = vector.broadcast %cst_497 : f32 to vector<4x256xf32>
    %1003 = arith.divf %1002, %1001 : vector<4x256xf32>
    %1004 = arith.mulf %996, %1003 : vector<4x256xf32>
    %c1_498 = arith.constant 1 : index
    %c7_499 = arith.constant 7 : index
    %c0_500 = arith.constant 0 : index
    %c0_501 = arith.constant 0 : index
    %1005 = vector.load %arg13[%c1_498, %c7_499, %c0_500, %c0_501] : memref<2x9x4x1xf32, #tpu.memory_space<vmem>>, vector<1x1x4x1xf32>
    %1006 = vector.shape_cast %1005 : vector<1x1x4x1xf32> to vector<4x1xf32>
    %1007 = vector.broadcast %1006 : vector<4x1xf32> to vector<4x256xf32>
    %1008 = arith.addf %1004, %1007 : vector<4x256xf32>
    %1009 = arith.mulf %1008, %667 : vector<4x256xf32>
    %1010 = arith.addf %993, %1009 : vector<4x256xf32>
    %cst_502 = arith.constant dense<0.000000e+00> : vector<4x256xf32>
    %1011 = tpu.matmul %234, %890, %cst_502 {dimension_numbers = #tpu.dot_dimension_numbers<[1], [0], [0], [1], [0, 0, 1, 1], [], []>} : vector<4x4xf32>, vector<4x256xf32>, vector<4x256xf32> -> vector<4x256xf32>
    %1012 = vector.broadcast %236 : vector<4x1xf32> to vector<4x256xf32>
    %1013 = arith.addf %1011, %1012 : vector<4x256xf32>
    %cst_503 = arith.constant 0.000000e+00 : f32
    %1014 = vector.broadcast %cst_503 : f32 to vector<4x256xf32>
    %1015 = arith.subf %1014, %1013 : vector<4x256xf32>
    %1016 = math.exp %1015 : vector<4x256xf32>
    %cst_504 = arith.constant 1.000000e+00 : f32
    %1017 = vector.broadcast %cst_504 : f32 to vector<4x256xf32>
    %1018 = arith.addf %1017, %1016 : vector<4x256xf32>
    %cst_505 = arith.constant 1.000000e+00 : f32
    %1019 = vector.broadcast %cst_505 : f32 to vector<4x256xf32>
    %1020 = arith.divf %1019, %1018 : vector<4x256xf32>
    %1021 = arith.mulf %1013, %1020 : vector<4x256xf32>
    %c1_506 = arith.constant 1 : index
    %c8_507 = arith.constant 8 : index
    %c0_508 = arith.constant 0 : index
    %c0_509 = arith.constant 0 : index
    %1022 = vector.load %arg13[%c1_506, %c8_507, %c0_508, %c0_509] : memref<2x9x4x1xf32, #tpu.memory_space<vmem>>, vector<1x1x4x1xf32>
    %1023 = vector.shape_cast %1022 : vector<1x1x4x1xf32> to vector<4x1xf32>
    %1024 = vector.broadcast %1023 : vector<4x1xf32> to vector<4x256xf32>
    %1025 = arith.addf %1021, %1024 : vector<4x256xf32>
    %1026 = arith.mulf %1025, %684 : vector<4x256xf32>
    %1027 = arith.addf %1010, %1026 : vector<4x256xf32>
    %cst_510 = arith.constant dense<0.000000e+00> : vector<3x256xf32>
    %1028 = tpu.matmul %1, %1027, %cst_510 {dimension_numbers = #tpu.dot_dimension_numbers<[1], [0], [0], [1], [0, 0, 1, 1], [], []>} : vector<3x4xf32>, vector<4x256xf32>, vector<3x256xf32> -> vector<3x256xf32>
    %1029 = arith.mulf %1028, %643 : vector<3x256xf32>
    %cst_511 = arith.constant dense<0.000000e+00> : vector<256xf32>
    %1030 = vector.multi_reduction <add>, %1029, %cst_511 [0] : vector<3x256xf32> to vector<256xf32>
    %1031 = vector.shape_cast %1030 : vector<256xf32> to vector<1x256xf32>
    %1032 = vector.broadcast %1031 : vector<1x256xf32> to vector<3x256xf32>
    %1033 = arith.subf %1028, %1032 : vector<3x256xf32>
    %c1_512 = arith.constant 1 : index
    %c0_513 = arith.constant 0 : index
    %c0_514 = arith.constant 0 : index
    %1034 = vector.load %arg14[%c1_512, %c0_513, %c0_514] : memref<2x3x256xf32, #tpu.memory_space<vmem>>, vector<1x3x256xf32>
    %1035 = vector.shape_cast %1034 : vector<1x3x256xf32> to vector<3x256xf32>
    %1036 = vector.shape_cast %1033 : vector<3x256xf32> to vector<1x3x256xf32>
    tpu.vector_store %arg14[%c1_512, %c0_513, %c0_514], %1036 {strides = array<i32>} : memref<2x3x256xf32, #tpu.memory_space<vmem>>, vector<1x3x256xf32>,
    return
  }
  func.func @transform_0(%arg0: i32) -> (i32, i32, i32) {
    %c0_i32 = arith.constant 0 : i32
    %c0_i32_0 = arith.constant 0 : i32
    %c0_i32_1 = arith.constant 0 : i32
    return %arg0, %c0_i32, %c0_i32_0 : i32, i32, i32
  }
  func.func @transform_1(%arg0: i32) -> (i32, i32, i32) {
    %c0_i32 = arith.constant 0 : i32
    %c0_i32_0 = arith.constant 0 : i32
    %c0_i32_1 = arith.constant 0 : i32
    return %arg0, %c0_i32, %c0_i32_0 : i32, i32, i32
  }
  func.func @transform_2(%arg0: i32) -> (i32, i32) {
    %c0_i32 = arith.constant 0 : i32
    %c0_i32_0 = arith.constant 0 : i32
    %c0_i32_1 = arith.constant 0 : i32
    return %c0_i32, %c0_i32_0 : i32, i32
  }
  func.func @transform_3(%arg0: i32) -> (i32, i32) {
    %c0_i32 = arith.constant 0 : i32
    %c0_i32_0 = arith.constant 0 : i32
    %c0_i32_1 = arith.constant 0 : i32
    return %c0_i32, %c0_i32_0 : i32, i32
  }
  func.func @transform_4(%arg0: i32) -> (i32, i32) {
    %c0_i32 = arith.constant 0 : i32
    %c0_i32_0 = arith.constant 0 : i32
    %c0_i32_1 = arith.constant 0 : i32
    return %c0_i32, %c0_i32_0 : i32, i32
  }
  func.func @transform_5(%arg0: i32) -> (i32, i32, i32) {
    %c0_i32 = arith.constant 0 : i32
    %c0_i32_0 = arith.constant 0 : i32
    %c0_i32_1 = arith.constant 0 : i32
    %c0_i32_2 = arith.constant 0 : i32
    return %c0_i32, %c0_i32_0, %c0_i32_1 : i32, i32, i32
  }
  func.func @transform_6(%arg0: i32) -> (i32, i32) {
    %c0_i32 = arith.constant 0 : i32
    %c0_i32_0 = arith.constant 0 : i32
    %c0_i32_1 = arith.constant 0 : i32
    return %c0_i32, %c0_i32_0 : i32, i32
  }
  func.func @transform_7(%arg0: i32) -> (i32, i32, i32) {
    %c0_i32 = arith.constant 0 : i32
    %c0_i32_0 = arith.constant 0 : i32
    %c0_i32_1 = arith.constant 0 : i32
    %c0_i32_2 = arith.constant 0 : i32
    return %c0_i32, %c0_i32_0, %c0_i32_1 : i32, i32, i32
  }
  func.func @transform_8(%arg0: i32) -> (i32, i32, i32) {
    %c0_i32 = arith.constant 0 : i32
    %c0_i32_0 = arith.constant 0 : i32
    %c0_i32_1 = arith.constant 0 : i32
    %c0_i32_2 = arith.constant 0 : i32
    return %c0_i32, %c0_i32_0, %c0_i32_1 : i32, i32, i32
  }
  func.func @transform_9(%arg0: i32) -> (i32, i32, i32, i32) {
    %c0_i32 = arith.constant 0 : i32
    %c0_i32_0 = arith.constant 0 : i32
    %c0_i32_1 = arith.constant 0 : i32
    %c0_i32_2 = arith.constant 0 : i32
    return %arg0, %c0_i32, %c0_i32_0, %c0_i32_1 : i32, i32, i32, i32
  }
  func.func @transform_10(%arg0: i32) -> (i32, i32, i32) {
    %c0_i32 = arith.constant 0 : i32
    %c0_i32_0 = arith.constant 0 : i32
    %c0_i32_1 = arith.constant 0 : i32
    %c0_i32_2 = arith.constant 0 : i32
    return %c0_i32, %c0_i32_0, %c0_i32_1 : i32, i32, i32
  }
  func.func @transform_11(%arg0: i32) -> (i32, i32, i32) {
    %c0_i32 = arith.constant 0 : i32
    %c0_i32_0 = arith.constant 0 : i32
    %c0_i32_1 = arith.constant 0 : i32
    %c0_i32_2 = arith.constant 0 : i32
    return %c0_i32, %c0_i32_0, %c0_i32_1 : i32, i32, i32
  }
  func.func @transform_12(%arg0: i32) -> (i32, i32, i32, i32) {
    %c0_i32 = arith.constant 0 : i32
    %c0_i32_0 = arith.constant 0 : i32
    %c0_i32_1 = arith.constant 0 : i32
    %c0_i32_2 = arith.constant 0 : i32
    return %arg0, %c0_i32, %c0_i32_0, %c0_i32_1 : i32, i32, i32, i32
  }
  func.func @transform_13(%arg0: i32) -> (i32, i32, i32) {
    %c0_i32 = arith.constant 0 : i32
    %c0_i32_0 = arith.constant 0 : i32
    %c0_i32_1 = arith.constant 0 : i32
    return %arg0, %c0_i32, %c0_i32_0 : i32, i32, i32
  }
}

</mosaic_0001>

<bundles_post_ra>
// kernel: tpu_custom_call.1
= control target key start
LH: loop header
LB: loop body
LE: loop exit
PB: predicated region body
PF: predicated region fallthrough
CT: control target
= control target key end

     0   :  { %s6809_s25 = smov 0   ;;  %s8280_s0 = inlined_call_operand.vmem [shape: s32[4,1,256], index: 0, kind: input, shape index: {}]   ;;  %s8281_s1 = inlined_call_operand.vmem [shape: f32[4,1,1], index: 1, kind: input, shape index: {}]   ;;  %s8282_s2 = inlined_call_operand.vmem [shape: s32[2,256], index: 2, kind: input, shape index: {}]   ;;  %s8283_s3 = inlined_call_operand.vmem [shape: s32[3,1], index: 3, kind: input, shape index: {}]   ;;  %s8284_s4 = inlined_call_operand.vmem [shape: f32[4,3], index: 4, kind: input, shape index: {}]   ;;  %s8285_s5 = inlined_call_operand.vmem [shape: f32[9,4,4], index: 5, kind: input, shape index: {}]   ;;  %s8286_s6 = inlined_call_operand.vmem [shape: f32[3,4], index: 6, kind: input, shape index: {}]   ;;  %s8287_s7 = inlined_call_operand.vmem [shape: f32[9,4,4], index: 7, kind: input, shape index: {}]   ;;  %s8288_s8 = inlined_call_operand.vmem [shape: f32[9,4,1], index: 8, kind: input, shape index: {}]   ;;  %s8289_s9 = inlined_call_operand.vmem [shape: f32[4,9,4,1], index: 9, kind: input, shape index: {}]   ;;  %s8290_s10 = inlined_call_operand.vmem [shape: f32[9,4,4], index: 10, kind: input, shape index: {}]   ;;  %s8291_s11 = inlined_call_operand.vmem [shape: f32[9,4,1], index: 11, kind: input, shape index: {}]   ;;  %s8292_s12 = inlined_call_operand.vmem [shape: f32[4,9,4,1], index: 12, kind: input, shape index: {}]   ;;  %s8293_s13 = inlined_call_operand.vmem [shape: f32[4,3,256], index: 13, kind: output, shape index: {}]  }
   0x1 LB: > { %s6113_s26 = sadd.s32 4294967295, %s6729_s25   ;;  %p6117_p0 = scmp.ge.s32.totalorder %s6729_s25, 1  ;;  %s6729_s25 = sphi %s6809_s25, %s23_s25  }
   0x2   : > { %p422_p1 = scmp.lt.s32.totalorder %s6729_s25, 3 }
   0x4   : > { %p423_p2 = pnand %p6117_p0, %p422_p1 }
   0x6   : > { %426 = sbr.rel (%p423_p2) target bundleno = 2800 (0xaf0), region = 72 }
   0xd   : > { %v517_v0 = vld [vmem:[%s8283_s3] sm:$0x7]  ;;  %v6731_v1 = vmov 0   ;;  %v8322_v2 = vmov 0.0   ;;  %s6118_s29 = sshll.u32 %s6113_s26, 1  ;;  %v630_v3 = vlaneseq  ;;  %vm8295_vm0 = vcmask 1042432  }
   0xe   : > { %6407 = vset.pattern.permute.xlu0 %v6731_v1  ;;  %6408 = vset.pattern.permute.xlu1 %v6731_v1  ;;  %p484_p3 = scmp.lt.s32.totalorder %s6118_s29, 3  ;;  %v515_v13 = vld [vmem:[%s8284_s4] sm:$0xf]  ;;  %vm8294_vm3 = vcmask 23552   ;;  %s6733_s23 = smov 1   ;;  %v8400_v63 = vmov 0 }
   0xf   : > { %628 = vperm.xlu0 %6407, %v517_v0   ;;  %719 = vmatprep.mubr.f32.mxu0 %v8322_v2  ;;  %v631_v4 = vshrl.u32 %v630_v3, 7  ;;  %v6128_v14 = vld [vmem:[%s8282_s2 + $0x1] ss:$2 sm:$0x3]  ;;  %s6734_s24 = smov 113   ;;  %s6735_s26 = smov 127  }
  0x10   : > { %957 = vmatprep.mubr.f32.mxu1 %v8322_v2  ;;  %s8689_s29 = smov (!%p484_p3, %s6118_s29), 3  ;;  %v518_v15 = vld [vmem:[%s8282_s2] ss:$2 sm:$0x3]  ;;  %v526_v16 = vadd.s32 4294967295, %v6128_v14  ;;  %v539_v19 = vadd.s32 1, %v6128_v14 }
  0x11   : > { %s6119_s30 = sshll.u32 %s8689_s29, 1  ;;  %v6832_v5 = vsub.s32 0, %v631_v4  ;;  %v6834_v6 = vsub.s32 1, %v631_v4  ;;  %vm546_vm6 = vcmp.ge.s32.totalorder %v518_v15, 0  ;;  %vm547_vm8 = vcmp.le.s32.totalorder %v518_v15, 15  ;;  %s8304_s27 = smov 15  }
  0x12   : > { %s6830_s16 = scalar_lea.vmem %s8280_s0, %s6119_s30  ;;  %vm527_vm4 = vcmp.ge.s32.totalorder %v526_v16, 0  ;;  %vm528_vm5 = vcmp.le.s32.totalorder %v526_v16, 15  ;;  %vm6868_vm9 = vmand %vm546_vm6, %vm547_vm8  ;;  %vm540_vm11 = vcmp.ge.s32.totalorder %v539_v19, 0  ;;  %vm541_vm12 = vcmp.le.s32.totalorder %v539_v19, 15  ;;  %s8300_s28 = smov 16  }
  0x13   : > { %v626_v7 = vld [vmem:[%s6830_s16] sm:$0x3]  ;;  %vm6864_vm7 = vmand %vm527_vm4, %vm528_vm5  ;;  %vm533_vm15 = vcmp.ge.s32.totalorder %v6128_v14, 0  ;;  %v555_v23 = vadd.s32 1, %v518_v15  ;;  %v522_v26 = vadd.s32 4294967295, %v518_v15  ;;  %vm8308_vm8 = vcmask 130048   ;;  %s7072_s19 = scalar_lea.vmem %s8281_s1, %s8689_s29 }
  0x14   : > { %v637_v8 = vrot.slane %v626_v7, %v6834_v6  ;;  %v633_v9 = vrot.slane %v626_v7, %v6832_v5  ;;  %vm6876_vm13 = vmand %vm540_vm11, %vm541_vm12  ;;  %vm748_vm11 = vcmp.lt.s32.totalorder %v6128_v14, 1  ;;  %s8302_s30 = smov 112   ;;  %vm8306_vm14 = vcmask 31744   ;;  %v6143_v15 = vld [vmem:[%s8288_s8 + $0x14] sm:$0xf]  ;;  %s6390_s14 = smul.u32 36, %s8689_s29 }
  0x15   : > { %vm556_vm4 = vcmp.ge.s32.totalorder %v555_v23, 0  ;;  %vm557_vm5 = vcmp.le.s32.totalorder %v555_v23, 15  ;;  %v749_v27 = vsel %vm748_vm11, 1, %v6731_v1  ;;  %vm523_vm12 = vcmp.ge.s32.totalorder %v522_v26, 0  ;;  %v6147_v16 = vld [vmem:[%s8288_s8 + $0x1c] sm:$0xf] }
  0x16   : > { %vm6904_vm6 = vmand %vm556_vm4, %vm557_vm5  ;;  %v753_v29 = vrot.slane %v749_v27, %v6832_v5  ;;  %v757_v30 = vrot.slane %v749_v27, %v6834_v6  ;;  %vm8297_vm4 = vcmask 7168   ;;  %vm8296_vm5 = vcmask 924672   ;;  %s7050_s18 = scalar_lea.vmem %s8289_s9, %s6390_s14  ;;  %v6153_v27 = vld [vmem:[%s8291_s11 + $0x8] sm:$0xf]  ;;  %s8532_s20 = smov 15  }
  0x17   : > { %v1739_v19 = vld [vmem:[%s7050_s18] sm:$0xf]  ;;  %v6220_v23 = vld [vmem:[%s7050_s18 + $0x1c] sm:$0xf] }
  0x18   : > { %vm6931_vm11 = vcmp.eq.s32.totalorder %v757_v30, 1  ;;  %v6193_v30 = vld [vmem:[%s7072_s19] ss:$0 sm:$0xff] }
  0x8e   : > { %v6839_v10 = vpop.permute.xlu0 %628 }
  0x8f   : > { %vm639_vm1 = vcmp.eq.s32.totalorder %v6839_v10, %v637_v8  ;;  %vm638_vm2 = vcmp.eq.s32.totalorder %v6839_v10, %v633_v9  ;;  %v6129_v9 = vld [vmem:[%s8285_s5 + $0x4] sm:$0xf] }
  0x90   : > { %v6844_v11 = vsel %vm639_vm1, 1.0, %v8322_v2  ;;  %v6847_v12 = vsel %vm638_vm2, 1.0, %v8322_v2  ;;  %vm534_vm1 = vcmp.le.s32.totalorder %v6128_v14, 15 }
  0x91   : > { %8376 = vst [vmem:[#allocation2_spill] sm:$0xff] %v6844_v11  ;;  %8377 = vst [vmem:[#allocation3_spill] sm:$0xff] %v6847_v12  ;;  %6166 = vmatprep.subr.msk.mxu0 %vm8295_vm0, %v6844_v11 }
  0x92   : > { %6167 = vmatpush1.msk.msra.mxu0 %vm8295_vm0, %v6847_v12  ;;  %vm6898_vm2 = vmand %vm533_vm15, %vm534_vm1  ;;  %vm524_vm15 = vcmp.le.s32.totalorder %v522_v26, 15  ;;  %vm822_vm1 = vcmp.ge.s32.totalorder %v6128_v14, 15  ;;  %vm6927_vm0 = vcmp.eq.s32.totalorder %v753_v29, 1  ;;  %v6139_v14 = vld [vmem:[%s8288_s8 + $0x8] sm:$0xf] }
  0x93   : > { %6168 = vmatmul.mubr.msk.f32.vlgmr.msra.gmra.mrb[0].mxu0 %vm8294_vm3, %v515_v13  ;;  %vm6923_vm3 = vmand %vm523_vm12, %vm524_vm15  ;;  %v823_v37 = vsel %vm822_vm1, 1, %v6731_v1  ;;  %vm8298_vm15 = vcmask 1039360   ;;  %vm8299_vm1 = vcmask 121856   ;;  %v567_v13 = vld [vmem:[%s8288_s8] sm:$0xf] }
  0x94   : > { %1718 = vmatprep.mubr.f32.mxu0 %v8322_v2  ;;  %vm536_vm12 = vmand %vm6923_vm3, %vm6898_vm2  ;;  %v827_v45 = vrot.slane %v823_v37, %v6832_v5  ;;  %v831_v46 = vrot.slane %v823_v37, %v6834_v6  ;;  %v597_v26 = vld [vmem:[%s8291_s11] sm:$0xf]  ;;  %v6161_v29 = vld [vmem:[%s8291_s11 + $0x1c] sm:$0xf] }
  0x95   : > { %v869_v48 = vsel %vm536_vm12, 1, %v6731_v1  ;;  %vm8307_vm12 = vcmask 1043456   ;;  %v6149_v37 = vld [vmem:[%s8288_s8 + $0x20] sm:$0xf] }
  0x96   : > { %v877_v52 = vrot.slane %v869_v48, %v6834_v6  ;;  %v873_v53 = vrot.slane %v869_v48, %v6832_v5 }
 0x166   : > { %v6884_v21 = vpop.f32.mrb[0].mxu0 }
 0x167   : > { %731 = vrot.lane.b32.xlu1 %v6884_v21, %s6733_s23  ;;  %v6888_v22 = vpop.f32.mrb[1].mxu0 }
 0x168   : > { %727 = vrot.lane.b32.xlu0 %v6888_v22, %s6733_s23 }
 0x16b   : > { %738 = vrot.lane.b32.xlu1 %v6884_v21, %s6734_s24 }
 0x16c   : > { %740 = vrot.lane.b32.xlu0 %v6888_v22, %s6734_s24 }
 0x16f   : > { %802 = vrot.lane.b32.xlu1 %v6884_v21, %s6735_s26 }
 0x170   : > { %804 = vrot.lane.b32.xlu0 %v6888_v22, %s6735_s26 }
 0x173   : > { %812 = vrot.lane.b32.xlu1 %v6888_v22, %s8304_s27 }
 0x174   : > { %815 = vrot.lane.b32.xlu0 %v6884_v21, %s8304_s27 }
 0x177   : > { %784 = vrot.lane.b32.xlu1 %v6888_v22, %s8300_s28 }
 0x178   : > { %787 = vrot.lane.b32.xlu0 %v6884_v21, %s8300_s28 }
 0x1d9   : > { %v732_v28 = vpop.permute.xlu1 %731 }
 0x1da   : > { %v728_v31 = vpop.permute.xlu0 %727 }
 0x1db   : > { %v734_v38 = vsel %vm8297_vm4, %v732_v28, %v728_v31  ;;  %v737_v39 = vsel %vm8297_vm4, %v728_v31, %v732_v28  ;;  %vm6967_vm4 = vcmp.eq.s32.totalorder %v831_v46, 1  ;;  %v6157_v28 = vld [vmem:[%s8291_s11 + $0x14] sm:$0xf]  ;;  %v6137_v31 = vld [vmem:[%s8288_s8 + $0x4] sm:$0xf] }
 0x1dc   : > { %v6155_v46 = vld [vmem:[%s8291_s11 + $0xc] sm:$0xf] }
 0x1dd   : > { %v739_v33 = vpop.permute.xlu1 %738 }
 0x1de   : > { %v741_v36 = vpop.permute.xlu0 %740 }
 0x1df   : > { %v743_v40 = vsel %vm8296_vm5, %v739_v33, %v741_v36  ;;  %v747_v41 = vsel %vm8296_vm5, %v741_v36, %v739_v33  ;;  %vm6963_vm5 = vcmp.eq.s32.totalorder %v827_v45, 1  ;;  %v6141_v33 = vld [vmem:[%s8288_s8 + $0xc] sm:$0xf]  ;;  %v6145_v36 = vld [vmem:[%s8288_s8 + $0x18] sm:$0xf] }
 0x1e0   : > { %v6950_v42 = vsel %vm6927_vm0, %v743_v40, %v737_v39  ;;  %v6954_v43 = vsel %vm6931_vm11, %v747_v41, %v734_v38  ;;  %v6200_v38 = vld [vmem:[%s7050_s18 + $0x4] sm:$0xf]  ;;  %v6208_v39 = vld [vmem:[%s7050_s18 + $0xc] sm:$0xf]  ;;  %v6216_v40 = vld [vmem:[%s7050_s18 + $0x18] sm:$0xf] }
 0x1e1   : > { %v803_v44 = vpop.permute.xlu1 %802  ;;  %763 = vrot.lane.b32.xlu1 %v6954_v43, %s8300_s28  ;;  %767 = vrot.lane.b32.xlu0 %v6950_v42, %s8300_s28  ;;  %v6224_v41 = vld [vmem:[%s7050_s18 + $0x20] sm:$0xf] }
 0x1e2   : > { %v805_v47 = vpop.permute.xlu0 %804 }
 0x1e3   : > { %v807_v55 = vsel %vm8298_vm15, %v803_v44, %v805_v47  ;;  %v811_v56 = vsel %vm8298_vm15, %v805_v47, %v803_v44  ;;  %vm6993_vm15 = vcmp.eq.s32.totalorder %v877_v52, 1  ;;  %v6151_v44 = vld [vmem:[%s8291_s11 + $0x4] sm:$0xf]  ;;  %v8402_v52 = vmov 0 }
 0x1e5   : > { %v813_v49 = vpop.permute.xlu1 %812 }
 0x1e6   : > { %v816_v54 = vpop.permute.xlu0 %815 }
 0x1e7   : > { %v818_v57 = vsel %vm8299_vm1, %v816_v54, %v813_v49  ;;  %v821_v58 = vsel %vm8299_vm1, %v813_v49, %v816_v54  ;;  %vm6997_vm1 = vcmp.eq.s32.totalorder %v873_v53, 1  ;;  %v6159_v49 = vld [vmem:[%s8291_s11 + $0x18] sm:$0xf]  ;;  %v8405_v53 = vmov 0 }
 0x1e8   : > { %v6983_v59 = vsel %vm6963_vm5, %v821_v58, %v807_v55  ;;  %v6987_v60 = vsel %vm6967_vm4, %v818_v57, %v811_v56  ;;  %v8401_v63 = vsel %vm6997_vm1, 4294967295, %v8400_v63  ;;  %v6163_v57 = vld [vmem:[%s8291_s11 + $0x20] sm:$0xf] }
 0x1e9   : > { %v785_v61 = vpop.permute.xlu1 %784  ;;  %841 = vrot.lane.b32.xlu0 %v6983_v59, %s8300_s28  ;;  %837 = vrot.lane.b32.xlu1 %v6987_v60, %s8300_s28 }
 0x1ea   : > { %v788_v0 = vpop.permute.xlu0 %787 }
 0x1eb   : > { %v7002_v3 = vsel %vm8308_vm8, %v788_v0, %v785_v61  ;;  %v7005_v4 = vsel %vm8308_vm8, %v785_v61, %v788_v0 }
 0x1ec   : > { %v881_v7 = vsel %vm6993_vm15, %v7002_v3, 0.0  ;;  %v880_v8 = vsel %vm6997_vm1, %v7005_v4, 0.0 }
 0x1ed   : > { %776 = vrot.lane.b32.xlu0 %v6954_v43, %s8302_s30  ;;  %774 = vrot.lane.b32.xlu1 %v6950_v42, %s8302_s30 }
 0x1ee   : > { %6169 = vmatprep.subr.msk.mxu1 %vm8307_vm12, %v881_v7  ;;  %v521_v7 = vld [vmem:[%s8285_s5] sm:$0xf] }
 0x1ef   : > { %6170 = vmatpush1.msk.msra.mxu1 %vm8307_vm12, %v880_v8  ;;  %vm543_vm12 = vmand %vm6923_vm3, %vm6876_vm13 }
 0x1f0   : > { %6171 = vmatmul.mubr.msk.f32.vlgmr.msra.gmra.mrb[0].mxu1 %vm8306_vm14, %v6129_v9  ;;  %vm530_vm14 = vmand %vm6923_vm3, %vm6864_vm7  ;;  %v1044_v56 = vsel %vm543_vm12, 1, %v6731_v1  ;;  %vm8409_vm12 = vcmask 1043456  }
 0x1f1   : > { %795 = vrot.lane.b32.xlu0 %v6888_v22, %s8302_s30  ;;  %793 = vrot.lane.b32.xlu1 %v6884_v21, %s8302_s30  ;;  %v6204_v21 = vld [vmem:[%s7050_s18 + $0x8] sm:$0xf]  ;;  %v6212_v22 = vld [vmem:[%s7050_s18 + $0x14] sm:$0xf]  ;;  %v856_v45 = vsel %vm530_vm14, 1, %v6731_v1  ;;  %vm8408_vm3 = vmand %vm6868_vm9, %vm6864_vm7  ;;  %v1048_v9 = vrot.slane %v1044_v56, %v6832_v5 }
 0x1f2   : > { %1037 = vmatprep.mubr.f32.mxu1 %v8322_v2  ;;  %v860_v47 = vrot.slane %v856_v45, %v6832_v5  ;;  %v864_v48 = vrot.slane %v856_v45, %v6834_v6  ;;  %v1139_v8 = vsel %vm8408_vm3, 1, %v6731_v1 }
 0x1f3   : > { %vm7158_vm3 = vcmp.eq.s32.totalorder %v1048_v9, 1  ;;  %v6132_v9 = vld [vmem:[%s8285_s5 + $0x14] sm:$0xf] }
 0x1f4   : > { %vm7111_vm10 = vcmp.eq.s32.totalorder %v860_v47, 1  ;;  %vm7115_vm14 = vcmp.eq.s32.totalorder %v864_v48, 1  ;;  %v8436_v47 = vmov 0 }
 0x1f5   : > { %849 = vrot.lane.b32.xlu0 %v6987_v60, %s8302_s30  ;;  %847 = vrot.lane.b32.xlu1 %v6983_v59, %s8302_s30  ;;  %v8403_v52 = vsel %vm7111_vm10, 4294967295, %v8402_v52  ;;  %v8406_v53 = vsel %vm7115_vm14, 4294967295, %v8405_v53  ;;  %s7609_s30 = scalar_lea.vmem %s8292_s12, %s6390_s14 }
 0x1f6   : > { %8404 = vst [vmem:[#allocation4_spill] sm:$0xff] %v8403_v52  ;;  %8407 = vst [vmem:[#allocation5_spill] sm:$0xff] %v8406_v53  ;;  %v6346_v62 = vld [vmem:[%s7609_s30 + $0x3c] sm:$0xf] }
 0x1f9   : > { %1642 = vperm.xlu0 %6407, %v567_v13   ;;  %1621 = vperm.xlu1 %6408, %v6193_v30   ;;  %v1052_v13 = vrot.slane %v1044_v56, %v6834_v6 }
 0x1fd   : > { %1859 = vperm.xlu0 %6407, %v6139_v14   ;;  %1753 = vperm.xlu1 %6408, %v6137_v31   ;;  %v6130_v31 = vld [vmem:[%s8285_s5 + $0x8] sm:$0xf] }
 0x201   : > { %2071 = vperm.xlu0 %6407, %v6143_v15   ;;  %1965 = vperm.xlu1 %6408, %v6141_v33   ;;  %v1147_v15 = vrot.slane %v1139_v8, %v6834_v6  ;;  %v8424_v33 = vmov 0 }
 0x205   : > { %2283 = vperm.xlu0 %6407, %v6147_v16   ;;  %2177 = vperm.xlu1 %6408, %v6145_v36   ;;  %v1143_v16 = vrot.slane %v1139_v8, %v6832_v5  ;;  %v8428_v36 = vmov 0 }
 0x209   : > { %1742 = vperm.xlu0 %6407, %v1739_v19   ;;  %2389 = vperm.xlu1 %6408, %v6149_v37   ;;  %v8413_v19 = vmov 0 }
 0x20a   : > { %v8414_v19 = vsel %vm7158_vm3, 4294967295, %v8413_v19 }
 0x20b   : > { %8415 = vst [vmem:[#allocation6_spill] sm:$0xff] %v8414_v19 }
 0x20d   : > { %1954 = vperm.xlu0 %6407, %v6204_v21   ;;  %1848 = vperm.xlu1 %6408, %v6200_v38   ;;  %v8416_v21 = vmov 0 }
 0x211   : > { %2166 = vperm.xlu0 %6407, %v6212_v22   ;;  %2060 = vperm.xlu1 %6408, %v6208_v39  }
 0x215   : > { %2378 = vperm.xlu0 %6407, %v6220_v23   ;;  %2272 = vperm.xlu1 %6408, %v6216_v40  }
 0x219   : > { %2509 = vperm.xlu0 %6407, %v597_v26   ;;  %2484 = vperm.xlu1 %6408, %v6224_v41  }
 0x21d   : > { %2726 = vperm.xlu0 %6407, %v6153_v27   ;;  %2620 = vperm.xlu1 %6408, %v6151_v44  }
 0x221   : > { %2938 = vperm.xlu0 %6407, %v6157_v28   ;;  %2832 = vperm.xlu1 %6408, %v6155_v46   ;;  %v8421_v28 = vmov 0  ;;  %v6131_v46 = vld [vmem:[%s8285_s5 + $0xc] sm:$0xf] }
 0x225   : > { %3150 = vperm.xlu0 %6407, %v6161_v29   ;;  %3044 = vperm.xlu1 %6408, %v6159_v49   ;;  %v8439_v49 = vmov 0 }
 0x229   : > { %3256 = vperm.xlu1 %6408, %v6163_v57  }
 0x253   : > { %v764_v54 = vpop.permute.xlu1 %763  ;;  %v768_v55 = vpop.permute.xlu0 %767 }
 0x254   : > { %v7124_v32 = vsel %vm8308_vm8, %v768_v55, %v764_v54  ;;  %v7127_v58 = vsel %vm8308_vm8, %v764_v54, %v768_v55  ;;  %vm8410_vm8 = vmmov %vm8409_vm12 }
 0x255   : > { %v867_v61 = vsel %vm7111_vm10, %v7127_v58, 0.0  ;;  %v868_v0 = vsel %vm7115_vm14, %v7124_v32, 0.0  ;;  %vm8411_vm14 = vmand %vm6868_vm9, %vm6876_vm13  ;;  %vm8412_vm10 = vcmask 31744   ;;  %vm8419_vm9 = vcmask 130048  }
 0x256   : > { %6172 = vmatprep.subr.msk.mxu1 %vm8409_vm12, %v868_v0  ;;  %v1234_v14 = vsel %vm8411_vm14, 1, %v6731_v1  ;;  %vm7173_vm14 = vcmp.eq.s32.totalorder %v1147_v15, 1  ;;  %vm7186_vm12 = vcmp.eq.s32.totalorder %v1143_v16, 1 }
 0x257   : > { %6173 = vmatpush1.msk.msra.mxu1 %vm8410_vm8, %v867_v61  ;;  %vm7162_vm8 = vcmp.eq.s32.totalorder %v1052_v13, 1  ;;  %v1242_v18 = vrot.slane %v1234_v14, %v6834_v6  ;;  %v8422_v28 = vsel %vm7173_vm14, 4294967295, %v8421_v28  ;;  %v8425_v33 = vsel %vm7186_vm12, 4294967295, %v8424_v33 }
 0x258   : > { %6174 = vmatmul.mubr.msk.f32.vlgmr.msra.gmra.mrb[0].mxu1 %vm8412_vm10, %v521_v7  ;;  %v8417_v21 = vsel %vm7162_vm8, 4294967295, %v8416_v21  ;;  %vm8420_vm10 = vmmov %vm8419_vm9  ;;  %8423 = vst [vmem:[#allocation8_spill] sm:$0xff] %v8422_v28  ;;  %v1151_v38 = vsel %vm7173_vm14, %v6954_v43, 0.0  ;;  %v1150_v39 = vsel %vm7186_vm12, %v6950_v42, 0.0  ;;  %v1238_v40 = vrot.slane %v1234_v14, %v6832_v5 }
 0x259   : > { %1130 = vmatprep.mubr.f32.mxu1 %v8322_v2  ;;  %8418 = vst [vmem:[#allocation7_spill] sm:$0xff] %v8417_v21  ;;  %8426 = vst [vmem:[#allocation9_spill] sm:$0xff] %v8425_v33  ;;  %v8446_v7 = vmov 0  ;;  %v8451_v14 = vmov 0 }
 0x25b   : > { %v838_v22 = vpop.permute.xlu1 %837  ;;  %v842_v23 = vpop.permute.xlu0 %841 }
 0x25c   : > { %v7168_v26 = vsel %vm8419_vm9, %v842_v23, %v838_v22  ;;  %v7171_v27 = vsel %vm8420_vm10, %v838_v22, %v842_v23  ;;  %vm8427_vm9 = vcmask 1043456   ;;  %vm7191_vm10 = vcmp.eq.s32.totalorder %v1242_v18, 1 }
 0x25d   : > { %v1055_v29 = vsel %vm7158_vm3, %v7171_v27, 0.0  ;;  %v1056_v30 = vsel %vm7162_vm8, %v7168_v26, 0.0  ;;  %v8429_v36 = vsel %vm7191_vm10, 4294967295, %v8428_v36  ;;  %vm8431_vm1 = vmmov %vm8427_vm9  ;;  %vm8433_vm3 = vcmask 31744  }
 0x25e   : > { %6175 = vmatprep.subr.msk.mxu1 %vm8427_vm9, %v1056_v30  ;;  %8430 = vst [vmem:[#allocation10_spill] sm:$0xff] %v8429_v36  ;;  %vm8432_vm8 = vmand %vm6904_vm6, %vm6864_vm7  ;;  %v1246_v17 = vsel %vm7191_vm10, %v6987_v60, 0.0  ;;  %v8458_v23 = vmov 0  ;;  %v6133_v30 = vld [vmem:[%s8285_s5 + $0x18] sm:$0xf] }
 0x25f   : > { %6176 = vmatpush1.msk.msra.mxu1 %vm8431_vm1, %v1055_v29  ;;  %v1329_v37 = vsel %vm8432_vm8, 1, %v6731_v1  ;;  %vm8434_vm9 = vmmov %vm8431_vm1  ;;  %v775_v44 = vpop.permute.xlu1 %774  ;;  %v777_v45 = vpop.permute.xlu0 %776  ;;  %vm7221_vm8 = vcmp.eq.s32.totalorder %v1238_v40, 1 }
 0x260   : > { %6177 = vmatmul.mubr.msk.f32.vlgmr.msra.gmra.mrb[0].mxu1 %vm8433_vm3, %v6130_v31  ;;  %6178 = vmatprep.subr.msk.mxu1 %vm8434_vm9, %v1151_v38  ;;  %vm8435_vm7 = vmmov %vm8431_vm1  ;;  %v1337_v41 = vrot.slane %v1329_v37, %v6834_v6  ;;  %vm8314_vm3 = vcmask 916480   ;;  %v8437_v47 = vsel %vm7221_vm8, 4294967295, %v8436_v47  ;;  %v1245_v55 = vsel %vm7221_vm8, %v6983_v59, 0.0 }
 0x261   : > { %6179 = vmatpush1.msk.msra.mxu1 %vm8431_vm1, %v1150_v39  ;;  %1225 = vmatprep.mubr.f32.mxu1 %v8322_v2  ;;  %8438 = vst [vmem:[#allocation11_spill] sm:$0xff] %v8437_v47  ;;  %v7226_v48 = vsel %vm8314_vm3, %v777_v45, %v775_v44  ;;  %vm8442_vm1 = vmand %vm6904_vm6, %vm6898_vm2  ;;  %v1333_v56 = vrot.slane %v1329_v37, %v6832_v5  ;;  %vm8444_vm3 = vcmask 1043456   ;;  %v8463_v37 = vmov 0 }
 0x262   : > { %6181 = vmatprep.subr.msk.mxu1 %vm8435_vm7, %v1246_v17  ;;  %vm7228_vm9 = vcmp.eq.s32.totalorder %v1337_v41, 1  ;;  %v1424_v54 = vsel %vm8442_vm1, 1, %v6731_v1  ;;  %vm8443_vm7 = vcmask 31744   ;;  %vm8445_vm10 = vmmov %vm8444_vm3  ;;  %vm8449_vm1 = vcmask 916480  }
 0x263   : > { %v8440_v49 = vsel %vm7228_vm9, 4294967295, %v8439_v49  ;;  %v1341_v57 = vsel %vm7228_vm9, %v7226_v48, 0.0  ;;  %v1432_v24 = vrot.slane %v1424_v54, %v6834_v6  ;;  %v794_v61 = vpop.permute.xlu1 %793  ;;  %v796_v0 = vpop.permute.xlu0 %795  ;;  %vm7250_vm2 = vcmp.eq.s32.totalorder %v1333_v56, 1 }
 0x264   : > { %8441 = vst [vmem:[#allocation12_spill] sm:$0xff] %v8440_v49  ;;  %v8447_v7 = vsel %vm7250_vm2, 4294967295, %v8446_v7  ;;  %v7255_v8 = vsel %vm8449_vm1, %v775_v44, %v777_v45  ;;  %v1428_v18 = vrot.slane %v1424_v54, %v6832_v5  ;;  %v8468_v17 = vmov 0  ;;  %v6134_v44 = vld [vmem:[%s8285_s5 + $0x1c] sm:$0xf] }
 0x265   : > { %8448 = vst [vmem:[#allocation13_spill] sm:$0xff] %v8447_v7  ;;  %v1340_v16 = vsel %vm7250_vm2, %v7255_v8, 0.0 }
 0x267   : > { %v848_v20 = vpop.permute.xlu1 %847  ;;  %v850_v25 = vpop.permute.xlu0 %849 }
 0x268   : > { %6180 = vmatmul.mubr.msk.f32.vlgmr.msra.gmra.mrb[0].mxu1 %vm8443_vm7, %v6131_v46  ;;  %vm7263_vm7 = vcmp.eq.s32.totalorder %v1432_v24, 1  ;;  %v6135_v46 = vld [vmem:[%s8285_s5 + $0x20] sm:$0xf] }
 0x269   : > { %6182 = vmatpush1.msk.msra.mxu1 %vm8444_vm3, %v1245_v55  ;;  %1320 = vmatprep.mubr.f32.mxu1 %v8322_v2  ;;  %vm8450_vm3 = vmmov %vm8449_vm1  ;;  %v8452_v14 = vsel %vm7263_vm7, 4294967295, %v8451_v14  ;;  %vm8455_vm1 = vcmask 31744  }
 0x26a   : > { %6184 = vmatprep.subr.msk.mxu1 %vm8445_vm10, %v1341_v57  ;;  %v7261_v13 = vsel %vm8450_vm3, %v796_v0, %v794_v61  ;;  %8453 = vst [vmem:[#allocation14_spill] sm:$0xff] %v8452_v14  ;;  %vm8454_vm10 = vmand %vm6904_vm6, %vm6876_vm13  ;;  %vm8456_vm3 = vcmask 1043456   ;;  %vm7285_vm13 = vcmp.eq.s32.totalorder %v1428_v18, 1  ;;  %vm8461_vm6 = vcmask 916480  }
 0x26b   : > { %v1519_v15 = vsel %vm8454_vm10, 1, %v6731_v1  ;;  %v1436_v22 = vsel %vm7263_vm7, %v7261_v13, 0.0  ;;  %vm8457_vm9 = vmmov %vm8456_vm3  ;;  %v8459_v23 = vsel %vm7285_vm13, 4294967295, %v8458_v23  ;;  %v7290_v29 = vsel %vm8461_vm6, %v794_v61, %v796_v0 }
 0x26c   : > { %v1527_v1 = vrot.slane %v1519_v15, %v6834_v6  ;;  %8460 = vst [vmem:[#allocation15_spill] sm:$0xff] %v8459_v23  ;;  %vm8462_vm10 = vmmov %vm8461_vm6  ;;  %v1435_v38 = vsel %vm7285_vm13, %v7290_v29, 0.0  ;;  %v1523_v39 = vrot.slane %v1519_v15, %v6832_v5  ;;  %vm8471_vm7 = vcmask 916480  }
 0x26d   : > { %v7296_v31 = vsel %vm8462_vm10, %v850_v25, %v848_v20  ;;  %vm8467_vm6 = vmmov %vm8456_vm3  ;;  %v7318_v41 = vsel %vm8471_vm7, %v848_v20, %v850_v25 }
 0x26e   : > { %vm7313_vm10 = vcmp.eq.s32.totalorder %v1523_v39, 1  ;;  %v566_v39 = vld [vmem:[%s8287_s7] sm:$0xf] }
 0x26f   : > { %v8469_v17 = vsel %vm7313_vm10, 4294967295, %v8468_v17  ;;  %v1530_v45 = vsel %vm7313_vm10, %v7318_v41, 0.0 }
 0x270   : > { %6183 = vmatmul.mubr.msk.f32.vlgmr.msra.gmra.mrb[0].mxu1 %vm8455_vm1, %v6132_v9  ;;  %vm7298_vm1 = vcmp.eq.s32.totalorder %v1527_v1, 1  ;;  %8470 = vst [vmem:[#allocation17_spill] sm:$0xff] %v8469_v17 }
 0x271   : > { %6185 = vmatpush1.msk.msra.mxu1 %vm8456_vm3, %v1340_v16  ;;  %1415 = vmatprep.mubr.f32.mxu1 %v8322_v2  ;;  %v8464_v37 = vsel %vm7298_vm1, 4294967295, %v8463_v37  ;;  %v1531_v40 = vsel %vm7298_vm1, %v7296_v31, 0.0 }
 0x272   : > { %6187 = vmatprep.subr.msk.mxu1 %vm8457_vm9, %v1436_v22  ;;  %8465 = vst [vmem:[#allocation16_spill] sm:$0xff] %v8464_v37  ;;  %vm8466_vm9 = vcmask 31744  }
 0x273   : > { %vm8472_vm7 = vmmov %vm8466_vm9 }
 0x278   : > { %6186 = vmatmul.mubr.msk.f32.vlgmr.msra.gmra.mrb[0].mxu1 %vm8466_vm9, %v6133_v30  ;;  %v1622_v54 = vpop.permute.xlu1 %1621 }
 0x279   : > { %6188 = vmatpush1.msk.msra.mxu1 %vm8456_vm3, %v1435_v38  ;;  %1510 = vmatprep.mubr.f32.mxu1 %v8322_v2 }
 0x27a   : > { %6190 = vmatprep.subr.msk.mxu1 %vm8467_vm6, %v1531_v40  ;;  %vm8473_vm6 = vmmov %vm8456_vm3  ;;  %v6136_v40 = vld [vmem:[%s8287_s7 + $0x4] sm:$0xf] }
 0x27b   : > { %vm8477_vm10 = vmmov %vm8473_vm6 }
 0x27c   : > { %vm8478_vm1 = vmmov %vm8473_vm6 }
 0x27d   : > { %vm8480_vm2 = vmmov %vm8478_vm1 }
 0x280   : > { %6189 = vmatmul.mubr.msk.f32.vlgmr.msra.gmra.mrb[0].mxu1 %vm8466_vm9, %v6134_v44  ;;  %vm8474_vm9 = vmmov %vm8456_vm3  ;;  %v6138_v44 = vld [vmem:[%s8287_s7 + $0x8] sm:$0xf] }
 0x281   : > { %6191 = vmatpush1.msk.msra.mxu1 %vm8456_vm3, %v1530_v45  ;;  %1605 = vmatprep.mubr.f32.mxu1 %v8322_v2  ;;  %vm8475_vm3 = vmmov %vm8472_vm7  ;;  %v6140_v45 = vld [vmem:[%s8287_s7 + $0xc] sm:$0xf] }
 0x282   : > { %vm8479_vm13 = vmmov %vm8475_vm3 }
 0x288   : > { %6192 = vmatmul.mubr.msk.f32.vlgmr.msra.gmra.mrb[0].mxu1 %vm8472_vm7, %v6135_v46  ;;  %vm8476_vm7 = vmmov %vm8473_vm6  ;;  %v6142_v46 = vld [vmem:[%s8287_s7 + $0x14] sm:$0xf] }
 0x289   : > { %2585 = vmatprep.mubr.f32.mxu1 %v8322_v2 }
 0x35b   : > { %v1607_v55 = vpop.f32.mrb[0].mxu1 }
 0x35c   : > { %v1624_v56 = vmul.f32 %v1622_v54, %v1607_v55  ;;  %v1609_v57 = vpop.f32.mrb[1].mxu1  ;;  %v6146_v55 = vld [vmem:[%s8287_s7 + $0x1c] sm:$0xf] }
 0x35d   : > { %v1625_v24 = vmul.f32 %v1622_v54, %v1609_v57  ;;  %v6144_v54 = vld [vmem:[%s8287_s7 + $0x18] sm:$0xf]  ;;  %v7390_v57 = vpop.permute.xlu0 %1642 }
 0x35e   : > { %v1626_v61 = vsub.f32 0.0, %v1624_v56  ;;  %8496 = vst [vmem:[#allocation18_spill] sm:$0xff] %v7390_v57 }
 0x35f   : > { %v1627_v0 = vsub.f32 0.0, %v1625_v24 }
 0x360   : > { %v1628_v9 = vmul.f32 1.442695, %v1626_v61 }
 0x361   : > { %v1630_v15 = vmul.f32 1.442695, %v1627_v0 }
 0x362   : > { %6409 = vpow2.f32 %v1628_v9 }
 0x363   : > { %6411 = vpow2.f32 %v1630_v15 }
 0x36c   : > { %v6410_v16 = vpop.eup %6409 }
 0x36d   : > { %v6412_v18 = vpop.eup %6411  ;;  %v1632_v22 = vadd.f32 1.0, %v6410_v16  ;;  %v7399_v16 = vpop.permute.xlu1 %1753 }
 0x36e   : > { %v1633_v1 = vadd.f32 1.0, %v6412_v18  ;;  %8497 = vst [vmem:[#allocation19_spill] sm:$0xff] %v7399_v16 }
 0x36f   : > { %6413 = vrcp.f32 %v1632_v22 }
 0x370   : > { %6415 = vrcp.f32 %v1633_v1 }
 0x379   : > { %v6414_v20 = vpop.eup %6413 }
 0x37a   : > { %v6416_v25 = vpop.eup %6415  ;;  %v1638_v38 = vmul.f32 %v6414_v20, %v1624_v56  ;;  %v6148_v56 = vld [vmem:[%s8287_s7 + $0x20] sm:$0xf] }
 0x37b   : > { %v1639_v30 = vmul.f32 %v6416_v25, %v1625_v24 }
 0x37d   : > { %6194 = vmatprep.subr.msk.mxu0 %vm8473_vm6, %v1639_v30  ;;  %vm8481_vm6 = vmmov %vm8478_vm1 }
 0x37e   : > { %6195 = vmatpush1.msk.msra.mxu0 %vm8474_vm9, %v1638_v38  ;;  %vm8483_vm9 = vmmov %vm8478_vm1 }
 0x37f   : > { %6196 = vmatmul.mubr.msk.f32.vlgmr.msra.gmra.mrb[2].mxu0 %vm8475_vm3, %v566_v39  ;;  %6197 = vmatprep.subr.msk.mxu0 %vm8476_vm7, %v1639_v30 }
 0x380   : > { %6198 = vmatpush1.msk.msra.mxu0 %vm8477_vm10, %v1638_v38  ;;  %1823 = vmatprep.mubr.f32.mxu0 %v8322_v2  ;;  %vm8482_vm10 = vmmov %vm8475_vm3 }
 0x381   : > { %6201 = vmatprep.subr.msk.mxu0 %vm8478_vm1, %v1639_v30 }
 0x383   : > { %6199 = vmatmul.mubr.msk.f32.vlgmr.msra.gmra.mrb[4].mxu0 %vm8479_vm13, %v6136_v40  ;;  %vm8484_vm13 = vmmov %vm8478_vm1  ;;  %v7409_v40 = vpop.permute.xlu0 %1859 }
 0x384   : > { %6202 = vmatpush1.msk.msra.mxu0 %vm8480_vm2, %v1638_v38  ;;  %1929 = vmatprep.mubr.f32.mxu0 %v8322_v2  ;;  %vm8485_vm2 = vmmov %vm8475_vm3  ;;  %8498 = vst [vmem:[#allocation20_spill] sm:$0xff] %v7409_v40 }
 0x385   : > { %6205 = vmatprep.subr.msk.mxu0 %vm8481_vm6, %v1639_v30  ;;  %vm8486_vm3 = vmmov %vm8478_vm1 }
 0x386   : > { %vm8487_vm7 = vmmov %vm8485_vm2 }
 0x387   : > { %6203 = vmatmul.mubr.msk.f32.vlgmr.msra.gmra.mrb[6].mxu0 %vm8482_vm10, %v6138_v44  ;;  %vm8488_vm6 = vmmov %vm8478_vm1 }
 0x388   : > { %6206 = vmatpush1.msk.msra.mxu0 %vm8483_vm9, %v1638_v38  ;;  %2035 = vmatprep.mubr.f32.mxu0 %v8322_v2  ;;  %vm8489_vm10 = vmmov %vm8478_vm1 }
 0x389   : > { %6209 = vmatprep.subr.msk.mxu0 %vm8484_vm13, %v1639_v30  ;;  %vm8490_vm9 = vmmov %vm8485_vm2 }
 0x38a   : > { %vm8491_vm13 = vmmov %vm8478_vm1 }
 0x38b   : > { %6207 = vmatmul.mubr.msk.f32.vlgmr.msra.gmra.mrb[8].mxu0 %vm8485_vm2, %v6140_v45  ;;  %vm8492_vm2 = vmmov %vm8478_vm1 }
 0x38c   : > { %6210 = vmatpush1.msk.msra.mxu0 %vm8478_vm1, %v1638_v38  ;;  %2141 = vmatprep.mubr.f32.mxu0 %v8322_v2  ;;  %vm8493_vm1 = vmmov %vm8487_vm7 }
 0x38d   : > { %6213 = vmatprep.subr.msk.mxu0 %vm8486_vm3, %v1639_v30  ;;  %vm8494_vm3 = vmmov %vm8492_vm2 }
 0x38e   : > { %vm8510_vm8 = vmmov %vm8494_vm3 }
 0x38f   : > { %6211 = vmatmul.mubr.msk.f32.vlgmr.msra.gmra.mrb[10].mxu0 %vm8487_vm7, %v6142_v46  ;;  %vm8495_vm7 = vmmov %vm8493_vm1 }
 0x390   : > { %6214 = vmatpush1.msk.msra.mxu0 %vm8488_vm6, %v1638_v38  ;;  %2247 = vmatprep.mubr.f32.mxu0 %v8322_v2  ;;  %vm8504_vm6 = vmmov %vm8492_vm2 }
 0x391   : > { %6217 = vmatprep.subr.msk.mxu0 %vm8489_vm10, %v1639_v30  ;;  %vm8505_vm10 = vmmov %vm8492_vm2 }
 0x392   : > { %vm8511_vm12 = vmmov %vm8494_vm3 }
 0x393   : > { %6215 = vmatmul.mubr.msk.f32.vlgmr.msra.gmra.mrb[12].mxu0 %vm8490_vm9, %v6144_v54  ;;  %vm8506_vm9 = vmmov %vm8492_vm2 }
 0x394   : > { %6218 = vmatpush1.msk.msra.mxu0 %vm8491_vm13, %v1638_v38  ;;  %2353 = vmatprep.mubr.f32.mxu0 %v8322_v2  ;;  %vm8507_vm13 = vmmov %vm8492_vm2 }
 0x395   : > { %6221 = vmatprep.subr.msk.mxu0 %vm8492_vm2, %v1639_v30  ;;  %vm8508_vm2 = vmmov %vm8493_vm1 }
 0x397   : > { %6219 = vmatmul.mubr.msk.f32.vlgmr.msra.gmra.mrb[14].mxu0 %vm8493_vm1, %v6146_v55 }
 0x398   : > { %6222 = vmatpush1.msk.msra.mxu0 %vm8494_vm3, %v1638_v38  ;;  %2459 = vmatprep.mubr.f32.mxu0 %v8322_v2 }
 0x39b   : > { %6223 = vmatmul.mubr.msk.f32.vlgmr.msra.gmra.mrb[16].mxu0 %vm8495_vm7, %v6148_v56  ;;  %vm8509_vm7 = vmmov %vm8494_vm3 }
 0x39c   : > { %2690 = vmatprep.mubr.f32.mxu0 %v8322_v2 }
 0x452   : > { %v1720_v24 = vpop.f32.mrb[2].mxu0 }
 0x453   : > { %v7393_v61 = vadd.f32 %v1720_v24, %v7390_v57  ;;  %v1722_v0 = vpop.f32.mrb[3].mxu0 }
 0x454   : > { %v7396_v9 = vadd.f32 %v1722_v0, %v7390_v57 }
 0x455   : > { %v1725_v15 = vsub.f32 0.0, %v7393_v61 }
 0x456   : > { %v1726_v18 = vsub.f32 0.0, %v7396_v9  ;;  %v1825_v22 = vpop.f32.mrb[4].mxu0 }
 0x457   : > { %v1727_v1 = vmul.f32 1.442695, %v1725_v15  ;;  %v7403_v20 = vadd.f32 %v1825_v22, %v7399_v16  ;;  %v1827_v25 = vpop.f32.mrb[5].mxu0  ;;  %v7419_v15 = vpop.permute.xlu1 %1965 }
 0x458   : > { %v1729_v30 = vmul.f32 1.442695, %v1726_v18  ;;  %v7406_v38 = vadd.f32 %v1827_v25, %v7399_v16  ;;  %8499 = vst [vmem:[#allocation21_spill] sm:$0xff] %v7419_v15 }
 0x459   : > { %6417 = vpow2.f32 %v1727_v1  ;;  %v1830_v39 = vsub.f32 0.0, %v7403_v20 }
 0x45a   : > { %6419 = vpow2.f32 %v1729_v30  ;;  %v1831_v44 = vsub.f32 0.0, %v7406_v38  ;;  %v1931_v45 = vpop.f32.mrb[6].mxu0 }
 0x45b   : > { %v1832_v46 = vmul.f32 1.442695, %v1830_v39  ;;  %v7413_v54 = vadd.f32 %v1931_v45, %v7409_v40  ;;  %v1933_v55 = vpop.f32.mrb[7].mxu0 }
 0x45c   : > { %v1834_v56 = vmul.f32 1.442695, %v1831_v44  ;;  %v7416_v24 = vadd.f32 %v1933_v55, %v7409_v40 }
 0x45d   : > { %6421 = vpow2.f32 %v1832_v46  ;;  %v1936_v0 = vsub.f32 0.0, %v7413_v54  ;;  %v7429_v46 = vpop.permute.xlu0 %2071 }
 0x45e   : > { %6423 = vpow2.f32 %v1834_v56  ;;  %v1937_v18 = vsub.f32 0.0, %v7416_v24  ;;  %v2037_v22 = vpop.f32.mrb[8].mxu0  ;;  %8500 = vst [vmem:[#allocation22_spill] sm:$0xff] %v7429_v46 }
 0x45f   : > { %v1938_v1 = vmul.f32 1.442695, %v1936_v0  ;;  %v7423_v25 = vadd.f32 %v2037_v22, %v7419_v15  ;;  %v2039_v30 = vpop.f32.mrb[9].mxu0 }
 0x460   : > { %v1940_v39 = vmul.f32 1.442695, %v1937_v18  ;;  %v7426_v44 = vadd.f32 %v2039_v30, %v7419_v15 }
 0x461   : > { %6425 = vpow2.f32 %v1938_v1  ;;  %v2042_v45 = vsub.f32 0.0, %v7423_v25  ;;  %v7449_v37 = vpop.permute.xlu0 %2283 }
 0x462   : > { %6427 = vpow2.f32 %v1940_v39  ;;  %v2043_v55 = vsub.f32 0.0, %v7426_v44  ;;  %v2143_v56 = vpop.f32.mrb[10].mxu0  ;;  %v7439_v39 = vpop.permute.xlu1 %2177  ;;  %8502 = vst [vmem:[#allocation24_spill] sm:$0xff] %v7449_v37 }
 0x463   : > { %v6418_v2 = vpop.eup %6417  ;;  %v2044_v40 = vmul.f32 1.442695, %v2042_v45  ;;  %v7433_v0 = vadd.f32 %v2143_v56, %v7429_v46  ;;  %v2145_v22 = vpop.f32.mrb[11].mxu0  ;;  %8501 = vst [vmem:[#allocation23_spill] sm:$0xff] %v7439_v39 }
 0x464   : > { %v6420_v16 = vpop.eup %6419  ;;  %v1731_v18 = vadd.f32 1.0, %v6418_v2  ;;  %v2046_v57 = vmul.f32 1.442695, %v2043_v55  ;;  %v7436_v30 = vadd.f32 %v2145_v22, %v7429_v46 }
 0x465   : > { %v1732_v1 = vadd.f32 1.0, %v6420_v16  ;;  %6429 = vpow2.f32 %v2044_v40  ;;  %v2148_v15 = vsub.f32 0.0, %v7433_v0 }
 0x466   : > { %6431 = vrcp.f32 %v1731_v18  ;;  %v2149_v11 = vsub.f32 0.0, %v7436_v30  ;;  %v2249_v45 = vpop.f32.mrb[12].mxu0  ;;  %v7459_v14 = vpop.permute.xlu1 %2389 }
 0x467   : > { %v6422_v12 = vpop.eup %6421  ;;  %6433 = vrcp.f32 %v1732_v1  ;;  %v2150_v56 = vmul.f32 1.442695, %v2148_v15  ;;  %v7443_v17 = vadd.f32 %v2249_v45, %v7439_v39  ;;  %v2251_v2 = vpop.f32.mrb[13].mxu0  ;;  %8503 = vst [vmem:[#allocation25_spill] sm:$0xff] %v7459_v14 }
 0x468   : > { %v6424_v55 = vpop.eup %6423  ;;  %v1836_v22 = vadd.f32 1.0, %v6422_v12  ;;  %6435 = vpow2.f32 %v2046_v57  ;;  %v2152_v16 = vmul.f32 1.442695, %v2149_v11  ;;  %v7446_v40 = vadd.f32 %v2251_v2, %v7439_v39 }
 0x469   : > { %v1837_v46 = vadd.f32 1.0, %v6424_v55  ;;  %6437 = vpow2.f32 %v2150_v56  ;;  %v2254_v18 = vsub.f32 0.0, %v7443_v17 }
 0x46a   : > { %6439 = vrcp.f32 %v1836_v22  ;;  %v2255_v15 = vsub.f32 0.0, %v7446_v40  ;;  %v2355_v1 = vpop.f32.mrb[14].mxu0 }
 0x46b   : > { %v6426_v45 = vpop.eup %6425  ;;  %6441 = vrcp.f32 %v1837_v46  ;;  %v2256_v23 = vmul.f32 1.442695, %v2254_v18  ;;  %v7453_v12 = vadd.f32 %v2355_v1, %v7449_v37  ;;  %v2357_v11 = vpop.f32.mrb[15].mxu0 }
 0x46c   : > { %v6428_v57 = vpop.eup %6427  ;;  %v1942_v2 = vadd.f32 1.0, %v6426_v45  ;;  %6443 = vpow2.f32 %v2152_v16  ;;  %v2258_v55 = vmul.f32 1.442695, %v2255_v15  ;;  %v7456_v56 = vadd.f32 %v2357_v11, %v7449_v37 }
 0x46d   : > { %v1943_v39 = vadd.f32 1.0, %v6428_v57  ;;  %6445 = vpow2.f32 %v2256_v23  ;;  %v2360_v22 = vsub.f32 0.0, %v7453_v12 }
 0x46e   : > { %6447 = vrcp.f32 %v1942_v2  ;;  %v2361_v46 = vsub.f32 0.0, %v7456_v56  ;;  %v2461_v18 = vpop.f32.mrb[16].mxu0 }
 0x46f   : > { %v6430_v1 = vpop.eup %6429  ;;  %6449 = vrcp.f32 %v1943_v39  ;;  %v2362_v7 = vmul.f32 1.442695, %v2360_v22  ;;  %v7463_v45 = vadd.f32 %v2461_v18, %v7459_v14  ;;  %v2463_v16 = vpop.f32.mrb[17].mxu0 }
 0x470   : > { %v6432_v15 = vpop.eup %6431  ;;  %v2048_v11 = vadd.f32 1.0, %v6430_v1  ;;  %6451 = vpow2.f32 %v2258_v55  ;;  %v2364_v57 = vmul.f32 1.442695, %v2361_v46  ;;  %v7466_v23 = vadd.f32 %v2463_v16, %v7459_v14  ;;  %v1743_v1 = vpop.permute.xlu0 %1742 }
 0x471   : > { %v6434_v37 = vpop.eup %6433  ;;  %v1737_v2 = vmul.f32 %v6432_v15, %v7393_v61  ;;  %6453 = vpow2.f32 %v2362_v7  ;;  %v2466_v49 = vsub.f32 0.0, %v7463_v45  ;;  %v1849_v15 = vpop.permute.xlu1 %1848 }
 0x472   : > { %v6436_v47 = vpop.eup %6435  ;;  %v1738_v39 = vmul.f32 %v6434_v37, %v7396_v9  ;;  %6455 = vrcp.f32 %v2048_v11  ;;  %v2467_v22 = vsub.f32 0.0, %v7466_v23 }
 0x473   : > { %v6438_v18 = vpop.eup %6437  ;;  %v2049_v36 = vadd.f32 1.0, %v6436_v47  ;;  %6457 = vpow2.f32 %v2364_v57  ;;  %v2468_v55 = vmul.f32 1.442695, %v2466_v49  ;;  %v1745_v28 = vadd.f32 %v1743_v1, %v1737_v2 }
 0x474   : > { %v6440_v46 = vpop.eup %6439  ;;  %v2154_v16 = vadd.f32 1.0, %v6438_v18  ;;  %v2470_v14 = vmul.f32 1.442695, %v2467_v22  ;;  %v1746_v21 = vadd.f32 %v1743_v1, %v1738_v39  ;;  %v1955_v18 = vpop.permute.xlu0 %1954 }
 0x475   : > { %v6442_v33 = vpop.eup %6441  ;;  %v1842_v7 = vmul.f32 %v6440_v46, %v7403_v20  ;;  %6459 = vrcp.f32 %v2049_v36  ;;  %v1747_v2 = vmul.f32 %v1745_v28, %v7127_v58 }
 0x476   : > { %v6444_v61 = vpop.eup %6443  ;;  %v1843_v37 = vmul.f32 %v6442_v33, %v7406_v38  ;;  %6461 = vrcp.f32 %v2154_v16  ;;  %v1748_v33 = vmul.f32 %v1746_v21, %v7124_v32  ;;  %v2061_v21 = vpop.permute.xlu1 %2060 }
 0x477   : > { %v6446_v9 = vpop.eup %6445  ;;  %v1851_v11 = vadd.f32 %v1849_v15, %v1842_v7  ;;  %v2155_v47 = vadd.f32 1.0, %v6444_v61  ;;  %6463 = vpow2.f32 %v2468_v55 }
 0x478   : > { %v6448_v49 = vpop.eup %6447  ;;  %v1852_v57 = vadd.f32 %v1849_v15, %v1843_v37  ;;  %v2260_v19 = vadd.f32 1.0, %v6446_v9  ;;  %6465 = vpow2.f32 %v2470_v14 }
 0x479   : > { %v6450_v22 = vpop.eup %6449  ;;  %v1853_v20 = vmul.f32 %v1851_v11, %v7005_v4  ;;  %v1948_v36 = vmul.f32 %v6448_v49, %v7413_v54  ;;  %6467 = vrcp.f32 %v2155_v47 }
 0x47a   : > { %v6452_v39 = vpop.eup %6451  ;;  %v1854_v38 = vmul.f32 %v1852_v57, %v7002_v3  ;;  %v1949_v55 = vmul.f32 %v6450_v22, %v7416_v24  ;;  %6469 = vrcp.f32 %v2260_v19 }
 0x47b   : > { %v6454_v46 = vpop.eup %6453  ;;  %v1855_v1 = vadd.f32 %v1853_v20, %v1747_v2  ;;  %v1957_v14 = vadd.f32 %v1955_v18, %v1948_v36  ;;  %v2261_v16 = vadd.f32 1.0, %v6452_v39 }
 0x47c   : > { %v6456_v7 = vpop.eup %6455  ;;  %v1856_v28 = vadd.f32 %v1854_v38, %v1748_v33  ;;  %v1958_v61 = vadd.f32 %v1955_v18, %v1949_v55  ;;  %v2366_v15 = vadd.f32 1.0, %v6454_v46  ;;  %v2167_v18 = vpop.permute.xlu0 %2166 }
 0x47d   : > { %v6458_v37 = vpop.eup %6457  ;;  %v1959_v54 = vmul.f32 %v1957_v14, %v7171_v27  ;;  %v2054_v9 = vmul.f32 %v6456_v7, %v7423_v25  ;;  %6471 = vrcp.f32 %v2261_v16 }
 0x47e   : > { %v1960_v11 = vmul.f32 %v1958_v61, %v7168_v26  ;;  %6473 = vrcp.f32 %v2366_v15  ;;  %v2367_v24 = vadd.f32 1.0, %v6458_v37 }
 0x47f   : > { %v6460_v19 = vpop.eup %6459  ;;  %v1961_v47 = vadd.f32 %v1959_v54, %v1855_v1  ;;  %v2063_v49 = vadd.f32 %v2061_v21, %v2054_v9 }
 0x480   : > { %v6462_v57 = vpop.eup %6461  ;;  %v1962_v22 = vadd.f32 %v1960_v11, %v1856_v28  ;;  %v2055_v2 = vmul.f32 %v6460_v19, %v7426_v44  ;;  %6475 = vrcp.f32 %v2367_v24 }
 0x481   : > { %v6464_v20 = vpop.eup %6463  ;;  %v2065_v36 = vmul.f32 %v2063_v49, %v6950_v42  ;;  %v2160_v39 = vmul.f32 %v6462_v57, %v7433_v0  ;;  %v2273_v0 = vpop.permute.xlu1 %2272 }
 0x482   : > { %v6466_v25 = vpop.eup %6465  ;;  %v2064_v33 = vadd.f32 %v2061_v21, %v2055_v2  ;;  %v2472_v38 = vadd.f32 1.0, %v6464_v20  ;;  %v2379_v57 = vpop.permute.xlu0 %2378 }
 0x483   : > { %v6468_v55 = vpop.eup %6467  ;;  %v2067_v46 = vadd.f32 %v2065_v36, %v1961_v47  ;;  %v2169_v14 = vadd.f32 %v2167_v18, %v2160_v39  ;;  %v2473_v16 = vadd.f32 1.0, %v6466_v25 }
 0x484   : > { %v6470_v1 = vpop.eup %6469  ;;  %v2066_v7 = vmul.f32 %v2064_v33, %v6954_v43  ;;  %v2161_v28 = vmul.f32 %v6468_v55, %v7436_v30  ;;  %6477 = vrcp.f32 %v2472_v38 }
 0x485   : > { %v2171_v44 = vmul.f32 %v2169_v14, %v6983_v59  ;;  %v2266_v61 = vmul.f32 %v6470_v1, %v7443_v17  ;;  %6479 = vrcp.f32 %v2473_v16  ;;  %v2485_v14 = vpop.permute.xlu1 %2484 }
 0x486   : > { %v2068_v15 = vadd.f32 %v2066_v7, %v1962_v22  ;;  %v2170_v37 = vadd.f32 %v2167_v18, %v2161_v28 }
 0x487   : > { %v6472_v54 = vpop.eup %6471  ;;  %v2173_v9 = vadd.f32 %v2171_v44, %v2067_v46  ;;  %v2275_v21 = vadd.f32 %v2273_v0, %v2266_v61 }
 0x488   : > { %v6474_v11 = vpop.eup %6473  ;;  %v2172_v24 = vmul.f32 %v2170_v37, %v6987_v60  ;;  %v2267_v19 = vmul.f32 %v6472_v54, %v7446_v40 }
 0x489   : > { %v2277_v47 = vmul.f32 %v2275_v21, %v7255_v8  ;;  %v2372_v30 = vmul.f32 %v6474_v11, %v7453_v12 }
 0x48a   : > { %v6476_v49 = vpop.eup %6475  ;;  %v2174_v2 = vadd.f32 %v2172_v24, %v2068_v15  ;;  %v2276_v17 = vadd.f32 %v2273_v0, %v2267_v19 }
 0x48b   : > { %v2279_v20 = vadd.f32 %v2277_v47, %v2173_v9  ;;  %v2381_v36 = vadd.f32 %v2379_v57, %v2372_v30  ;;  %v2373_v22 = vmul.f32 %v6476_v49, %v7456_v56  ;;  %v596_v49 = vld [vmem:[%s8290_s10] sm:$0xf] }
 0x48c   : > { %v2278_v39 = vmul.f32 %v2276_v17, %v7226_v48  ;;  %v6152_v17 = vld [vmem:[%s8290_s10 + $0x8] sm:$0xf] }
 0x48d   : > { %v2383_v25 = vmul.f32 %v2381_v36, %v7290_v29  ;;  %v2382_v18 = vadd.f32 %v2379_v57, %v2373_v22  ;;  %v6150_v57 = vld [vmem:[%s8290_s10 + $0x4] sm:$0xf]  ;;  %v8514_v22 = vmov 0.0  }
 0x48e   : > { %v6478_v33 = vpop.eup %6477  ;;  %v2280_v38 = vadd.f32 %v2278_v39, %v2174_v2  ;;  %v6259_v2 = vld [vmem:[%s6830_s16 + $0x2] sm:$0x3] }
 0x48f   : > { %v6480_v40 = vpop.eup %6479  ;;  %v2385_v55 = vadd.f32 %v2383_v25, %v2279_v20  ;;  %v2384_v46 = vmul.f32 %v2382_v18, %v7261_v13  ;;  %v2478_v12 = vmul.f32 %v6478_v33, %v7463_v45  ;;  %v6154_v20 = vld [vmem:[%s8290_s10 + $0xc] sm:$0xf]  ;;  %v3472_v36 = vrot.slane %v6259_v2, %v6834_v6  ;;  %v6156_v25 = vld [vmem:[%s8290_s10 + $0x14] sm:$0xf]  ;;  %v6158_v6 = vld [vmem:[%s8290_s10 + $0x18] sm:$0xf] }
 0x490   : > { %v2479_v16 = vmul.f32 %v6480_v40, %v7466_v23  ;;  %v3468_v39 = vrot.slane %v6259_v2, %v6832_v5  ;;  %v6160_v18 = vld [vmem:[%s8290_s10 + $0x1c] sm:$0xf]  ;;  %v6162_v33 = vld [vmem:[%s8290_s10 + $0x20] sm:$0xf]  ;;  %v7629_v2 = vpop.permute.xlu1 %2620 }
 0x491   : > { %v2386_v1 = vadd.f32 %v2384_v46, %v2280_v38  ;;  %v2487_v7 = vadd.f32 %v2485_v14, %v2478_v12  ;;  %8535 = vst [vmem:[#allocation29_spill] sm:$0xff] %v7629_v2 }
 0x492   : > { %v2488_v28 = vadd.f32 %v2485_v14, %v2479_v16 }
 0x493   : > { %v2489_v56 = vmul.f32 %v2487_v7, %v7318_v41 }
 0x494   : > { %v2490_v44 = vmul.f32 %v2488_v28, %v7296_v31 }
 0x495   : > { %v2491_v61 = vadd.f32 %v2489_v56, %v2385_v55 }
 0x496   : > { %v2492_v0 = vadd.f32 %v2490_v44, %v2386_v1 }
 0x497   : > { %v2493_v15 = vsub.f32 0.0, %v2491_v61 }
 0x498   : > { %v2494_v37 = vsub.f32 0.0, %v2492_v0 }
 0x499   : > { %v2495_v54 = vmul.f32 1.442695, %v2493_v15 }
 0x49a   : > { %v2497_v9 = vmul.f32 1.442695, %v2494_v37 }
 0x49b   : > { %6481 = vpow2.f32 %v2495_v54 }
 0x49c   : > { %6483 = vpow2.f32 %v2497_v9 }
 0x4a5   : > { %v6482_v21 = vpop.eup %6481 }
 0x4a6   : > { %v6484_v45 = vpop.eup %6483  ;;  %v2499_v11 = vadd.f32 1.0, %v6482_v21 }
 0x4a7   : > { %v2500_v23 = vadd.f32 1.0, %v6484_v45  ;;  %v2606_v45 = vld [vmem:[%s7609_s30] sm:$0xf] }
 0x4a8   : > { %6485 = vrcp.f32 %v2499_v11  ;;  %v6231_v11 = vld [vmem:[%s7609_s30 + $0x4] sm:$0xf] }
 0x4a9   : > { %6487 = vrcp.f32 %v2500_v23  ;;  %v6235_v23 = vld [vmem:[%s7609_s30 + $0x8] sm:$0xf] }
 0x4b2   : > { %v6486_v24 = vpop.eup %6485 }
 0x4b3   : > { %v6488_v19 = vpop.eup %6487  ;;  %v2505_v30 = vmul.f32 %v6486_v24, %v2491_v61  ;;  %v6239_v24 = vld [vmem:[%s7609_s30 + $0xc] sm:$0xf] }
 0x4b4   : > { %v2506_v47 = vmul.f32 %v6488_v19, %v2492_v0  ;;  %v6243_v19 = vld [vmem:[%s7609_s30 + $0x14] sm:$0xf] }
 0x4b6   : > { %6225 = vmatprep.subr.msk.mxu1 %vm8504_vm6, %v2506_v47  ;;  %6228 = vmatprep.subr.msk.mxu0 %vm8505_vm10, %v2506_v47  ;;  %vm8512_vm6 = vmmov %vm8494_vm3 }
 0x4b7   : > { %6226 = vmatpush1.msk.msra.mxu1 %vm8506_vm9, %v2505_v30  ;;  %6229 = vmatpush1.msk.msra.mxu0 %vm8507_vm13, %v2505_v30  ;;  %vm8513_vm10 = vmmov %vm8494_vm3 }
 0x4b8   : > { %6227 = vmatmul.mubr.msk.f32.vlgmr.msra.gmra.mrb[2].mxu1 %vm8508_vm2, %v596_v49  ;;  %6230 = vmatmul.mubr.msk.f32.vlgmr.msra.gmra.mrb[18].mxu0 %vm8493_vm1, %v6150_v57  ;;  %vm8517_vm9 = vmmov %vm8494_vm3  ;;  %v6255_v49 = vld [vmem:[%s7609_s30 + $0x20] sm:$0xf]  ;;  %v7627_v57 = vpop.permute.xlu0 %2509 }
 0x4b9   : > { %6232 = vmatprep.subr.msk.mxu1 %vm8494_vm3, %v2506_v47  ;;  %6236 = vmatprep.subr.msk.mxu0 %vm8509_vm7, %v2506_v47  ;;  %vm8518_vm13 = vmmov %vm8494_vm3  ;;  %8534 = vst [vmem:[#allocation28_spill] sm:$0xff] %v7627_v57 }
 0x4ba   : > { %6233 = vmatpush1.msk.msra.mxu1 %vm8510_vm8, %v2505_v30  ;;  %6237 = vmatpush1.msk.msra.mxu0 %vm8511_vm12, %v2505_v30  ;;  %vm8515_vm8 = vmmov %vm8493_vm1 }
 0x4bb   : > { %6240 = vmatprep.subr.msk.mxu1 %vm8512_vm6, %v2506_v47  ;;  %6244 = vmatprep.subr.msk.mxu0 %vm8513_vm10, %v2506_v47  ;;  %vm8516_vm12 = vmmov %vm8493_vm1 }
 0x4bc   : > { %2796 = vmatprep.mubr.f32.mxu1 %v8514_v22  ;;  %2902 = vmatprep.mubr.f32.mxu0 %v8514_v22  ;;  %vm8519_vm2 = vmmov %vm8494_vm3  ;;  %vm3474_vm3 = vcmp.eq.s32.totalorder %v6839_v10, %v3472_v36  ;;  %v7636_v36 = vpop.permute.xlu1 %2832 }
 0x4bd   : > { %6234 = vmatmul.mubr.msk.f32.vlgmr.msra.gmra.mrb[4].mxu1 %vm8515_vm8, %v6152_v17  ;;  %6238 = vmatmul.mubr.msk.f32.vlgmr.msra.gmra.mrb[20].mxu0 %vm8516_vm12, %v6154_v20  ;;  %vm8520_vm1 = vmmov %vm8519_vm2  ;;  %v7551_v5 = vsel %vm3474_vm3, 1.0, %v8514_v22  ;;  %vm3473_vm12 = vcmp.eq.s32.totalorder %v6839_v10, %v3468_v39  ;;  %v6697_v10 = vld [vmem:[%s8284_s4] sm:$0xf]  ;;  %vm8531_vm3 = vcmask 23552   ;;  %v7634_v20 = vpop.permute.xlu0 %2726  ;;  %8537 = vst [vmem:[#allocation31_spill] sm:$0xff] %v7636_v36 }
 0x4be   : > { %6241 = vmatpush1.msk.msra.mxu1 %vm8517_vm9, %v2505_v30  ;;  %6245 = vmatpush1.msk.msra.mxu0 %vm8518_vm13, %v2505_v30  ;;  %vm8521_vm7 = vmmov %vm8515_vm8  ;;  %8525 = vst [vmem:[#allocation26_spill] sm:$0xff] %v7551_v5  ;;  %vm8526_vm9 = vcmask 1042432   ;;  %v7567_v38 = vsel %vm3473_vm12, 1.0, %v8514_v22  ;;  %vm8548_vm12 = vcmask 121856  }
 0x4bf   : > { %6248 = vmatprep.subr.msk.mxu1 %vm8519_vm2, %v2506_v47  ;;  %6252 = vmatprep.subr.msk.mxu0 %vm8520_vm1, %v2506_v47  ;;  %vm8522_vm6 = vmmov %vm8521_vm7  ;;  %8529 = vst [vmem:[#allocation27_spill] sm:$0xff] %v7567_v38  ;;  %v6247_v47 = vld [vmem:[%s7609_s30 + $0x18] sm:$0xf] }
 0x4c0   : > { %3008 = vmatprep.mubr.f32.mxu1 %v8514_v22  ;;  %3114 = vmatprep.mubr.f32.mxu0 %v8514_v22  ;;  %vm8523_vm10 = vmmov %vm8520_vm1  ;;  %8536 = vst [vmem:[#allocation30_spill] sm:$0xff] %v7634_v20 }
 0x4c1   : > { %6242 = vmatmul.mubr.msk.f32.vlgmr.msra.gmra.mrb[6].mxu1 %vm8521_vm7, %v6156_v25  ;;  %6246 = vmatmul.mubr.msk.f32.vlgmr.msra.gmra.mrb[22].mxu0 %vm8522_vm6, %v6158_v6  ;;  %vm8524_vm8 = vmmov %vm8520_vm1  ;;  %vm8542_vm7 = vcmask 7168  }
 0x4c2   : > { %6249 = vmatpush1.msk.msra.mxu1 %vm8523_vm10, %v2505_v30  ;;  %6253 = vmatpush1.msk.msra.mxu0 %vm8524_vm8, %v2505_v30  ;;  %vm8527_vm13 = vmmov %vm8522_vm6  ;;  %v6251_v30 = vld [vmem:[%s7609_s30 + $0x1c] sm:$0xf]  ;;  %vm8544_vm10 = vcmask 924672  }
 0x4c3   : > { %6262 = vmatprep.subr.msk.mxu0 %vm8526_vm9, %v7551_v5  ;;  %3220 = vmatprep.mubr.f32.mxu1 %v8514_v22  ;;  %vm8528_vm2 = vmmov %vm8522_vm6 }
 0x4c4   : > { %3326 = vmatprep.mubr.f32.mxu0 %v8514_v22  ;;  %vm8530_vm1 = vmmov %vm8526_vm9 }
 0x4c5   : > { %6250 = vmatmul.mubr.msk.f32.vlgmr.msra.gmra.mrb[8].mxu1 %vm8527_vm13, %v6160_v18  ;;  %6254 = vmatmul.mubr.msk.f32.vlgmr.msra.gmra.mrb[24].mxu0 %vm8528_vm2, %v6162_v33  ;;  %vm8543_vm6 = vmmov %vm8542_vm7  ;;  %vm8553_vm13 = vcmask 1043456  }
 0x4c6   : > { %6263 = vmatpush1.msk.msra.mxu0 %vm8530_vm1, %v7567_v38  ;;  %3549 = vmatprep.mubr.f32.mxu0 %v8514_v22  ;;  %vm8545_vm8 = vmmov %vm8544_vm10  ;;  %vm8555_vm1 = vnez %v8401_v63  ;;  %v6354_v63 = vld [vmem:[%s7609_s30 + $0x44] sm:$0xf] }
 0x4c7   : > { %3433 = vmatprep.mubr.f32.mxu1 %v8514_v22  ;;  %vm8549_vm9 = vmmov %vm8548_vm12 }
 0x4c8   : > { %vm8554_vm2 = vmmov %vm8553_vm13 }
 0x4c9   : > { %6264 = vmatmul.mubr.msk.f32.vlgmr.msra.gmra.mrb[26].mxu0 %vm8531_vm3, %v6697_v10  ;;  %vm8556_vm3 = vcmask 31744  }
 0x4ca   : > { %4397 = vmatprep.mubr.f32.mxu0 %v8514_v22 }
 0x58b   : > { %v2587_v40 = vpop.f32.mrb[2].mxu1  ;;  %v2692_v55 = vpop.f32.mrb[18].mxu0 }
 0x58c   : > { %v2589_v46 = vpop.f32.mrb[3].mxu1  ;;  %v2694_v12 = vpop.f32.mrb[19].mxu0  ;;  %v7632_v17 = vadd.f32 %v2587_v40, %v7627_v57  ;;  %v7640_v25 = vadd.f32 %v2692_v55, %v7629_v2 }
 0x58d   : > { %v7643_v6 = vadd.f32 %v2589_v46, %v7627_v57  ;;  %v7646_v18 = vadd.f32 %v2694_v12, %v7629_v2  ;;  %v7661_v46 = vpop.permute.xlu1 %3044 }
 0x58e   : > { %v2592_v39 = vsub.f32 0.0, %v7632_v17  ;;  %v2697_v40 = vsub.f32 0.0, %v7640_v25  ;;  %8539 = vst [vmem:[#allocation33_spill] sm:$0xff] %v7661_v46 }
 0x58f   : > { %v2593_v55 = vsub.f32 0.0, %v7643_v6  ;;  %v2698_v12 = vsub.f32 0.0, %v7646_v18 }
 0x590   : > { %v2798_v14 = vpop.f32.mrb[4].mxu1  ;;  %v2904_v16 = vpop.f32.mrb[20].mxu0  ;;  %v2594_v10 = vmul.f32 1.442695, %v2592_v39 }
 0x591   : > { %v2800_v1 = vpop.f32.mrb[5].mxu1  ;;  %v2906_v7 = vpop.f32.mrb[21].mxu0  ;;  %v7649_v33 = vadd.f32 %v2798_v14, %v7634_v20 }
 0x592   : > { %v7665_v14 = vadd.f32 %v2906_v7, %v7636_v36  ;;  %6489 = vpow2.f32 %v2594_v10  ;;  %v2701_v7 = vmul.f32 1.442695, %v2698_v12 }
 0x594   : > { %v3010_v28 = vpop.f32.mrb[6].mxu1  ;;  %v3116_v56 = vpop.f32.mrb[22].mxu0  ;;  %v2910_v5 = vsub.f32 0.0, %v7665_v14 }
 0x595   : > { %v3012_v44 = vpop.f32.mrb[7].mxu1  ;;  %v7578_v61 = vpop.f32.mrb[23].mxu0 }
 0x598   : > { %v7580_v0 = vpop.f32.mrb[8].mxu1  ;;  %v7582_v15 = vpop.f32.mrb[24].mxu0 }
 0x599   : > { %v7584_v37 = vpop.f32.mrb[9].mxu1  ;;  %v7586_v54 = vpop.f32.mrb[25].mxu0 }
 0x59c   : > { %v7588_v9 = vpop.f32.mrb[26].mxu0 }
 0x59d   : > { %3567 = vrot.lane.b32.xlu1 %v7588_v9, %s6734_s24  ;;  %3561 = vrot.lane.b32.xlu0 %v7588_v9, %s6733_s23  ;;  %v7594_v21 = vpop.f32.mrb[27].mxu0 }
 0x5a1   : > { %3569 = vrot.lane.b32.xlu0 %v7594_v21, %s6734_s24  ;;  %3557 = vrot.lane.b32.xlu1 %v7594_v21, %s6733_s23  ;;  %s8533_s23 = smov 16   ;;  %s8550_s24 = smov 112  }
 0x5a5   : > { %3616 = vrot.lane.b32.xlu0 %v7588_v9, %s6735_s26  ;;  %3618 = vrot.lane.b32.xlu1 %v7594_v21, %s6735_s26 }
 0x5a9   : > { %3625 = vrot.lane.b32.xlu0 %v7594_v21, %s8532_s20  ;;  %3628 = vrot.lane.b32.xlu1 %v7588_v9, %s8532_s20 }
 0x5ad   : > { %2609 = vperm.xlu0 %6407, %v2606_v45   ;;  %2715 = vperm.xlu1 %6408, %v6231_v11   ;;  %v7653_v45 = vadd.f32 %v2904_v16, %v7636_v36  ;;  %v7655_v11 = vpop.permute.xlu0 %2938  ;;  %v2699_v16 = vmul.f32 1.442695, %v2697_v40  ;;  %v7685_v40 = vadd.f32 %v7578_v61, %v7661_v46  ;;  %v2913_v61 = vmul.f32 1.442695, %v2910_v5 }
 0x5ae   : > { %8538 = vst [vmem:[#allocation32_spill] sm:$0xff] %v7655_v11  ;;  %v7677_v39 = vadd.f32 %v3012_v44, %v7655_v11 }
 0x5af   : > { %6491 = vpow2.f32 %v2699_v16  ;;  %v3122_v16 = vsub.f32 0.0, %v7685_v40 }
 0x5b1   : > { %2821 = vperm.xlu0 %6407, %v6235_v23   ;;  %2927 = vperm.xlu1 %6408, %v6239_v24   ;;  %v7659_v23 = vadd.f32 %v2800_v1, %v7634_v20  ;;  %v2803_v24 = vsub.f32 0.0, %v7649_v33  ;;  %v2596_v1 = vmul.f32 1.442695, %v2593_v55  ;;  %v7680_v38 = vpop.permute.xlu0 %3150  ;;  %v3125_v20 = vmul.f32 1.442695, %v3122_v16 }
 0x5b2   : > { %8540 = vst [vmem:[#allocation34_spill] sm:$0xff] %v7680_v38  ;;  %v7692_v44 = vadd.f32 %v7580_v0, %v7680_v38 }
 0x5b3   : > { %6493 = vpow2.f32 %v2596_v1 }
 0x5b4   : > { %6495 = vpow2.f32 %v2701_v7  ;;  %v3227_v1 = vsub.f32 0.0, %v7692_v44 }
 0x5b5   : > { %3033 = vperm.xlu0 %6407, %v6243_v19   ;;  %3139 = vperm.xlu1 %6408, %v6247_v47   ;;  %v7669_v19 = vadd.f32 %v3010_v28, %v7655_v11  ;;  %v2909_v47 = vsub.f32 0.0, %v7653_v45  ;;  %v2805_v28 = vmul.f32 1.442695, %v2803_v24  ;;  %v3016_v24 = vsub.f32 0.0, %v7677_v39 }
 0x5b7   : > { %v3015_v10 = vsub.f32 0.0, %v7669_v19  ;;  %v2911_v55 = vmul.f32 1.442695, %v2909_v47  ;;  %6497 = vpow2.f32 %v2805_v28  ;;  %v7702_v47 = vadd.f32 %v7584_v37, %v7680_v38 }
 0x5b9   : > { %3245 = vperm.xlu0 %6407, %v6251_v30   ;;  %3351 = vperm.xlu1 %6408, %v6255_v49   ;;  %v7673_v30 = vadd.f32 %v3116_v56, %v7661_v46  ;;  %v2804_v49 = vsub.f32 0.0, %v7659_v23  ;;  %v7687_v56 = vpop.permute.xlu1 %3256  ;;  %v3017_v46 = vmul.f32 1.442695, %v3015_v10  ;;  %6499 = vpow2.f32 %v2911_v55  ;;  %v6490_v10 = vpop.eup %6489 }
 0x5ba   : > { %8541 = vst [vmem:[#allocation35_spill] sm:$0xff] %v7687_v56  ;;  %v7697_v11 = vadd.f32 %v7582_v15, %v7687_v56  ;;  %v3019_v15 = vmul.f32 1.442695, %v3016_v24  ;;  %v3228_v37 = vsub.f32 0.0, %v7702_v47  ;;  %v2598_v38 = vadd.f32 1.0, %v6490_v10  ;;  %v6492_v24 = vpop.eup %6491 }
 0x5bb   : > { %v3121_v36 = vsub.f32 0.0, %v7673_v30  ;;  %v2807_v12 = vmul.f32 1.442695, %v2804_v49  ;;  %v7707_v49 = vadd.f32 %v7586_v54, %v7687_v56 }
 0x5bc   : > { %v3333_v5 = vsub.f32 0.0, %v7697_v11 }
 0x5bd   : > { %3598 = vrot.lane.b32.xlu0 %v7594_v21, %s8533_s23  ;;  %3601 = vrot.lane.b32.xlu1 %v7588_v9, %s8533_s23  ;;  %v3123_v0 = vmul.f32 1.442695, %v3121_v36  ;;  %6501 = vpow2.f32 %v2807_v12  ;;  %v3229_v36 = vmul.f32 1.442695, %v3227_v1  ;;  %v3334_v55 = vsub.f32 0.0, %v7707_v49  ;;  %v6494_v16 = vpop.eup %6493 }
 0x5be   : > { %6503 = vpow2.f32 %v2913_v61  ;;  %v3335_v54 = vmul.f32 1.442695, %v3333_v5  ;;  %v6496_v5 = vpop.eup %6495  ;;  %v2599_v35 = vadd.f32 1.0, %v6494_v16 }
 0x5bf   : > { %6505 = vpow2.f32 %v3017_v46  ;;  %v3337_v10 = vmul.f32 1.442695, %v3334_v55 }
 0x5c0   : > { %6507 = vpow2.f32 %v3123_v0  ;;  %v3231_v0 = vmul.f32 1.442695, %v3228_v37  ;;  %v2704_v37 = vadd.f32 1.0, %v6496_v5 }
 0x5c1   : > { %6509 = vpow2.f32 %v3019_v15 }
 0x5c2   : > { %6511 = vpow2.f32 %v3125_v20  ;;  %v2703_v20 = vadd.f32 1.0, %v6492_v24 }
 0x5c3   : > { %6513 = vpow2.f32 %v3229_v36 }
 0x5c4   : > { %6515 = vrcp.f32 %v2598_v38 }
 0x5c5   : > { %6517 = vpow2.f32 %v3335_v54 }
 0x5c6   : > { %6519 = vpow2.f32 %v3231_v0 }
 0x5c7   : > { %6521 = vpow2.f32 %v3337_v10 }
 0x5c8   : > { %6523 = vrcp.f32 %v2703_v20 }
 0x5c9   : > { %6525 = vrcp.f32 %v2599_v35 }
 0x5ca   : > { %6527 = vrcp.f32 %v2704_v37 }
 0x60f   : > { %v3568_v7 = vpop.permute.xlu1 %3567  ;;  %v3562_v28 = vpop.permute.xlu0 %3561 }
 0x613   : > { %v3558_v56 = vpop.permute.xlu1 %3557  ;;  %v3570_v12 = vpop.permute.xlu0 %3569 }
 0x614   : > { %v3563_v2 = vsel %vm8542_vm7, %v3562_v28, %v3558_v56  ;;  %v3566_v57 = vsel %vm8543_vm6, %v3558_v56, %v3562_v28  ;;  %v3571_v61 = vsel %vm8544_vm10, %v3568_v7, %v3570_v12  ;;  %v3575_v46 = vsel %vm8545_vm8, %v3570_v12, %v3568_v7  ;;  %v6498_v56 = vpop.eup %6497  ;;  %vm8557_vm7 = vmmov %vm8554_vm2 }
 0x615   : > { %v7718_v1 = vsel %vm6927_vm0, %v3571_v61, %v3566_v57  ;;  %v7722_v15 = vsel %vm6931_vm11, %v3575_v46, %v3563_v2  ;;  %v6500_v57 = vpop.eup %6499  ;;  %v2809_v55 = vadd.f32 1.0, %v6498_v56  ;;  %vm8546_vm0 = vcmask 1039360   ;;  %vm8558_vm6 = vmmov %vm8554_vm2 }
 0x616   : > { %3579 = vrot.lane.b32.xlu0 %v7722_v15, %s8533_s23  ;;  %3583 = vrot.lane.b32.xlu1 %v7718_v1, %s8533_s23  ;;  %v6502_v28 = vpop.eup %6501  ;;  %v2915_v12 = vadd.f32 1.0, %v6500_v57  ;;  %vm8547_vm11 = vmmov %vm8546_vm0 }
 0x617   : > { %v3619_v7 = vpop.permute.xlu1 %3618  ;;  %v3617_v34 = vpop.permute.xlu0 %3616  ;;  %v2810_v0 = vadd.f32 1.0, %v6502_v28  ;;  %6529 = vrcp.f32 %v2809_v55 }
 0x618   : > { %v6504_v2 = vpop.eup %6503  ;;  %v3620_v38 = vsel %vm8546_vm0, %v3617_v34, %v3619_v7  ;;  %v3624_v24 = vsel %vm8547_vm11, %v3619_v7, %v3617_v34  ;;  %6531 = vrcp.f32 %v2915_v12 }
 0x619   : > { %v6506_v36 = vpop.eup %6505  ;;  %v2916_v56 = vadd.f32 1.0, %v6504_v2  ;;  %6533 = vrcp.f32 %v2810_v0 }
 0x61a   : > { %v6508_v53 = vpop.eup %6507  ;;  %v3021_v7 = vadd.f32 1.0, %v6506_v36 }
 0x61b   : > { %v3629_v61 = vpop.permute.xlu1 %3628  ;;  %v3626_v46 = vpop.permute.xlu0 %3625  ;;  %v3127_v50 = vadd.f32 1.0, %v6508_v53  ;;  %6535 = vrcp.f32 %v2916_v56  ;;  %v6294_v56 = vld [vmem:[%s7050_s18 + $0x24] sm:$0xf] }
 0x61c   : > { %v3630_v52 = vsel %vm8548_vm12, %v3629_v61, %v3626_v46  ;;  %v3633_v54 = vsel %vm8549_vm9, %v3626_v46, %v3629_v61  ;;  %v6510_v16 = vpop.eup %6509  ;;  %6537 = vrcp.f32 %v3021_v7  ;;  %vm8566_vm12 = vmmov %vm8554_vm2 }
 0x61d   : > { %v7734_v5 = vsel %vm6963_vm5, %v3633_v54, %v3620_v38  ;;  %v7738_v10 = vsel %vm6967_vm4, %v3630_v52, %v3624_v24  ;;  %v6512_v20 = vpop.eup %6511  ;;  %v3022_v28 = vadd.f32 1.0, %v6510_v16  ;;  %6539 = vrcp.f32 %v3127_v50  ;;  %vm8567_vm9 = vmmov %vm8554_vm2 }
 0x61e   : > { %3641 = vrot.lane.b32.xlu1 %v7734_v5, %s8533_s23  ;;  %3637 = vrot.lane.b32.xlu0 %v7738_v10, %s8533_s23  ;;  %v6514_v34 = vpop.eup %6513  ;;  %v3128_v52 = vadd.f32 1.0, %v6512_v20  ;;  %v6290_v20 = vld [vmem:[%s7072_s19 + $0x1] ss:$0 sm:$0xff]  ;;  %vm8551_vm4 = vcmask 130048   ;;  %s6361_s19 = sshll.u32 %s8689_s29, 3 }
 0x61f   : > { %v6516_v57 = vpop.eup %6515  ;;  %v3233_v2 = vadd.f32 1.0, %v6514_v34  ;;  %6541 = vrcp.f32 %v3022_v28  ;;  %vm8552_vm5 = vmmov %vm8551_vm4  ;;  %s7960_s15 = scalar_lea.vmem %s8293_s13, %s6361_s19 }
 0x620   : > { %v6518_v51 = vpop.eup %6517  ;;  %6543 = vrcp.f32 %v3128_v52  ;;  %v2604_v54 = vmul.f32 %v6516_v57, %v7632_v17  ;;  %vm8560_vm10 = vmmov %vm8551_vm4 }
 0x621   : > { %v6520_v35 = vpop.eup %6519  ;;  %v3339_v53 = vadd.f32 1.0, %v6518_v51  ;;  %6545 = vrcp.f32 %v3233_v2  ;;  %vm8561_vm8 = vmmov %vm8551_vm4 }
 0x622   : > { %3591 = vrot.lane.b32.xlu1 %v7722_v15, %s8550_s24  ;;  %3589 = vrot.lane.b32.xlu0 %v7718_v1, %s8550_s24  ;;  %v6522_v37 = vpop.eup %6521  ;;  %v3234_v55 = vadd.f32 1.0, %v6520_v35 }
 0x623   : > { %v6524_v36 = vpop.eup %6523  ;;  %v3340_v61 = vadd.f32 1.0, %v6522_v37  ;;  %6547 = vrcp.f32 %v3339_v53  ;;  %v6302_v53 = vld [vmem:[%s7050_s18 + $0x2c] sm:$0xf] }
 0x624   : > { %v6526_v12 = vpop.eup %6525  ;;  %6549 = vrcp.f32 %v3234_v55  ;;  %v6298_v55 = vld [vmem:[%s7050_s18 + $0x28] sm:$0xf] }
 0x625   : > { %v6528_v46 = vpop.eup %6527  ;;  %v2605_v16 = vmul.f32 %v6526_v12, %v7643_v6  ;;  %6551 = vrcp.f32 %v3340_v61 }
 0x626   : > { %3609 = vrot.lane.b32.xlu1 %v7594_v21, %s8550_s24  ;;  %3607 = vrot.lane.b32.xlu0 %v7588_v9, %s8550_s24  ;;  %v6530_v38 = vpop.eup %6529  ;;  %v2709_v9 = vmul.f32 %v6524_v36, %v7640_v25  ;;  %v2710_v0 = vmul.f32 %v6528_v46, %v7646_v18 }
 0x627   : > { %v6532_v24 = vpop.eup %6531  ;;  %v2815_v61 = vmul.f32 %v6530_v38, %v7649_v33 }
 0x628   : > { %v6534_v21 = vpop.eup %6533  ;;  %v2921_v25 = vmul.f32 %v6532_v24, %v7653_v45 }
 0x629   : > { %v6536_v7 = vpop.eup %6535  ;;  %v2816_v46 = vmul.f32 %v6534_v21, %v7659_v23  ;;  %v6310_v21 = vld [vmem:[%s7050_s18 + $0x38] sm:$0xf] }
 0x62a   : > { %3649 = vrot.lane.b32.xlu1 %v7738_v10, %s8550_s24  ;;  %3647 = vrot.lane.b32.xlu0 %v7734_v5, %s8550_s24  ;;  %v6538_v50 = vpop.eup %6537  ;;  %v2922_v45 = vmul.f32 %v6536_v7, %v7665_v14 }
 0x62b   : > { %v6540_v35 = vpop.eup %6539  ;;  %v3027_v33 = vmul.f32 %v6538_v50, %v7669_v19 }
 0x62c   : > { %v2716_v34 = vpop.permute.xlu1 %2715  ;;  %v2610_v17 = vpop.permute.xlu0 %2609  ;;  %v3133_v23 = vmul.f32 %v6540_v35, %v7673_v30 }
 0x62d   : > { %v2718_v57 = vadd.f32 %v2716_v34, %v2709_v9  ;;  %v2719_v28 = vadd.f32 %v2716_v34, %v2710_v0  ;;  %v2612_v51 = vadd.f32 %v2610_v17, %v2604_v54  ;;  %v2613_v52 = vadd.f32 %v2610_v17, %v2605_v16  ;;  %v6542_v6 = vpop.eup %6541 }
 0x62e   : > { %4422 = vperm.xlu1 %6408, %v6294_v56   ;;  %4308 = vperm.xlu0 %6407, %v6290_v20   ;;  %v6544_v12 = vpop.eup %6543  ;;  %v3028_v14 = vmul.f32 %v6542_v6, %v7677_v39  ;;  %v6306_v20 = vld [vmem:[%s7050_s18 + $0x30] sm:$0xf] }
 0x62f   : > { %v2720_v18 = vmul.f32 %v2718_v57, %v7005_v4  ;;  %v2721_v2 = vmul.f32 %v2719_v28, %v7002_v3  ;;  %v2614_v37 = vmul.f32 %v2612_v51, %v7127_v58  ;;  %v2615_v36 = vmul.f32 %v2613_v52, %v7124_v32  ;;  %v6546_v4 = vpop.eup %6545 }
 0x630   : > { %v2928_v24 = vpop.permute.xlu1 %2927  ;;  %v2822_v54 = vpop.permute.xlu0 %2821  ;;  %v3134_v38 = vmul.f32 %v6544_v12, %v7685_v40  ;;  %v3239_v34 = vmul.f32 %v6546_v4, %v7692_v44 }
 0x631   : > { %v2722_v9 = vadd.f32 %v2720_v18, %v2614_v37  ;;  %v2723_v3 = vadd.f32 %v2721_v2, %v2615_v36  ;;  %v2930_v16 = vadd.f32 %v2928_v24, %v2921_v25  ;;  %v2931_v58 = vadd.f32 %v2928_v24, %v2922_v45  ;;  %v6548_v56 = vpop.eup %6547  ;;  %v6318_v18 = vld [vmem:[%s7050_s18 + $0x40] sm:$0xf]  ;;  %v6314_v2 = vld [vmem:[%s7050_s18 + $0x3c] sm:$0xf]  ;;  %v6326_v24 = vld [vmem:[%s7609_s30 + $0x24] sm:$0xf] }
 0x632   : > { %v2824_v0 = vadd.f32 %v2822_v54, %v2815_v61  ;;  %v2825_v32 = vadd.f32 %v2822_v54, %v2816_v46  ;;  %4618 = vperm.xlu1 %6408, %v6302_v53   ;;  %4520 = vperm.xlu0 %6407, %v6298_v55   ;;  %v6550_v7 = vpop.eup %6549  ;;  %v6322_v54 = vld [vmem:[%s7050_s18 + $0x44] sm:$0xf] }
 0x633   : > { %v2932_v17 = vmul.f32 %v2930_v16, %v6950_v42  ;;  %v6552_v30 = vpop.eup %6551  ;;  %v2933_v35 = vmul.f32 %v2931_v58, %v6954_v43  ;;  %v3345_v42 = vmul.f32 %v6548_v56, %v7697_v11  ;;  %v6334_v56 = vld [vmem:[%s7609_s30 + $0x2c] sm:$0xf] }
 0x634   : > { %v2826_v57 = vmul.f32 %v2824_v0, %v7171_v27  ;;  %v2827_v28 = vmul.f32 %v2825_v32, %v7168_v26  ;;  %v3140_v51 = vpop.permute.xlu1 %3139  ;;  %v3034_v19 = vpop.permute.xlu0 %3033  ;;  %v3240_v27 = vmul.f32 %v6550_v7, %v7702_v47  ;;  %v3346_v37 = vmul.f32 %v6552_v30, %v7707_v49  ;;  %v6350_v7 = vld [vmem:[%s7609_s30 + $0x40] sm:$0xf] }
 0x635   : > { %v3142_v50 = vadd.f32 %v3140_v51, %v3133_v23  ;;  %v3143_v39 = vadd.f32 %v3140_v51, %v3134_v38  ;;  %v3036_v52 = vadd.f32 %v3034_v19, %v3027_v33  ;;  %v3037_v40 = vadd.f32 %v3034_v19, %v3028_v14  ;;  %v6330_v23 = vld [vmem:[%s7609_s30 + $0x28] sm:$0xf]  ;;  %v6342_v38 = vld [vmem:[%s7609_s30 + $0x38] sm:$0xf]  ;;  %v8562_v19 = vld [vmem:[#allocation4_spill] sm:$0xff] }
 0x636   : > { %v2828_v25 = vadd.f32 %v2826_v57, %v2722_v9  ;;  %v2829_v6 = vadd.f32 %v2827_v28, %v2723_v3  ;;  %4814 = vperm.xlu1 %6408, %v6310_v21   ;;  %4716 = vperm.xlu0 %6407, %v6306_v20   ;;  %v6338_v20 = vld [vmem:[%s7609_s30 + $0x30] sm:$0xf]  ;;  %vm8563_vm0 = vnez %v8562_v19  ;;  %v8617_v19 = vld [vmem:[#allocation2_spill] sm:$0xff] }
 0x637   : > { %v3038_v26 = vmul.f32 %v3036_v52, %v6983_v59  ;;  %v3039_v44 = vmul.f32 %v3037_v40, %v6987_v60  ;;  %v3144_v36 = vmul.f32 %v3142_v50, %v7255_v8  ;;  %v3145_v11 = vmul.f32 %v3143_v39, %v7226_v48  ;;  %v8564_v50 = vld [vmem:[#allocation5_spill] sm:$0xff]  ;;  %v6699_v52 = vld [vmem:[%s8285_s5] sm:$0xf] }
 0x638   : > { %v2934_v43 = vadd.f32 %v2932_v17, %v2828_v25  ;;  %v2935_v53 = vadd.f32 %v2933_v35, %v2829_v6  ;;  %v3352_v55 = vpop.permute.xlu1 %3351  ;;  %v3246_v12 = vpop.permute.xlu0 %3245  ;;  %vm8565_vm11 = vnez %v8564_v50 }
 0x639   : > { %v3354_v61 = vadd.f32 %v3352_v55, %v3345_v42  ;;  %v3248_v47 = vadd.f32 %v3246_v12, %v3239_v34  ;;  %v3249_v46 = vadd.f32 %v3246_v12, %v3240_v27  ;;  %v3355_v60 = vadd.f32 %v3352_v55, %v3346_v37  ;;  %v6698_v34 = vld [vmem:[%s8285_s5 + $0x4] sm:$0xf]  ;;  %v6700_v37 = vld [vmem:[%s8285_s5 + $0x8] sm:$0xf] }
 0x63a   : > { %v3040_v59 = vadd.f32 %v3038_v26, %v2934_v43  ;;  %v3041_v45 = vadd.f32 %v3039_v44, %v2935_v53  ;;  %5010 = vperm.xlu1 %6408, %v6318_v18   ;;  %4912 = vperm.xlu0 %6407, %v6314_v2   ;;  %v8570_v42 = vld [vmem:[#allocation6_spill] sm:$0xff]  ;;  %v8572_v26 = vld [vmem:[#allocation7_spill] sm:$0xff]  ;;  %v3896_v2 = vsel %vm7173_vm14, %v7722_v15, 0.0 }
 0x63b   : > { %v3250_v49 = vmul.f32 %v3248_v47, %v7290_v29  ;;  %v3251_v8 = vmul.f32 %v3249_v46, %v7261_v13  ;;  %v3356_v48 = vmul.f32 %v3354_v61, %v7318_v41  ;;  %v3357_v58 = vmul.f32 %v3355_v60, %v7296_v31  ;;  %v516_v31 = vld [vmem:[%s8286_s6] sm:$0x7]  ;;  %v6701_v47 = vld [vmem:[%s8285_s5 + $0xc] sm:$0xf] }
 0x63c   : > { %v3146_v4 = vadd.f32 %v3144_v36, %v3040_v59  ;;  %v3147_v9 = vadd.f32 %v3145_v11, %v3041_v45  ;;  %v3602_v3 = vpop.permute.xlu1 %3601  ;;  %v3599_v16 = vpop.permute.xlu0 %3598  ;;  %v8579_v36 = vld [vmem:[#allocation9_spill] sm:$0xff]  ;;  %v8582_v53 = vld [vmem:[#allocation10_spill] sm:$0xff]  ;;  %v8587_v46 = vld [vmem:[#allocation11_spill] sm:$0xff] }
 0x63d   : > { %v7800_v13 = vsel %vm8551_vm4, %v3602_v3, %v3599_v16  ;;  %v7804_v14 = vsel %vm8552_vm5, %v3599_v16, %v3602_v3  ;;  %vm8568_vm4 = vmmov %vm8556_vm3  ;;  %v8590_v45 = vld [vmem:[#allocation12_spill] sm:$0xff]  ;;  %v8599_v3 = vld [vmem:[#allocation14_spill] sm:$0xff] }
 0x63e   : > { %v3252_v0 = vadd.f32 %v3250_v49, %v3146_v4  ;;  %v3253_v32 = vadd.f32 %v3251_v8, %v3147_v9  ;;  %5226 = vperm.xlu1 %6408, %v6326_v24   ;;  %5108 = vperm.xlu0 %6407, %v6322_v54   ;;  %v3659_v41 = vsel %vm6993_vm15, %v7800_v13, 0.0  ;;  %v3658_v21 = vsel %vm8555_vm1, %v7804_v14, 0.0  ;;  %vm8559_vm15 = vmmov %vm8556_vm3  ;;  %v8595_v4 = vld [vmem:[#allocation13_spill] sm:$0xff] }
 0x63f   : > { %vm8573_vm1 = vnez %v8572_v26 }
 0x640   : > { %v3358_v29 = vadd.f32 %v3356_v48, %v3252_v0  ;;  %v3359_v33 = vadd.f32 %v3357_v58, %v3253_v32  ;;  %v6702_v48 = vld [vmem:[%s8285_s5 + $0x14] sm:$0xf] }
 0x642   : > { %6256 = vmatprep.subr.msk.mxu1 %vm8553_vm13, %v3359_v33  ;;  %5422 = vperm.xlu1 %6408, %v6334_v56   ;;  %vm8569_vm13 = vmmov %vm8552_vm5 }
 0x643   : > { %5324 = vperm.xlu0 %6407, %v6330_v23   ;;  %6257 = vmatpush1.msk.msra.mxu1 %vm8554_vm2, %v3358_v29  ;;  %vm8571_vm2 = vnez %v8570_v42  ;;  %v8604_v29 = vld [vmem:[#allocation15_spill] sm:$0xff]  ;;  %v6703_v23 = vld [vmem:[%s8285_s5 + $0x18] sm:$0xf] }
 0x644   : > { %6258 = vmatmul.mubr.msk.f32.vlgmr.msra.gmra.mrb[10].mxu1 %vm8556_vm3, %v516_v31  ;;  %6265 = vmatprep.subr.msk.mxu1 %vm8557_vm7, %v3659_v41  ;;  %vm8574_vm3 = vmmov %vm8558_vm6  ;;  %v8608_v31 = vld [vmem:[#allocation16_spill] sm:$0xff] }
 0x645   : > { %6266 = vmatpush1.msk.msra.mxu1 %vm8558_vm6, %v3658_v21  ;;  %3730 = vmatprep.mubr.f32.mxu1 %v8514_v22  ;;  %vm8575_vm7 = vmmov %vm8574_vm3  ;;  %v8611_v21 = vld [vmem:[#allocation17_spill] sm:$0xff] }
 0x646   : > { %5618 = vperm.xlu1 %6408, %v6342_v38   ;;  %vm8577_vm6 = vmmov %vm8568_vm4 }
 0x647   : > { %5520 = vperm.xlu0 %6407, %v6338_v20   ;;  %vm8584_vm14 = vmmov %vm8574_vm3 }
 0x648   : > { %6267 = vmatmul.mubr.msk.f32.vlgmr.msra.gmra.mrb[12].mxu1 %vm8559_vm15, %v6698_v34  ;;  %vm8578_vm15 = vmmov %vm8574_vm3 }
 0x649   : > { %3807 = vmatprep.mubr.f32.mxu1 %v8514_v22 }
 0x64a   : > { %5814 = vperm.xlu1 %6408, %v6350_v7   ;;  %v6704_v7 = vld [vmem:[%s8285_s5 + $0x1c] sm:$0xf] }
 0x64b   : > { %5716 = vperm.xlu0 %6407, %v6346_v62   ;;  %v6705_v62 = vld [vmem:[%s8285_s5 + $0x20] sm:$0xf] }
 0x64f   : > { %5912 = vperm.xlu0 %6407, %v6354_v63   ;;  %v8616_v63 = vld [vmem:[#allocation3_spill] sm:$0xff] }
 0x688   : > { %v3584_v17 = vpop.permute.xlu1 %3583  ;;  %v3580_v57 = vpop.permute.xlu0 %3579 }
 0x689   : > { %v7832_v28 = vsel %vm8560_vm10, %v3584_v17, %v3580_v57  ;;  %v7835_v51 = vsel %vm8561_vm8, %v3580_v57, %v3584_v17  ;;  %vm8580_vm10 = vnez %v8579_v36  ;;  %vm8581_vm8 = vmmov %vm8574_vm3 }
 0x68a   : > { %v3656_v30 = vsel %vm8563_vm0, %v7835_v51, 0.0  ;;  %v3657_v39 = vsel %vm8565_vm11, %v7832_v28, 0.0  ;;  %v3895_v43 = vsel %vm8580_vm10, %v7718_v1, 0.0  ;;  %vm8583_vm0 = vnez %v8582_v53 }
 0x68b   : > { %6268 = vmatprep.subr.msk.mxu1 %vm8566_vm12, %v3657_v39  ;;  %v3977_v55 = vsel %vm8583_vm0, %v7738_v10, 0.0  ;;  %vm8585_vm11 = vcmask 916480   ;;  %vm8586_vm12 = vmmov %vm8568_vm4 }
 0x68c   : > { %6269 = vmatpush1.msk.msra.mxu1 %vm8567_vm9, %v3656_v30  ;;  %vm8588_vm9 = vnez %v8587_v46 }
 0x68d   : > { %6270 = vmatmul.mubr.msk.f32.vlgmr.msra.gmra.mrb[12].mxu1 %vm8568_vm4, %v6699_v52  ;;  %v3976_v59 = vsel %vm8588_vm9, %v7734_v5, 0.0  ;;  %vm8589_vm4 = vmmov %vm8574_vm3  ;;  %vm8609_vm9 = vnez %v8608_v31  ;;  %v6707_v31 = vld [vmem:[%s8287_s7 + $0x4] sm:$0xf] }
 0x68e   : > { %3886 = vmatprep.mubr.f32.mxu1 %v8514_v22  ;;  %vm8601_vm10 = vmmov %vm8589_vm4 }
 0x690   : > { %v3642_v40 = vpop.permute.xlu1 %3641  ;;  %v3638_v35 = vpop.permute.xlu0 %3637 }
 0x691   : > { %v7851_v25 = vsel %vm8552_vm5, %v3642_v40, %v3638_v35  ;;  %v7854_v6 = vsel %vm8569_vm13, %v3638_v35, %v3642_v40  ;;  %vm8591_vm5 = vnez %v8590_v45  ;;  %vm8592_vm13 = vmmov %vm8574_vm3 }
 0x692   : > { %v3814_v27 = vsel %vm8571_vm2, %v7854_v6, 0.0  ;;  %v3815_v44 = vsel %vm8573_vm1, %v7851_v25, 0.0  ;;  %vm8593_vm2 = vmmov %vm8585_vm11 }
 0x693   : > { %6271 = vmatprep.subr.msk.mxu1 %vm8574_vm3, %v3815_v44  ;;  %vm8594_vm1 = vmmov %vm8593_vm2  ;;  %vm8596_vm3 = vnez %v8595_v4 }
 0x694   : > { %6272 = vmatpush1.msk.msra.mxu1 %vm8575_vm7, %v3814_v27  ;;  %v3592_v12 = vpop.permute.xlu1 %3591  ;;  %v3590_v11 = vpop.permute.xlu0 %3589  ;;  %vm8597_vm7 = vmmov %vm8577_vm6 }
 0x695   : > { %6273 = vmatmul.mubr.msk.f32.vlgmr.msra.gmra.mrb[12].mxu1 %vm8577_vm6, %v6700_v37  ;;  %6274 = vmatprep.subr.msk.mxu1 %vm8578_vm15, %v3896_v2  ;;  %v7882_v61 = vsel %vm8585_vm11, %v3592_v12, %v3590_v11  ;;  %v7898_v24 = vsel %vm8593_vm2, %v3590_v11, %v3592_v12  ;;  %vm8598_vm6 = vmmov %vm8589_vm4  ;;  %vm8600_vm15 = vnez %v8599_v3 }
 0x696   : > { %6275 = vmatpush1.msk.msra.mxu1 %vm8581_vm8, %v3895_v43  ;;  %3967 = vmatprep.mubr.f32.mxu1 %v8514_v22  ;;  %v4058_v60 = vsel %vm8591_vm5, %v7882_v61, 0.0  ;;  %v4057_v9 = vsel %vm8596_vm3, %v7898_v24, 0.0  ;;  %vm8602_vm8 = vmmov %vm8594_vm1 }
 0x697   : > { %6277 = vmatprep.subr.msk.mxu1 %vm8584_vm14, %v3977_v55  ;;  %vm8603_vm0 = vmmov %vm8594_vm1  ;;  %vm8605_vm14 = vnez %v8604_v29 }
 0x698   : > { %v3610_v49 = vpop.permute.xlu1 %3609  ;;  %v3608_v8 = vpop.permute.xlu0 %3607  ;;  %vm8606_vm11 = vmmov %vm8597_vm7 }
 0x699   : > { %v7901_v54 = vsel %vm8594_vm1, %v3610_v49, %v3608_v8  ;;  %v7917_v32 = vsel %vm8602_vm8, %v3608_v8, %v3610_v49  ;;  %vm8610_vm5 = vmmov %vm8603_vm0 }
 0x69a   : > { %v4139_v16 = vsel %vm8600_vm15, %v7901_v54, 0.0  ;;  %v4138_v33 = vsel %vm8605_vm14, %v7917_v32, 0.0  ;;  %vm8613_vm2 = vmmov %vm8597_vm7 }
 0x69b   : > { %vm8614_vm1 = vmmov %vm8589_vm4 }
 0x69c   : > { %v3650_v58 = vpop.permute.xlu1 %3649  ;;  %v3648_v0 = vpop.permute.xlu0 %3647  ;;  %vm8615_vm3 = vmmov %vm8613_vm2 }
 0x69d   : > { %6276 = vmatmul.mubr.msk.f32.vlgmr.msra.gmra.mrb[12].mxu1 %vm8586_vm12, %v6701_v47  ;;  %v7920_v56 = vsel %vm8603_vm0, %v3650_v58, %v3648_v0  ;;  %vm8607_vm12 = vmmov %vm8589_vm4  ;;  %v7936_v38 = vsel %vm8610_vm5, %v3648_v0, %v3650_v58 }
 0x69e   : > { %6278 = vmatpush1.msk.msra.mxu1 %vm8589_vm4, %v3976_v59  ;;  %4048 = vmatprep.mubr.f32.mxu1 %v8514_v22  ;;  %v4220_v41 = vsel %vm8609_vm9, %v7920_v56, 0.0  ;;  %vm8620_vm15 = vmmov %vm8614_vm1 }
 0x69f   : > { %6280 = vmatprep.subr.msk.mxu1 %vm8592_vm13, %v4058_v60  ;;  %vm8612_vm13 = vnez %v8611_v21  ;;  %vm8622_vm8 = vmmov %vm8613_vm2  ;;  %v6709_v21 = vld [vmem:[%s8287_s7 + $0xc] sm:$0xf] }
 0x6a0   : > { %v4219_v20 = vsel %vm8612_vm13, %v7936_v38, 0.0  ;;  %vm8623_vm0 = vmmov %vm8614_vm1 }
 0x6a1   : > { %vm8624_vm14 = vmmov %vm8623_vm0 }
 0x6a2   : > { %vm8627_vm9 = vmmov %vm8623_vm0 }
 0x6a3   : > { %vm8629_vm5 = vmmov %vm8613_vm2 }
 0x6a4   : > { %vm8630_vm13 = vmmov %vm8623_vm0 }
 0x6a5   : > { %6279 = vmatmul.mubr.msk.f32.vlgmr.msra.gmra.mrb[12].mxu1 %vm8597_vm7, %v6702_v48  ;;  %vm8618_vm7 = vcmask 1042432  }
 0x6a6   : > { %6281 = vmatpush1.msk.msra.mxu1 %vm8598_vm6, %v4057_v9  ;;  %4129 = vmatprep.mubr.f32.mxu1 %v8514_v22  ;;  %vm8619_vm6 = vmmov %vm8618_vm7 }
 0x6a7   : > { %6283 = vmatprep.subr.msk.mxu1 %vm8601_vm10, %v4139_v16  ;;  %vm8621_vm10 = vmmov %vm8614_vm1 }
 0x6ad   : > { %6282 = vmatmul.mubr.msk.f32.vlgmr.msra.gmra.mrb[12].mxu1 %vm8606_vm11, %v6703_v23  ;;  %v4309_v11 = vpop.permute.xlu0 %4308  ;;  %v6706_v23 = vld [vmem:[%s8287_s7] sm:$0xf]  ;;  %vm8625_vm11 = vmmov %vm8623_vm0 }
 0x6ae   : > { %6284 = vmatpush1.msk.msra.mxu1 %vm8607_vm12, %v4138_v33  ;;  %4210 = vmatprep.mubr.f32.mxu1 %v8514_v22  ;;  %vm8626_vm12 = vmmov %vm8613_vm2 }
 0x6af   : > { %6286 = vmatprep.subr.msk.mxu1 %vm8589_vm4, %v4220_v41  ;;  %vm8628_vm4 = vmmov %vm8623_vm0  ;;  %v6708_v41 = vld [vmem:[%s8287_s7 + $0x8] sm:$0xf] }
 0x6b5   : > { %6285 = vmatmul.mubr.msk.f32.vlgmr.msra.gmra.mrb[12].mxu1 %vm8613_vm2, %v6704_v7  ;;  %vm8631_vm2 = vmmov %vm8623_vm0  ;;  %v6711_v7 = vld [vmem:[%s8287_s7 + $0x18] sm:$0xf] }
 0x6b6   : > { %6287 = vmatpush1.msk.msra.mxu1 %vm8614_vm1, %v4219_v20  ;;  %4291 = vmatprep.mubr.f32.mxu1 %v8514_v22  ;;  %vm8632_vm1 = vmmov %vm8615_vm3  ;;  %v6710_v20 = vld [vmem:[%s8287_s7 + $0x14] sm:$0xf] }
 0x6bd   : > { %6288 = vmatmul.mubr.msk.f32.vlgmr.msra.gmra.mrb[12].mxu1 %vm8615_vm3, %v6705_v62  ;;  %vm8633_vm3 = vmmov %vm8623_vm0  ;;  %v6712_v62 = vld [vmem:[%s8287_s7 + $0x1c] sm:$0xf] }
 0x6be   : > { %5201 = vmatprep.mubr.f32.mxu1 %v8514_v22 }
 0x717   : > { %v3435_v34 = vpop.f32.mrb[10].mxu1 }
 0x718   : > { %v3440_v17 = vmul.f32 %v8616_v63, %v3435_v34  ;;  %v3437_v57 = vpop.f32.mrb[11].mxu1 }
 0x719   : > { %v3441_v30 = vmul.f32 %v8617_v19, %v3437_v57 }
 0x71a   : > { %v3442_v50 = vsel %vm8618_vm7, %v3440_v17, 0.0  ;;  %vm8634_vm7 = vmmov %vm8623_vm0  ;;  %v8643_v17 = vld [vmem:[#allocation18_spill] sm:$0xff] }
 0x71b   : > { %v3443_v39 = vrot.slane %v3442_v50, 4  ;;  %v3449_v52 = vsel %vm8619_vm6, %v3441_v30, 0.0  ;;  %vm8635_vm6 = vmmov %vm8632_vm1 }
 0x71c   : > { %v3450_v40 = vrot.slane %v3449_v52, 4 }
 0x71d   : > { %v3444_v35 = vadd.f32 %v3443_v39, %v3442_v50 }
 0x71e   : > { %v3451_v42 = vadd.f32 %v3450_v40, %v3449_v52 }
 0x71f   : > { %v3445_v27 = vrot.slane %v3444_v35, 2 }
 0x720   : > { %v3452_v26 = vrot.slane %v3451_v42, 2 }
 0x721   : > { %v3446_v44 = vadd.f32 %v3445_v27, %v3444_v35  ;;  %v8644_v35 = vld [vmem:[#allocation19_spill] sm:$0xff] }
 0x722   : > { %v3453_v18 = vadd.f32 %v3452_v26, %v3451_v42 }
 0x723   : > { %v3447_v2 = vrot.slane %v3446_v44, 1 }
 0x724   : > { %v3454_v37 = vrot.slane %v3453_v18, 1 }
 0x725   : > { %v3448_v36 = vadd.f32 %v3447_v2, %v3446_v44 }
 0x726   : > { %v3455_v43 = vadd.f32 %v3454_v37, %v3453_v18 }
 0x727   : > { %v3456_v53 = vsub.f32 %v3435_v34, %v3448_v36  ;;  %v6713_v34 = vld [vmem:[%s8287_s7 + $0x20] sm:$0xf] }
 0x728   : > { %v3457_v55 = vsub.f32 %v3437_v57, %v3455_v43  ;;  %v8645_v43 = vld [vmem:[#allocation20_spill] sm:$0xff] }
 0x72a   : > { %v3460_v12 = vcombine.low %v3456_v53, %v3457_v55 }
 0x72c   : > { %3462 = vst [vmem:[%s7960_s15] sm:$0x77] %v3460_v12 }
 0x790   : > { %v4293_v47 = vpop.f32.mrb[12].mxu1 }
 0x791   : > { %v4311_v46 = vmul.f32 %v4309_v11, %v4293_v47  ;;  %v4295_v59 = vpop.f32.mrb[13].mxu1 }
 0x792   : > { %v4312_v45 = vmul.f32 %v4309_v11, %v4295_v59 }
 0x793   : > { %v4313_v60 = vsub.f32 0.0, %v4311_v46 }
 0x794   : > { %v4314_v49 = vsub.f32 0.0, %v4312_v45 }
 0x795   : > { %v4315_v8 = vmul.f32 1.442695, %v4313_v60  ;;  %v8646_v60 = vld [vmem:[#allocation21_spill] sm:$0xff] }
 0x796   : > { %v4317_v4 = vmul.f32 1.442695, %v4314_v49 }
 0x797   : > { %6553 = vpow2.f32 %v4315_v8 }
 0x798   : > { %6555 = vpow2.f32 %v4317_v4 }
 0x7a1   : > { %v6554_v9 = vpop.eup %6553 }
 0x7a2   : > { %v6556_v48 = vpop.eup %6555  ;;  %v4319_v3 = vadd.f32 1.0, %v6554_v9 }
 0x7a3   : > { %v4320_v16 = vadd.f32 1.0, %v6556_v48 }
 0x7a4   : > { %6557 = vrcp.f32 %v4319_v3 }
 0x7a5   : > { %6559 = vrcp.f32 %v4320_v16 }
 0x7ae   : > { %v6558_v58 = vpop.eup %6557 }
 0x7af   : > { %v6560_v0 = vpop.eup %6559  ;;  %v4325_v33 = vmul.f32 %v6558_v58, %v4311_v46 }
 0x7b0   : > { %v4326_v29 = vmul.f32 %v6560_v0, %v4312_v45 }
 0x7b2   : > { %6291 = vmatprep.subr.msk.mxu0 %vm8620_vm15, %v4326_v29  ;;  %vm8636_vm15 = vmmov %vm8623_vm0 }
 0x7b3   : > { %6292 = vmatpush1.msk.msra.mxu0 %vm8621_vm10, %v4325_v33  ;;  %vm8637_vm10 = vmmov %vm8623_vm0 }
 0x7b4   : > { %6293 = vmatmul.mubr.msk.f32.vlgmr.msra.gmra.mrb[28].mxu0 %vm8622_vm8, %v6706_v23  ;;  %6295 = vmatprep.subr.msk.mxu0 %vm8623_vm0, %v4326_v29  ;;  %vm8638_vm8 = vmmov %vm8632_vm1 }
 0x7b5   : > { %6296 = vmatpush1.msk.msra.mxu0 %vm8624_vm14, %v4325_v33  ;;  %4495 = vmatprep.mubr.f32.mxu0 %v8514_v22  ;;  %vm8639_vm14 = vmmov %vm8623_vm0 }
 0x7b6   : > { %6299 = vmatprep.subr.msk.mxu0 %vm8625_vm11, %v4326_v29  ;;  %vm8640_vm11 = vmmov %vm8632_vm1 }
 0x7b8   : > { %6297 = vmatmul.mubr.msk.f32.vlgmr.msra.gmra.mrb[30].mxu0 %vm8626_vm12, %v6707_v31  ;;  %vm8641_vm12 = vmmov %vm8623_vm0 }
 0x7b9   : > { %6300 = vmatpush1.msk.msra.mxu0 %vm8627_vm9, %v4325_v33  ;;  %4593 = vmatprep.mubr.f32.mxu0 %v8514_v22  ;;  %vm8642_vm9 = vmmov %vm8632_vm1 }
 0x7ba   : > { %6303 = vmatprep.subr.msk.mxu0 %vm8628_vm4, %v4326_v29  ;;  %vm8651_vm4 = vmmov %vm8623_vm0 }
 0x7bc   : > { %6301 = vmatmul.mubr.msk.f32.vlgmr.msra.gmra.mrb[32].mxu0 %vm8629_vm5, %v6708_v41  ;;  %vm8652_vm5 = vmmov %vm8623_vm0 }
 0x7bd   : > { %6304 = vmatpush1.msk.msra.mxu0 %vm8630_vm13, %v4325_v33  ;;  %4691 = vmatprep.mubr.f32.mxu0 %v8514_v22  ;;  %vm8653_vm13 = vmmov %vm8623_vm0 }
 0x7be   : > { %6307 = vmatprep.subr.msk.mxu0 %vm8631_vm2, %v4326_v29  ;;  %vm8654_vm2 = vmmov %vm8623_vm0 }
 0x7c0   : > { %6305 = vmatmul.mubr.msk.f32.vlgmr.msra.gmra.mrb[34].mxu0 %vm8632_vm1, %v6709_v21 }
 0x7c1   : > { %6308 = vmatpush1.msk.msra.mxu0 %vm8633_vm3, %v4325_v33  ;;  %4789 = vmatprep.mubr.f32.mxu0 %v8514_v22  ;;  %vm8655_vm3 = vmmov %vm8632_vm1 }
 0x7c2   : > { %6311 = vmatprep.subr.msk.mxu0 %vm8634_vm7, %v4326_v29  ;;  %vm8656_vm7 = vmmov %vm8623_vm0 }
 0x7c4   : > { %6309 = vmatmul.mubr.msk.f32.vlgmr.msra.gmra.mrb[36].mxu0 %vm8635_vm6, %v6710_v20  ;;  %vm8657_vm6 = vmmov %vm8623_vm0 }
 0x7c5   : > { %6312 = vmatpush1.msk.msra.mxu0 %vm8636_vm15, %v4325_v33  ;;  %4887 = vmatprep.mubr.f32.mxu0 %v8514_v22  ;;  %vm8658_vm15 = vmmov %vm8623_vm0 }
 0x7c6   : > { %6315 = vmatprep.subr.msk.mxu0 %vm8637_vm10, %v4326_v29  ;;  %vm8659_vm10 = vmmov %vm8623_vm0 }
 0x7c8   : > { %6313 = vmatmul.mubr.msk.f32.vlgmr.msra.gmra.mrb[38].mxu0 %vm8638_vm8, %v6711_v7  ;;  %vm8660_vm8 = vmmov %vm8623_vm0 }
 0x7c9   : > { %6316 = vmatpush1.msk.msra.mxu0 %vm8623_vm0, %v4325_v33  ;;  %4985 = vmatprep.mubr.f32.mxu0 %v8514_v22 }
 0x7ca   : > { %6319 = vmatprep.subr.msk.mxu0 %vm8639_vm14, %v4326_v29  ;;  %v8647_v29 = vld [vmem:[#allocation22_spill] sm:$0xff]  ;;  %vm8661_vm14 = vmmov %vm8632_vm1 }
 0x7cc   : > { %6317 = vmatmul.mubr.msk.f32.vlgmr.msra.gmra.mrb[40].mxu0 %vm8640_vm11, %v6712_v62  ;;  %vm8662_vm11 = vmmov %vm8632_vm1 }
 0x7cd   : > { %6320 = vmatpush1.msk.msra.mxu0 %vm8641_vm12, %v4325_v33  ;;  %5083 = vmatprep.mubr.f32.mxu0 %v8514_v22  ;;  %vm8663_vm12 = vmmov %vm8623_vm0 }
 0x7d0   : > { %6321 = vmatmul.mubr.msk.f32.vlgmr.msra.gmra.mrb[42].mxu0 %vm8642_vm9, %v6713_v34  ;;  %vm8664_vm9 = vmmov %vm8623_vm0 }
 0x7d1   : > { %5299 = vmatprep.mubr.f32.mxu0 %v8514_v22 }
 0x887   : > { %v4399_v63 = vpop.f32.mrb[28].mxu0 }
 0x888   : > { %v8020_v57 = vadd.f32 %v4399_v63, %v8643_v17  ;;  %v4401_v19 = vpop.f32.mrb[29].mxu0 }
 0x889   : > { %v8023_v30 = vadd.f32 %v4401_v19, %v8643_v17 }
 0x88a   : > { %v4404_v50 = vsub.f32 0.0, %v8020_v57 }
 0x88b   : > { %v4405_v39 = vsub.f32 0.0, %v8023_v30  ;;  %v4497_v52 = vpop.f32.mrb[30].mxu0 }
 0x88c   : > { %v4406_v40 = vmul.f32 1.442695, %v4404_v50  ;;  %v8028_v42 = vadd.f32 %v4497_v52, %v8644_v35  ;;  %v4499_v27 = vpop.f32.mrb[31].mxu0  ;;  %v8648_v50 = vld [vmem:[#allocation23_spill] sm:$0xff] }
 0x88d   : > { %v4408_v26 = vmul.f32 1.442695, %v4405_v39  ;;  %v8031_v44 = vadd.f32 %v4499_v27, %v8644_v35 }
 0x88e   : > { %6561 = vpow2.f32 %v4406_v40  ;;  %v4502_v18 = vsub.f32 0.0, %v8028_v42 }
 0x88f   : > { %6563 = vpow2.f32 %v4408_v26  ;;  %v4503_v2 = vsub.f32 0.0, %v8031_v44  ;;  %v4595_v37 = vpop.f32.mrb[32].mxu0 }
 0x890   : > { %v4504_v36 = vmul.f32 1.442695, %v4502_v18  ;;  %v8036_v53 = vadd.f32 %v4595_v37, %v8645_v43  ;;  %v4597_v55 = vpop.f32.mrb[33].mxu0 }
 0x891   : > { %v4506_v12 = vmul.f32 1.442695, %v4503_v2  ;;  %v8039_v11 = vadd.f32 %v4597_v55, %v8645_v43 }
 0x892   : > { %6565 = vpow2.f32 %v4504_v36  ;;  %v4600_v47 = vsub.f32 0.0, %v8036_v53 }
 0x893   : > { %6567 = vpow2.f32 %v4506_v12  ;;  %v4601_v46 = vsub.f32 0.0, %v8039_v11  ;;  %v4693_v59 = vpop.f32.mrb[34].mxu0  ;;  %v8649_v12 = vld [vmem:[#allocation24_spill] sm:$0xff] }
 0x894   : > { %v4602_v45 = vmul.f32 1.442695, %v4600_v47  ;;  %v8044_v49 = vadd.f32 %v4693_v59, %v8646_v60  ;;  %v4695_v8 = vpop.f32.mrb[35].mxu0 }
 0x895   : > { %v4604_v4 = vmul.f32 1.442695, %v4601_v46  ;;  %v8047_v9 = vadd.f32 %v4695_v8, %v8646_v60 }
 0x896   : > { %6569 = vpow2.f32 %v4602_v45  ;;  %v4698_v48 = vsub.f32 0.0, %v8044_v49 }
 0x897   : > { %6571 = vpow2.f32 %v4604_v4  ;;  %v4699_v3 = vsub.f32 0.0, %v8047_v9  ;;  %v4791_v16 = vpop.f32.mrb[36].mxu0 }
 0x898   : > { %v6562_v58 = vpop.eup %6561  ;;  %v4700_v0 = vmul.f32 1.442695, %v4698_v48  ;;  %v8052_v33 = vadd.f32 %v4791_v16, %v8647_v29  ;;  %v4793_v23 = vpop.f32.mrb[37].mxu0 }
 0x899   : > { %v6564_v31 = vpop.eup %6563  ;;  %v4410_v41 = vadd.f32 1.0, %v6562_v58  ;;  %v4702_v21 = vmul.f32 1.442695, %v4699_v3  ;;  %v8055_v20 = vadd.f32 %v4793_v23, %v8647_v29  ;;  %v8650_v29 = vld [vmem:[#allocation25_spill] sm:$0xff] }
 0x89a   : > { %v4411_v7 = vadd.f32 1.0, %v6564_v31  ;;  %6573 = vpow2.f32 %v4700_v0  ;;  %v4796_v62 = vsub.f32 0.0, %v8052_v33 }
 0x89b   : > { %6575 = vrcp.f32 %v4410_v41  ;;  %v4797_v34 = vsub.f32 0.0, %v8055_v20  ;;  %v4889_v63 = vpop.f32.mrb[38].mxu0 }
 0x89c   : > { %v6566_v17 = vpop.eup %6565  ;;  %6577 = vrcp.f32 %v4411_v7  ;;  %v4798_v19 = vmul.f32 1.442695, %v4796_v62  ;;  %v8060_v39 = vadd.f32 %v4889_v63, %v8648_v50  ;;  %v4891_v52 = vpop.f32.mrb[39].mxu0 }
 0x89d   : > { %v6568_v40 = vpop.eup %6567  ;;  %v4508_v35 = vadd.f32 1.0, %v6566_v17  ;;  %6579 = vpow2.f32 %v4702_v21  ;;  %v4800_v27 = vmul.f32 1.442695, %v4797_v34  ;;  %v8063_v26 = vadd.f32 %v4891_v52, %v8648_v50 }
 0x89e   : > { %v4509_v18 = vadd.f32 1.0, %v6568_v40  ;;  %6581 = vpow2.f32 %v4798_v19  ;;  %v4894_v2 = vsub.f32 0.0, %v8060_v39 }
 0x89f   : > { %6583 = vrcp.f32 %v4508_v35  ;;  %v4895_v37 = vsub.f32 0.0, %v8063_v26  ;;  %v4987_v36 = vpop.f32.mrb[40].mxu0 }
 0x8a0   : > { %v6570_v43 = vpop.eup %6569  ;;  %6585 = vrcp.f32 %v4509_v18  ;;  %v4896_v55 = vmul.f32 1.442695, %v4894_v2  ;;  %v8068_v47 = vadd.f32 %v4987_v36, %v8649_v12  ;;  %v4989_v46 = vpop.f32.mrb[41].mxu0 }
 0x8a1   : > { %v6572_v59 = vpop.eup %6571  ;;  %v4606_v45 = vadd.f32 1.0, %v6570_v43  ;;  %6587 = vpow2.f32 %v4800_v27  ;;  %v4898_v60 = vmul.f32 1.442695, %v4895_v37  ;;  %v8071_v8 = vadd.f32 %v4989_v46, %v8649_v12  ;;  %v4423_v2 = vpop.permute.xlu1 %4422 }
 0x8a2   : > { %v4607_v4 = vadd.f32 1.0, %v6572_v59  ;;  %6589 = vpow2.f32 %v4896_v55  ;;  %v4992_v48 = vsub.f32 0.0, %v8068_v47  ;;  %v4521_v46 = vpop.permute.xlu0 %4520 }
 0x8a3   : > { %6591 = vrcp.f32 %v4606_v45  ;;  %v4993_v3 = vsub.f32 0.0, %v8071_v8  ;;  %v5085_v16 = vpop.f32.mrb[42].mxu0 }
 0x8a4   : > { %v6574_v58 = vpop.eup %6573  ;;  %6593 = vrcp.f32 %v4607_v4  ;;  %v4994_v0 = vmul.f32 1.442695, %v4992_v48  ;;  %v8076_v23 = vadd.f32 %v5085_v16, %v8650_v29  ;;  %v5087_v31 = vpop.f32.mrb[43].mxu0 }
 0x8a5   : > { %v6576_v41 = vpop.eup %6575  ;;  %v4704_v21 = vadd.f32 1.0, %v6574_v58  ;;  %6595 = vpow2.f32 %v4898_v60  ;;  %v4996_v7 = vmul.f32 1.442695, %v4993_v3  ;;  %v8079_v62 = vadd.f32 %v5087_v31, %v8650_v29 }
 0x8a6   : > { %v6578_v34 = vpop.eup %6577  ;;  %v4416_v63 = vmul.f32 %v6576_v41, %v8020_v57  ;;  %6597 = vpow2.f32 %v4994_v0  ;;  %v5090_v17 = vsub.f32 0.0, %v8076_v23  ;;  %v4619_v41 = vpop.permute.xlu1 %4618 }
 0x8a7   : > { %v6580_v19 = vpop.eup %6579  ;;  %v4417_v50 = vmul.f32 %v6578_v34, %v8023_v30  ;;  %6599 = vrcp.f32 %v4704_v21  ;;  %v5091_v52 = vsub.f32 0.0, %v8079_v62 }
 0x8a8   : > { %v6582_v40 = vpop.eup %6581  ;;  %v4705_v35 = vadd.f32 1.0, %v6580_v19  ;;  %6601 = vpow2.f32 %v4996_v7  ;;  %v5092_v27 = vmul.f32 1.442695, %v5090_v17  ;;  %v4425_v55 = vadd.f32 %v4423_v2, %v4416_v63 }
 0x8a9   : > { %v6584_v18 = vpop.eup %6583  ;;  %v4802_v37 = vadd.f32 1.0, %v6582_v40  ;;  %v5094_v36 = vmul.f32 1.442695, %v5091_v52  ;;  %v4426_v59 = vadd.f32 %v4423_v2, %v4417_v50  ;;  %v4717_v2 = vpop.permute.xlu0 %4716 }
 0x8aa   : > { %v6586_v43 = vpop.eup %6585  ;;  %v4514_v57 = vmul.f32 %v6584_v18, %v8028_v42  ;;  %6603 = vrcp.f32 %v4705_v35  ;;  %v4427_v0 = vmul.f32 %v4425_v55, %v7835_v51 }
 0x8ab   : > { %v6588_v12 = vpop.eup %6587  ;;  %v4515_v30 = vmul.f32 %v6586_v43, %v8031_v44  ;;  %6605 = vrcp.f32 %v4802_v37  ;;  %v4428_v44 = vmul.f32 %v4426_v59, %v7832_v28 }
 0x8ac   : > { %v6590_v45 = vpop.eup %6589  ;;  %v4523_v60 = vadd.f32 %v4521_v46, %v4514_v57  ;;  %v4803_v4 = vadd.f32 1.0, %v6588_v12  ;;  %6607 = vpow2.f32 %v5092_v27 }
 0x8ad   : > { %v6592_v48 = vpop.eup %6591  ;;  %v4524_v3 = vadd.f32 %v4521_v46, %v4515_v30  ;;  %v4900_v16 = vadd.f32 1.0, %v6590_v45  ;;  %6609 = vpow2.f32 %v5094_v36 }
 0x8ae   : > { %v6594_v58 = vpop.eup %6593  ;;  %v4525_v42 = vmul.f32 %v4523_v60, %v7804_v14  ;;  %v4612_v29 = vmul.f32 %v6592_v48, %v8036_v53  ;;  %6611 = vrcp.f32 %v4803_v4  ;;  %v4815_v60 = vpop.permute.xlu1 %4814 }
 0x8af   : > { %v6596_v31 = vpop.eup %6595  ;;  %v4526_v21 = vmul.f32 %v4524_v3, %v7800_v13  ;;  %v4613_v7 = vmul.f32 %v6594_v58, %v8039_v11  ;;  %6613 = vrcp.f32 %v4900_v16 }
 0x8b0   : > { %v6598_v34 = vpop.eup %6597  ;;  %v4527_v63 = vadd.f32 %v4525_v42, %v4427_v0  ;;  %v4621_v17 = vadd.f32 %v4619_v41, %v4612_v29  ;;  %v4901_v19 = vadd.f32 1.0, %v6596_v31 }
 0x8b1   : > { %v6600_v50 = vpop.eup %6599  ;;  %v4528_v52 = vadd.f32 %v4526_v21, %v4428_v44  ;;  %v4622_v40 = vadd.f32 %v4619_v41, %v4613_v7  ;;  %v4998_v35 = vadd.f32 1.0, %v6598_v34 }
 0x8b2   : > { %v6602_v27 = vpop.eup %6601  ;;  %v4623_v53 = vmul.f32 %v4621_v17, %v7854_v6  ;;  %v4710_v18 = vmul.f32 %v6600_v50, %v8044_v49  ;;  %6615 = vrcp.f32 %v4901_v19 }
 0x8b3   : > { %v4624_v37 = vmul.f32 %v4622_v40, %v7851_v25  ;;  %6617 = vrcp.f32 %v4998_v35  ;;  %v4999_v11 = vadd.f32 1.0, %v6602_v27  ;;  %v5011_v35 = vpop.permute.xlu1 %5010 }
 0x8b4   : > { %v6604_v36 = vpop.eup %6603  ;;  %v4625_v43 = vadd.f32 %v4623_v53, %v4527_v63  ;;  %v4719_v55 = vadd.f32 %v4717_v2, %v4710_v18 }
 0x8b5   : > { %v6606_v57 = vpop.eup %6605  ;;  %v4626_v12 = vadd.f32 %v4624_v37, %v4528_v52  ;;  %v4711_v46 = vmul.f32 %v6604_v36, %v8047_v9  ;;  %6619 = vrcp.f32 %v4999_v11 }
 0x8b6   : > { %v6608_v59 = vpop.eup %6607  ;;  %v4721_v30 = vmul.f32 %v4719_v55, %v7718_v1  ;;  %v4808_v45 = vmul.f32 %v6606_v57, %v8052_v33  ;;  %v4913_v33 = vpop.permute.xlu0 %4912 }
 0x8b7   : > { %v6610_v49 = vpop.eup %6609  ;;  %v4720_v4 = vadd.f32 %v4717_v2, %v4711_v46  ;;  %v5096_v48 = vadd.f32 1.0, %v6608_v59 }
 0x8b8   : > { %v6612_v3 = vpop.eup %6611  ;;  %v4723_v16 = vadd.f32 %v4721_v30, %v4625_v43  ;;  %v4817_v58 = vadd.f32 %v4815_v60, %v4808_v45  ;;  %v5097_v0 = vadd.f32 1.0, %v6610_v49 }
 0x8b9   : > { %v6614_v42 = vpop.eup %6613  ;;  %v4722_v29 = vmul.f32 %v4720_v4, %v7722_v15  ;;  %v4809_v31 = vmul.f32 %v6612_v3, %v8055_v20  ;;  %6621 = vrcp.f32 %v5096_v48 }
 0x8ba   : > { %v4819_v9 = vmul.f32 %v4817_v58, %v7734_v5  ;;  %v4906_v41 = vmul.f32 %v6614_v42, %v8060_v39  ;;  %6623 = vrcp.f32 %v5097_v0  ;;  %v5109_v46 = vpop.permute.xlu0 %5108 }
 0x8bb   : > { %v4724_v44 = vadd.f32 %v4722_v29, %v4626_v12  ;;  %v4818_v21 = vadd.f32 %v4815_v60, %v4809_v31 }
 0x8bc   : > { %v6616_v7 = vpop.eup %6615  ;;  %v4821_v34 = vadd.f32 %v4819_v9, %v4723_v16  ;;  %v4915_v63 = vadd.f32 %v4913_v33, %v4906_v41 }
 0x8bd   : > { %v6618_v17 = vpop.eup %6617  ;;  %v4820_v19 = vmul.f32 %v4818_v21, %v7738_v10  ;;  %v4907_v50 = vmul.f32 %v6616_v7, %v8063_v26  ;;  %v6715_v21 = vld [vmem:[%s8290_s10 + $0x4] sm:$0xf]  ;;  %v6716_v7 = vld [vmem:[%s8290_s10 + $0x8] sm:$0xf] }
 0x8be   : > { %v4917_v52 = vmul.f32 %v4915_v63, %v7898_v24  ;;  %v5004_v20 = vmul.f32 %v6618_v17, %v8068_v47  ;;  %v6718_v63 = vld [vmem:[%s8290_s10 + $0x14] sm:$0xf]  ;;  %v6719_v17 = vld [vmem:[%s8290_s10 + $0x18] sm:$0xf] }
 0x8bf   : > { %v6620_v40 = vpop.eup %6619  ;;  %v4822_v27 = vadd.f32 %v4820_v19, %v4724_v44  ;;  %v4916_v39 = vadd.f32 %v4913_v33, %v4907_v50  ;;  %v6714_v44 = vld [vmem:[%s8290_s10] sm:$0xf]  ;;  %v6720_v19 = vld [vmem:[%s8290_s10 + $0x1c] sm:$0xf] }
 0x8c0   : > { %v4919_v53 = vadd.f32 %v4917_v52, %v4821_v34  ;;  %v5013_v18 = vadd.f32 %v5011_v35, %v5004_v20  ;;  %v5005_v2 = vmul.f32 %v6620_v40, %v8071_v8  ;;  %v6717_v34 = vld [vmem:[%s8290_s10 + $0xc] sm:$0xf]  ;;  %v6721_v50 = vld [vmem:[%s8290_s10 + $0x20] sm:$0xf]  ;;  %v8673_v40 = vld [vmem:[#allocation28_spill] sm:$0xff] }
 0x8c1   : > { %v4918_v37 = vmul.f32 %v4916_v39, %v7882_v61 }
 0x8c2   : > { %v5015_v11 = vmul.f32 %v5013_v18, %v7917_v32  ;;  %v5014_v36 = vadd.f32 %v5011_v35, %v5005_v2 }
 0x8c3   : > { %v6622_v43 = vpop.eup %6621  ;;  %v4920_v55 = vadd.f32 %v4918_v37, %v4822_v27  ;;  %v8674_v27 = vld [vmem:[#allocation29_spill] sm:$0xff] }
 0x8c4   : > { %v6624_v26 = vpop.eup %6623  ;;  %v5017_v57 = vadd.f32 %v5015_v11, %v4919_v53  ;;  %v5016_v12 = vmul.f32 %v5014_v36, %v7901_v54  ;;  %v5102_v47 = vmul.f32 %v6622_v43, %v8076_v23 }
 0x8c5   : > { %v5103_v59 = vmul.f32 %v6624_v26, %v8079_v62 }
 0x8c6   : > { %v5018_v30 = vadd.f32 %v5016_v12, %v4920_v55  ;;  %v5111_v45 = vadd.f32 %v5109_v46, %v5102_v47 }
 0x8c7   : > { %v5112_v49 = vadd.f32 %v5109_v46, %v5103_v59  ;;  %v8675_v59 = vld [vmem:[#allocation30_spill] sm:$0xff] }
 0x8c8   : > { %v5113_v8 = vmul.f32 %v5111_v45, %v7936_v38  ;;  %v8676_v45 = vld [vmem:[#allocation31_spill] sm:$0xff] }
 0x8c9   : > { %v5114_v60 = vmul.f32 %v5112_v49, %v7920_v56 }
 0x8ca   : > { %v5115_v4 = vadd.f32 %v5113_v8, %v5017_v57 }
 0x8cb   : > { %v5116_v48 = vadd.f32 %v5114_v60, %v5018_v30 }
 0x8cc   : > { %v5117_v3 = vsub.f32 0.0, %v5115_v4 }
 0x8cd   : > { %v5118_v16 = vsub.f32 0.0, %v5116_v48 }
 0x8ce   : > { %v5119_v58 = vmul.f32 1.442695, %v5117_v3 }
 0x8cf   : > { %v5121_v0 = vmul.f32 1.442695, %v5118_v16 }
 0x8d0   : > { %6625 = vpow2.f32 %v5119_v58 }
 0x8d1   : > { %6627 = vpow2.f32 %v5121_v0 }
 0x8da   : > { %v6626_v42 = vpop.eup %6625 }
 0x8db   : > { %v6628_v23 = vpop.eup %6627  ;;  %v5123_v29 = vadd.f32 1.0, %v6626_v42 }
 0x8dc   : > { %v5124_v31 = vadd.f32 1.0, %v6628_v23 }
 0x8dd   : > { %6629 = vrcp.f32 %v5123_v29 }
 0x8de   : > { %6631 = vrcp.f32 %v5124_v31 }
 0x8e7   : > { %v6630_v62 = vpop.eup %6629 }
 0x8e8   : > { %v6632_v9 = vpop.eup %6631  ;;  %v5129_v33 = vmul.f32 %v6630_v62, %v5115_v4  ;;  %v8677_v62 = vld [vmem:[#allocation32_spill] sm:$0xff] }
 0x8e9   : > { %v5130_v41 = vmul.f32 %v6632_v9, %v5116_v48 }
 0x8eb   : > { %6323 = vmatprep.subr.msk.mxu1 %vm8651_vm4, %v5130_v41  ;;  %6327 = vmatprep.subr.msk.mxu0 %vm8652_vm5, %v5130_v41  ;;  %vm8665_vm4 = vmmov %vm8623_vm0 }
 0x8ec   : > { %6324 = vmatpush1.msk.msra.mxu1 %vm8653_vm13, %v5129_v33  ;;  %6328 = vmatpush1.msk.msra.mxu0 %vm8654_vm2, %v5129_v33  ;;  %vm8666_vm5 = vmmov %vm8623_vm0 }
 0x8ed   : > { %6325 = vmatmul.mubr.msk.f32.vlgmr.msra.gmra.mrb[14].mxu1 %vm8632_vm1, %v6714_v44  ;;  %6329 = vmatmul.mubr.msk.f32.vlgmr.msra.gmra.mrb[44].mxu0 %vm8655_vm3, %v6715_v21  ;;  %vm8667_vm13 = vmmov %vm8632_vm1 }
 0x8ee   : > { %6331 = vmatprep.subr.msk.mxu1 %vm8656_vm7, %v5130_v41  ;;  %6335 = vmatprep.subr.msk.mxu0 %vm8657_vm6, %v5130_v41  ;;  %vm8668_vm2 = vmmov %vm8632_vm1 }
 0x8ef   : > { %6332 = vmatpush1.msk.msra.mxu1 %vm8658_vm15, %v5129_v33  ;;  %6336 = vmatpush1.msk.msra.mxu0 %vm8659_vm10, %v5129_v33  ;;  %vm8669_vm1 = vmmov %vm8623_vm0 }
 0x8f0   : > { %6339 = vmatprep.subr.msk.mxu1 %vm8660_vm8, %v5130_v41  ;;  %6343 = vmatprep.subr.msk.mxu0 %vm8623_vm0, %v5130_v41  ;;  %vm8670_vm3 = vmmov %vm8623_vm0 }
 0x8f1   : > { %5397 = vmatprep.mubr.f32.mxu1 %v8514_v22  ;;  %5495 = vmatprep.mubr.f32.mxu0 %v8514_v22  ;;  %vm8671_vm7 = vmmov %vm8668_vm2 }
 0x8f2   : > { %6333 = vmatmul.mubr.msk.f32.vlgmr.msra.gmra.mrb[16].mxu1 %vm8661_vm14, %v6716_v7  ;;  %6337 = vmatmul.mubr.msk.f32.vlgmr.msra.gmra.mrb[46].mxu0 %vm8662_vm11, %v6717_v34  ;;  %vm8672_vm6 = vmmov %vm8668_vm2  ;;  %v8678_v7 = vld [vmem:[#allocation33_spill] sm:$0xff] }
 0x8f3   : > { %6340 = vmatpush1.msk.msra.mxu1 %vm8663_vm12, %v5129_v33  ;;  %6344 = vmatpush1.msk.msra.mxu0 %vm8664_vm9, %v5129_v33  ;;  %vm8681_vm15 = vmmov %vm8623_vm0 }
 0x8f4   : > { %6347 = vmatprep.subr.msk.mxu1 %vm8665_vm4, %v5130_v41  ;;  %6351 = vmatprep.subr.msk.mxu0 %vm8666_vm5, %v5130_v41  ;;  %vm8682_vm10 = vmmov %vm8623_vm0  ;;  %vm8686_vm0 = vcmask 1042432  }
 0x8f5   : > { %5593 = vmatprep.mubr.f32.mxu1 %v8514_v22  ;;  %5691 = vmatprep.mubr.f32.mxu0 %v8514_v22  ;;  %vm8683_vm8 = vmmov %vm8668_vm2 }
 0x8f6   : > { %6341 = vmatmul.mubr.msk.f32.vlgmr.msra.gmra.mrb[18].mxu1 %vm8667_vm13, %v6718_v63  ;;  %6345 = vmatmul.mubr.msk.f32.vlgmr.msra.gmra.mrb[48].mxu0 %vm8668_vm2, %v6719_v17  ;;  %vm8687_vm14 = vmmov %vm8686_vm0 }
 0x8f7   : > { %6348 = vmatpush1.msk.msra.mxu1 %vm8669_vm1, %v5129_v33  ;;  %6352 = vmatpush1.msk.msra.mxu0 %vm8670_vm3, %v5129_v33 }
 0x8f8   : > { %5789 = vmatprep.mubr.f32.mxu1 %v8514_v22  ;;  %5887 = vmatprep.mubr.f32.mxu0 %v8514_v22 }
 0x8fa   : > { %6349 = vmatmul.mubr.msk.f32.vlgmr.msra.gmra.mrb[20].mxu1 %vm8671_vm7, %v6720_v19  ;;  %6353 = vmatmul.mubr.msk.f32.vlgmr.msra.gmra.mrb[50].mxu0 %vm8672_vm6, %v6721_v50 }
 0x8fb   : > { %5991 = vmatprep.mubr.f32.mxu1 %v8514_v22 }
 0x9c0   : > { %v5203_v52 = vpop.f32.mrb[14].mxu1  ;;  %v5301_v20 = vpop.f32.mrb[44].mxu0 }
 0x9c1   : > { %v8171_v35 = vadd.f32 %v5203_v52, %v8673_v40  ;;  %v8174_v39 = vadd.f32 %v5301_v20, %v8674_v27  ;;  %v5205_v53 = vpop.f32.mrb[15].mxu1  ;;  %v5303_v18 = vpop.f32.mrb[45].mxu0 }
 0x9c2   : > { %v8177_v2 = vadd.f32 %v5205_v53, %v8673_v40  ;;  %v8180_v37 = vadd.f32 %v5303_v18, %v8674_v27  ;;  %v8679_v18 = vld [vmem:[#allocation34_spill] sm:$0xff] }
 0x9c3   : > { %v5208_v11 = vsub.f32 0.0, %v8171_v35  ;;  %v5306_v22 = vsub.f32 0.0, %v8174_v39 }
 0x9c4   : > { %v5209_v36 = vsub.f32 0.0, %v8177_v2  ;;  %v5307_v43 = vsub.f32 0.0, %v8180_v37 }
 0x9c5   : > { %v5210_v55 = vmul.f32 1.442695, %v5208_v11  ;;  %v5308_v26 = vmul.f32 1.442695, %v5306_v22  ;;  %v5399_v57 = vpop.f32.mrb[16].mxu1  ;;  %v5497_v12 = vpop.f32.mrb[46].mxu0 }
 0x9c6   : > { %v5212_v47 = vmul.f32 1.442695, %v5209_v36  ;;  %v5310_v46 = vmul.f32 1.442695, %v5307_v43  ;;  %v8187_v30 = vadd.f32 %v5399_v57, %v8675_v59  ;;  %v8190_v49 = vadd.f32 %v5497_v12, %v8676_v45  ;;  %v5401_v8 = vpop.f32.mrb[17].mxu1  ;;  %v5499_v60 = vpop.f32.mrb[47].mxu0 }
 0x9c7   : > { %6633 = vpow2.f32 %v5210_v55  ;;  %v8193_v4 = vadd.f32 %v5401_v8, %v8675_v59  ;;  %v8196_v48 = vadd.f32 %v5499_v60, %v8676_v45 }
 0x9c8   : > { %6635 = vpow2.f32 %v5308_v26  ;;  %v5404_v3 = vsub.f32 0.0, %v8187_v30  ;;  %v5502_v16 = vsub.f32 0.0, %v8190_v49 }
 0x9c9   : > { %6637 = vpow2.f32 %v5212_v47  ;;  %v5405_v58 = vsub.f32 0.0, %v8193_v4  ;;  %v5503_v0 = vsub.f32 0.0, %v8196_v48  ;;  %v5595_v42 = vpop.f32.mrb[18].mxu1  ;;  %v5693_v23 = vpop.f32.mrb[48].mxu0 }
 0x9ca   : > { %6639 = vpow2.f32 %v5310_v46  ;;  %v5406_v29 = vmul.f32 1.442695, %v5404_v3  ;;  %v5504_v31 = vmul.f32 1.442695, %v5502_v16  ;;  %v8203_v9 = vadd.f32 %v5595_v42, %v8677_v62  ;;  %v5597_v41 = vpop.f32.mrb[19].mxu1  ;;  %v5695_v33 = vpop.f32.mrb[49].mxu0 }
 0x9cb   : > { %v5408_v44 = vmul.f32 1.442695, %v5405_v58  ;;  %v5506_v21 = vmul.f32 1.442695, %v5503_v0  ;;  %v8206_v34 = vadd.f32 %v5693_v23, %v8678_v7  ;;  %v8209_v63 = vadd.f32 %v5597_v41, %v8677_v62  ;;  %v8680_v58 = vld [vmem:[#allocation35_spill] sm:$0xff] }
 0x9cc   : > { %6641 = vpow2.f32 %v5406_v29  ;;  %v5600_v17 = vsub.f32 0.0, %v8203_v9  ;;  %v8213_v19 = vadd.f32 %v5695_v33, %v8678_v7 }
 0x9cd   : > { %6643 = vpow2.f32 %v5504_v31  ;;  %v5698_v50 = vsub.f32 0.0, %v8206_v34  ;;  %v5601_v52 = vsub.f32 0.0, %v8209_v63  ;;  %v5791_v20 = vpop.f32.mrb[20].mxu1  ;;  %v5889_v40 = vpop.f32.mrb[50].mxu0 }
 0x9ce   : > { %6645 = vpow2.f32 %v5408_v44  ;;  %v5602_v27 = vmul.f32 1.442695, %v5600_v17  ;;  %v5699_v53 = vsub.f32 0.0, %v8213_v19  ;;  %v8219_v11 = vadd.f32 %v5791_v20, %v8679_v18  ;;  %v5793_v22 = vpop.f32.mrb[21].mxu1  ;;  %v5891_v36 = vpop.f32.mrb[51].mxu0 }
 0x9cf   : > { %6647 = vpow2.f32 %v5506_v21  ;;  %v5700_v43 = vmul.f32 1.442695, %v5698_v50  ;;  %v5604_v55 = vmul.f32 1.442695, %v5601_v52  ;;  %v8223_v0 = vadd.f32 %v5889_v40, %v8680_v58 }
 0x9d0   : > { %6649 = vpow2.f32 %v5602_v27  ;;  %v5702_v26 = vmul.f32 1.442695, %v5699_v53  ;;  %v5796_v57 = vsub.f32 0.0, %v8219_v11  ;;  %v8226_v23 = vadd.f32 %v5793_v22, %v8679_v18 }
 0x9d1   : > { %v6634_v12 = vpop.eup %6633  ;;  %6651 = vpow2.f32 %v5700_v43  ;;  %v8229_v62 = vadd.f32 %v5891_v36, %v8680_v58  ;;  %v5894_v7 = vsub.f32 0.0, %v8223_v0  ;;  %v5227_v36 = vpop.permute.xlu1 %5226 }
 0x9d2   : > { %v6636_v47 = vpop.eup %6635  ;;  %v5214_v46 = vadd.f32 1.0, %v6634_v12  ;;  %6653 = vpow2.f32 %v5604_v55  ;;  %v5798_v3 = vmul.f32 1.442695, %v5796_v57  ;;  %v5797_v52 = vsub.f32 0.0, %v8226_v23  ;;  %v5325_v57 = vpop.permute.xlu0 %5324 }
 0x9d3   : > { %v6638_v59 = vpop.eup %6637  ;;  %v5312_v45 = vadd.f32 1.0, %v6636_v47  ;;  %6655 = vpow2.f32 %v5702_v26  ;;  %v5895_v27 = vsub.f32 0.0, %v8229_v62  ;;  %v5896_v55 = vmul.f32 1.442695, %v5894_v7 }
 0x9d4   : > { %v6640_v8 = vpop.eup %6639  ;;  %6657 = vrcp.f32 %v5214_v46  ;;  %v5215_v60 = vadd.f32 1.0, %v6638_v59  ;;  %v5800_v47 = vmul.f32 1.442695, %v5797_v52 }
 0x9d5   : > { %6659 = vrcp.f32 %v5312_v45  ;;  %v5313_v16 = vadd.f32 1.0, %v6640_v8  ;;  %v5898_v45 = vmul.f32 1.442695, %v5895_v27 }
 0x9d6   : > { %v6642_v42 = vpop.eup %6641  ;;  %6661 = vrcp.f32 %v5215_v60 }
 0x9d7   : > { %v6644_v29 = vpop.eup %6643  ;;  %6663 = vrcp.f32 %v5313_v16  ;;  %v5410_v31 = vadd.f32 1.0, %v6642_v42 }
 0x9d8   : > { %v6646_v41 = vpop.eup %6645  ;;  %v5508_v33 = vadd.f32 1.0, %v6644_v29  ;;  %6665 = vpow2.f32 %v5798_v3 }
 0x9d9   : > { %v6648_v44 = vpop.eup %6647  ;;  %6667 = vrcp.f32 %v5410_v31  ;;  %v5411_v21 = vadd.f32 1.0, %v6646_v41 }
 0x9da   : > { %v6650_v17 = vpop.eup %6649  ;;  %6669 = vrcp.f32 %v5508_v33  ;;  %v5509_v50 = vadd.f32 1.0, %v6648_v44  ;;  %v5423_v33 = vpop.permute.xlu1 %5422 }
 0x9db   : > { %v6652_v20 = vpop.eup %6651  ;;  %6671 = vrcp.f32 %v5411_v21  ;;  %v5606_v40 = vadd.f32 1.0, %v6650_v17 }
 0x9dc   : > { %v6654_v53 = vpop.eup %6653  ;;  %6673 = vrcp.f32 %v5509_v50  ;;  %v5704_v18 = vadd.f32 1.0, %v6652_v20 }
 0x9dd   : > { %v6656_v22 = vpop.eup %6655  ;;  %6675 = vrcp.f32 %v5606_v40  ;;  %v5607_v43 = vadd.f32 1.0, %v6654_v53 }
 0x9de   : > { %v6658_v26 = vpop.eup %6657  ;;  %6677 = vrcp.f32 %v5704_v18  ;;  %v5705_v12 = vadd.f32 1.0, %v6656_v22 }
 0x9df   : > { %v6660_v46 = vpop.eup %6659  ;;  %v5220_v59 = vmul.f32 %v6658_v26, %v8171_v35  ;;  %6679 = vrcp.f32 %v5607_v43 }
 0x9e0   : > { %v6662_v8 = vpop.eup %6661  ;;  %v5318_v60 = vmul.f32 %v6660_v46, %v8174_v39  ;;  %6681 = vrcp.f32 %v5705_v12  ;;  %v5521_v39 = vpop.permute.xlu0 %5520 }
 0x9e1   : > { %v6664_v3 = vpop.eup %6663  ;;  %v5229_v16 = vadd.f32 %v5227_v36, %v5220_v59  ;;  %v5221_v58 = vmul.f32 %v6662_v8, %v8177_v2  ;;  %6683 = vpow2.f32 %v5896_v55 }
 0x9e2   : > { %v6666_v42 = vpop.eup %6665  ;;  %v5327_v29 = vadd.f32 %v5325_v57, %v5318_v60  ;;  %v5319_v31 = vmul.f32 %v6664_v3, %v8180_v37  ;;  %6685 = vpow2.f32 %v5800_v47 }
 0x9e3   : > { %v6668_v41 = vpop.eup %6667  ;;  %v5231_v35 = vmul.f32 %v5229_v16, %v7835_v51  ;;  %v5230_v44 = vadd.f32 %v5227_v36, %v5221_v58  ;;  %v5802_v21 = vadd.f32 1.0, %v6666_v42  ;;  %6687 = vpow2.f32 %v5898_v45 }
 0x9e4   : > { %v6670_v7 = vpop.eup %6669  ;;  %v5329_v17 = vmul.f32 %v5327_v29, %v7804_v14  ;;  %v5328_v50 = vadd.f32 %v5325_v57, %v5319_v31  ;;  %v5416_v2 = vmul.f32 %v6668_v41, %v8187_v30  ;;  %v5619_v57 = vpop.permute.xlu1 %5618 }
 0x9e5   : > { %v6672_v52 = vpop.eup %6671  ;;  %v5232_v20 = vmul.f32 %v5230_v44, %v7832_v28  ;;  %v5514_v37 = vmul.f32 %v6670_v7, %v8190_v49  ;;  %6689 = vrcp.f32 %v5802_v21 }
 0x9e6   : > { %v6674_v40 = vpop.eup %6673  ;;  %v5331_v27 = vadd.f32 %v5329_v17, %v5231_v35  ;;  %v5330_v51 = vmul.f32 %v5328_v50, %v7800_v13  ;;  %v5425_v53 = vadd.f32 %v5423_v33, %v5416_v2  ;;  %v5417_v18 = vmul.f32 %v6672_v52, %v8193_v4  ;;  %v5717_v4 = vpop.permute.xlu0 %5716 }
 0x9e7   : > { %v6676_v22 = vpop.eup %6675  ;;  %v5523_v36 = vadd.f32 %v5521_v39, %v5514_v37  ;;  %v5515_v14 = vmul.f32 %v6674_v40, %v8196_v48 }
 0x9e8   : > { %v6678_v43 = vpop.eup %6677  ;;  %v5332_v55 = vadd.f32 %v5330_v51, %v5232_v20  ;;  %v5427_v30 = vmul.f32 %v5425_v53, %v7854_v6  ;;  %v5426_v26 = vadd.f32 %v5423_v33, %v5417_v18  ;;  %v5612_v28 = vmul.f32 %v6676_v22, %v8203_v9  ;;  %v5815_v17 = vpop.permute.xlu1 %5814 }
 0x9e9   : > { %v6680_v49 = vpop.eup %6679  ;;  %v5525_v12 = vmul.f32 %v5523_v36, %v7718_v1  ;;  %v5524_v47 = vadd.f32 %v5521_v39, %v5515_v14  ;;  %v5710_v13 = vmul.f32 %v6678_v43, %v8206_v34 }
 0x9ea   : > { %v6682_v46 = vpop.eup %6681  ;;  %v5429_v59 = vadd.f32 %v5427_v30, %v5331_v27  ;;  %v5428_v45 = vmul.f32 %v5426_v26, %v7851_v25  ;;  %v5621_v48 = vadd.f32 %v5619_v57, %v5612_v28  ;;  %v5613_v8 = vmul.f32 %v6680_v49, %v8209_v63  ;;  %v5913_v27 = vpop.permute.xlu0 %5912 }
 0x9eb   : > { %v6684_v60 = vpop.eup %6683  ;;  %v5526_v6 = vmul.f32 %v5524_v47, %v7722_v15  ;;  %v5719_v3 = vadd.f32 %v5717_v4, %v5710_v13  ;;  %v5711_v9 = vmul.f32 %v6682_v46, %v8213_v19 }
 0x9ec   : > { %v6686_v16 = vpop.eup %6685  ;;  %v5527_v58 = vadd.f32 %v5525_v12, %v5429_v59  ;;  %v5430_v1 = vadd.f32 %v5428_v45, %v5332_v55  ;;  %v5623_v42 = vmul.f32 %v5621_v48, %v7734_v5  ;;  %v5622_v34 = vadd.f32 %v5619_v57, %v5613_v8 }
 0x9ed   : > { %v6688_v29 = vpop.eup %6687  ;;  %v5721_v31 = vmul.f32 %v5719_v3, %v7898_v24  ;;  %v5720_v41 = vadd.f32 %v5717_v4, %v5711_v9  ;;  %v5900_v25 = vadd.f32 1.0, %v6684_v60  ;;  %v5803_v33 = vadd.f32 1.0, %v6686_v16 }
 0x9ee   : > { %v5528_v35 = vadd.f32 %v5526_v6, %v5430_v1  ;;  %v5625_v63 = vadd.f32 %v5623_v42, %v5527_v58  ;;  %v5624_v44 = vmul.f32 %v5622_v34, %v7738_v10  ;;  %v5901_v15 = vadd.f32 1.0, %v6688_v29 }
 0x9ef   : > { %v6690_v21 = vpop.eup %6689  ;;  %v5722_v19 = vmul.f32 %v5720_v41, %v7882_v61  ;;  %6691 = vrcp.f32 %v5900_v25 }
 0x9f0   : > { %v5723_v7 = vadd.f32 %v5721_v31, %v5625_v63  ;;  %v5626_v39 = vadd.f32 %v5624_v44, %v5528_v35  ;;  %v5808_v5 = vmul.f32 %v6690_v21, %v8219_v11  ;;  %6693 = vrcp.f32 %v5803_v33 }
 0x9f1   : > { %6695 = vrcp.f32 %v5901_v15 }
 0x9f2   : > { %v5724_v24 = vadd.f32 %v5722_v19, %v5626_v39  ;;  %v5817_v50 = vadd.f32 %v5815_v17, %v5808_v5 }
 0x9f4   : > { %v5819_v2 = vmul.f32 %v5817_v50, %v7917_v32 }
 0x9f6   : > { %v5821_v52 = vadd.f32 %v5819_v2, %v5723_v7 }
 0x9f9   : > { %v6692_v20 = vpop.eup %6691 }
 0x9fa   : > { %v6694_v37 = vpop.eup %6693  ;;  %v5906_v10 = vmul.f32 %v6692_v20, %v8223_v0  ;;  %v6722_v0 = vld [vmem:[%s8286_s6] sm:$0x7] }
 0x9fb   : > { %v6696_v40 = vpop.eup %6695  ;;  %v5809_v61 = vmul.f32 %v6694_v37, %v8226_v23 }
 0x9fc   : > { %v5915_v51 = vadd.f32 %v5913_v27, %v5906_v10  ;;  %v5907_v53 = vmul.f32 %v6696_v40, %v8229_v62 }
 0x9fd   : > { %v5818_v11 = vadd.f32 %v5815_v17, %v5809_v61 }
 0x9fe   : > { %v5917_v18 = vmul.f32 %v5915_v51, %v7936_v38  ;;  %v5916_v22 = vadd.f32 %v5913_v27, %v5907_v53  ;;  %v8684_v38 = vld [vmem:[#allocation27_spill] sm:$0xff] }
 0x9ff   : > { %v5820_v36 = vmul.f32 %v5818_v11, %v7901_v54  ;;  %v8685_v54 = vld [vmem:[#allocation26_spill] sm:$0xff] }
 0xa00   : > { %v5919_v14 = vadd.f32 %v5917_v18, %v5821_v52  ;;  %v5918_v43 = vmul.f32 %v5916_v22, %v7920_v56 }
 0xa01   : > { %v5822_v32 = vadd.f32 %v5820_v36, %v5724_v24 }
 0xa03   : > { %v5920_v55 = vadd.f32 %v5918_v43, %v5822_v32 }
 0xa05   : > { %6355 = vmatprep.subr.msk.mxu1 %vm8681_vm15, %v5920_v55 }
 0xa06   : > { %6356 = vmatpush1.msk.msra.mxu1 %vm8682_vm10, %v5919_v14 }
 0xa07   : > { %6357 = vmatmul.mubr.msk.f32.vlgmr.msra.gmra.mrb[22].mxu1 %vm8683_vm8, %v6722_v0 }
 0xada   : > { %v5993_v23 = vpop.f32.mrb[22].mxu1 }
 0xadb   : > { %v5998_v62 = vmul.f32 %v8684_v38, %v5993_v23  ;;  %v5995_v30 = vpop.f32.mrb[23].mxu1 }
 0xadc   : > { %v5999_v26 = vmul.f32 %v8685_v54, %v5995_v30 }
 0xadd   : > { %v6000_v28 = vsel %vm8686_vm0, %v5998_v62, 0.0 }
 0xade   : > { %v6001_v56 = vrot.slane %v6000_v28, 4  ;;  %v6007_v49 = vsel %vm8687_vm14, %v5999_v26, 0.0 }
 0xadf   : > { %v6008_v57 = vrot.slane %v6007_v49, 4 }
 0xae0   : > { %v6002_v12 = vadd.f32 %v6001_v56, %v6000_v28 }
 0xae1   : > { %v6009_v47 = vadd.f32 %v6008_v57, %v6007_v49 }
 0xae2   : > { %v6003_v13 = vrot.slane %v6002_v12, 2 }
 0xae3   : > { %v6010_v46 = vrot.slane %v6009_v47, 2 }
 0xae4   : > { %v6004_v4 = vadd.f32 %v6003_v13, %v6002_v12 }
 0xae5   : > { %v6011_v59 = vadd.f32 %v6010_v46, %v6009_v47 }
 0xae6   : > { %v6005_v45 = vrot.slane %v6004_v4, 1 }
 0xae7   : > { %v6012_v48 = vrot.slane %v6011_v59, 1 }
 0xae8   : > { %v6006_v8 = vadd.f32 %v6005_v45, %v6004_v4 }
 0xae9   : > { %v6013_v60 = vadd.f32 %v6012_v48, %v6011_v59 }
 0xaea   : > { %v6014_v6 = vsub.f32 %v5993_v23, %v6006_v8 }
 0xaeb   : > { %v6015_v3 = vsub.f32 %v5995_v30, %v6013_v60 }
 0xaed   : > { %v6018_v9 = vcombine.low %v6014_v6, %v6015_v3 }
 0xaef   : > { %6358 = vst [vmem:[%s7960_s15 + $0x8] sm:$0x77] %v6018_v9 }
 0xaf0 PF: > { %s23_s25 = sadd.s32 1, %s6729_s25  }
 0xaf1   : > { %p20_p4 = scmp.ge.s32.totalorder %s23_s25, 4  }
 0xaf3   :  { %22 = sbr.rel (!%p20_p4) target bundleno = 1 (0x1), region = 180 }

</bundles_post_ra>
